<compile_context>
chip_gen: v7x
topology: tpu7x:2x2x1
jax: 0.10.0
libtpu: 0.0.40
codegen_flags: <defaults>
</compile_context>

<pallas_src>
import jax
import jax.numpy as jnp
import numpy as np
from jax import lax
from jax.experimental import pallas as pl
from jax.experimental.pallas import tpu as pltpu


def lstm_fc_kernel(x_ref, wih_ref, whh_ref, b_ref, wfc_ref, bfc_ref,
                   y_ref, gx_sc, hh_sc, c_sc):
    """Whole-sequence LSTM + Linear head (time-major, batch folded into rows).

    x_ref   : (T*B, F)   input sequence, row index = t*B + b   (bf16)
    wih_ref : (F, 4H)    W_ih^T                                (bf16)
    whh_ref : (H, 4H)    W_hh^T                                (bf16)
    b_ref   : (1, 4H)    b_ih + b_hh                           (f32)
    wfc_ref : (H, Fp)    W_fc^T zero-padded to Fp lanes        (bf16)
    bfc_ref : (1, Fp)    b_fc zero-padded                      (f32)
    y_ref   : (T*B, Fp)  output (lane-dense)                   (bf16)
    gx_sc   : (T*B, 4H)  precomputed input projection          (f32 VMEM)
    hh_sc   : (T*B, H)   per-step hidden states                (f32 VMEM)
    c_sc    : (B, H)     cell-state carry                      (f32 VMEM)
    """
    B, H = c_sc.shape
    T = x_ref.shape[0] // B

    # (1) Hoisted input projection + combined bias: one full-width matmul,
    #     one broadcast (not per step).
    gx_sc[...] = (
        jnp.dot(x_ref[...], wih_ref[...], preferred_element_type=jnp.float32)
        + b_ref[...]
    )

    def sig(x):
        # sigmoid(x) == 0.5*tanh(0.5*x) + 0.5  -> a single EUP pass per vreg.
        return 0.5 * jnp.tanh(0.5 * x) + 0.5

    # (2a) t == 0: h0 = c0 = 0, so gates are the input projection only and the
    #      h @ W_hh matmul (and f_g * c term) is skipped entirely.
    g0 = gx_sc[pl.ds(0, B), :]
    i0 = sig(g0[:, 0 * H:1 * H])
    gg0 = jnp.tanh(g0[:, 2 * H:3 * H])
    o0 = sig(g0[:, 3 * H:4 * H])
    c0 = i0 * gg0
    c_sc[...] = c0
    hh_sc[pl.ds(0, B), :] = o0 * jnp.tanh(c0)

    # (2b) Serial recurrence, steps 1..T-1: one small matmul + gate math each.
    def step(t, carry):
        row = pl.multiple_of(t * B, B)
        prev = pl.multiple_of((t - 1) * B, B)
        h_prev = hh_sc[pl.ds(prev, B), :]                        # (B, H) f32
        gates = gx_sc[pl.ds(row, B), :] + jnp.dot(
            h_prev.astype(whh_ref.dtype), whh_ref[...],
            preferred_element_type=jnp.float32)                  # (B, 4H) f32

        i_g = sig(gates[:, 0 * H:1 * H])
        f_g = sig(gates[:, 1 * H:2 * H])
        g_g = jnp.tanh(gates[:, 2 * H:3 * H])
        o_g = sig(gates[:, 3 * H:4 * H])

        c_new = f_g * c_sc[...] + i_g * g_g
        c_sc[...] = c_new
        hh_sc[pl.ds(row, B), :] = o_g * jnp.tanh(c_new)          # exact (8,128) tile store
        return carry

    # Full unroll only while it's cheap; partial unroll keeps LLO visibility
    # without blowing the 64-vreg budget for long sequences.
    lax.fori_loop(1, T, step, 0, unroll=(True if T <= 32 else 8))

    # (3) Hoisted FC head: one bulk f32->bf16 cast of the hidden history, one
    #     big matmul, one lane-dense store of the whole output slab.
    y_ref[...] = (
        jnp.dot(hh_sc[...].astype(wfc_ref.dtype), wfc_ref[...],
                preferred_element_type=jnp.float32)
        + bfc_ref[...]
    ).astype(y_ref.dtype)


def lstm_forward(x_btf, w_ih, w_hh, b_ih, b_hh, w_fc, b_fc):
    """x_btf: (B, T, F) like PyTorch batch_first input. Returns (B, T, F)."""
    B, T, F = x_btf.shape
    H4 = w_ih.shape[0]
    H = H4 // 4
    assert B % 8 == 0, "batch must be a multiple of 8 (f32 sublane tile)"
    assert H % 128 == 0, "hidden size must be a multiple of 128 (lane width)"
    Fp = ((F + 127) // 128) * 128          # pad output lanes to a full vreg

    # Time-major, batch folded into rows; bf16 matmul operands.
    x_tbf = jnp.transpose(x_btf, (1, 0, 2)).reshape(T * B, F).astype(jnp.bfloat16)
    wih_t = jnp.transpose(w_ih).astype(jnp.bfloat16)               # (F, 4H)
    whh_t = jnp.transpose(w_hh).astype(jnp.bfloat16)               # (H, 4H)
    b = (b_ih + b_hh).reshape(1, 4 * H).astype(jnp.float32)        # (1, 4H)
    wfc_pad = jnp.zeros((H, Fp), jnp.bfloat16).at[:, :F].set(
        jnp.transpose(w_fc).astype(jnp.bfloat16))                  # (H, Fp)
    bfc_pad = jnp.zeros((1, Fp), jnp.float32).at[:, :F].set(
        b_fc.reshape(1, F).astype(jnp.float32))                    # (1, Fp)

    # Footprint-derived VMEM limit (covers v5e's 16 MiB scoped default when
    # T*B grows), clamped to v7x's 64 MiB physical VMEM.
    vmem_bytes = (
        T * B * F * 2 + F * 4 * H * 2 + H * 4 * H * 2 + 4 * H * 4   # inputs
        + H * Fp * 2 + Fp * 4                                       # FC weights
        + T * B * Fp * 2                                            # output (bf16)
        + T * B * 4 * H * 4 + T * B * H * 4 + B * H * 4             # scratch
    )
    vmem_limit = min(64 * 1024 * 1024,
                     max(32 * 1024 * 1024, int(1.25 * vmem_bytes) + (2 << 20)))

    vmem = pl.BlockSpec(memory_space=pltpu.MemorySpace.VMEM)
    y_flat = pl.pallas_call(
        lstm_fc_kernel,
        out_shape=jax.ShapeDtypeStruct((T * B, Fp), jnp.bfloat16),
        in_specs=[vmem] * 6,
        out_specs=vmem,
        scratch_shapes=[
            pltpu.VMEM((T * B, 4 * H), jnp.float32),   # gates_x
            pltpu.VMEM((T * B, H), jnp.float32),       # h history (f32 -> exact tiles)
            pltpu.VMEM((B, H), jnp.float32),           # c carry
        ],
        compiler_params=pltpu.CompilerParams(vmem_limit_bytes=vmem_limit),
    )(x_tbf, wih_t, whh_t, b, wfc_pad, bfc_pad)

    y_tbf = y_flat[:, :F].astype(x_btf.dtype).reshape(T, B, F)
    return jnp.transpose(y_tbf, (1, 0, 2))             # back to (B, T, F)


def lstm_reference(x_btf, w_ih, w_hh, b_ih, b_hh, w_fc, b_fc):
    """Pure-JAX f32 reference matching torch.nn.LSTM(batch_first=True) + Linear."""
    B, T, F = x_btf.shape
    H = w_hh.shape[1]
    h = jnp.zeros((B, H), jnp.float32)
    c = jnp.zeros((B, H), jnp.float32)
    outs = []
    for t in range(T):
        gates = x_btf[:, t, :] @ w_ih.T + b_ih + h @ w_hh.T + b_hh
        i_g = jax.nn.sigmoid(gates[:, 0 * H:1 * H])
        f_g = jax.nn.sigmoid(gates[:, 1 * H:2 * H])
        g_g = jnp.tanh(gates[:, 2 * H:3 * H])
        o_g = jax.nn.sigmoid(gates[:, 3 * H:4 * H])
        c = f_g * c + i_g * g_g
        h = o_g * jnp.tanh(c)
        outs.append(h @ w_fc.T + b_fc)
    return jnp.stack(outs, axis=1)


if __name__ == "__main__":
    # Small shapes consistent with LSTM(hidden_size=128, nfeatures=4), input (B, T, F).
    B, T, F, H = 8, 16, 4, 128

    key = jax.random.PRNGKey(0)
    ks = jax.random.split(key, 7)
    bound = 1.0 / np.sqrt(H)   # PyTorch's uniform(-1/sqrt(H), 1/sqrt(H)) init

    x = jax.random.normal(ks[0], (B, T, F), jnp.float32)
    w_ih = jax.random.uniform(ks[1], (4 * H, F), jnp.float32, -bound, bound)
    w_hh = jax.random.uniform(ks[2], (4 * H, H), jnp.float32, -bound, bound)
    b_ih = jax.random.uniform(ks[3], (4 * H,), jnp.float32, -bound, bound)
    b_hh = jax.random.uniform(ks[4], (4 * H,), jnp.float32, -bound, bound)
    w_fc = jax.random.uniform(ks[5], (F, H), jnp.float32, -bound, bound)
    b_fc = jax.random.uniform(ks[6], (F,), jnp.float32, -bound, bound)

    y = lstm_forward(x, w_ih, w_hh, b_ih, b_hh, w_fc, b_fc)
    y = jax.block_until_ready(y)

    y_ref = lstm_reference(x, w_ih, w_hh, b_ih, b_hh, w_fc, b_fc)
    # bf16 MXU operands / bf16 output slab with f32 accumulation -> relaxed tolerance.
    np.testing.assert_allclose(np.asarray(y), np.asarray(y_ref), rtol=2e-2, atol=2e-2)

    assert y.shape == (B, T, F)
    print("KERNEL_OK")
</pallas_src>

<mosaic_0001>
module attributes {stable_mosaic.version = 11 : i64} {
  func.func @lstm_fc_kernel(%arg0: memref<128x4xbf16, #tpu.memory_space<vmem>>, %arg1: memref<4x512xbf16, #tpu.memory_space<vmem>>, %arg2: memref<128x512xbf16, #tpu.memory_space<vmem>>, %arg3: memref<1x512xf32, #tpu.memory_space<vmem>>, %arg4: memref<128x128xbf16, #tpu.memory_space<vmem>>, %arg5: memref<1x128xf32, #tpu.memory_space<vmem>>, %arg6: memref<128x128xbf16, #tpu.memory_space<vmem>>, %arg7: memref<128x512xf32, #tpu.memory_space<vmem>>, %arg8: memref<128x128xf32, #tpu.memory_space<vmem>>, %arg9: memref<8x128xf32, #tpu.memory_space<vmem>>) attributes {dimension_semantics = [], scalar_prefetch = 0 : i64, scratch_operands = 3 : i64, tpu.core_type = #tpu.core_type<tc>} {
    %c0 = arith.constant 0 : index
    %c0_0 = arith.constant 0 : index
    %0 = vector.load %arg0[%c0, %c0_0] : memref<128x4xbf16, #tpu.memory_space<vmem>>, vector<128x4xbf16>
    %c0_1 = arith.constant 0 : index
    %c0_2 = arith.constant 0 : index
    %1 = vector.load %arg1[%c0_1, %c0_2] : memref<4x512xbf16, #tpu.memory_space<vmem>>, vector<4x512xbf16>
    %cst = arith.constant dense<0.000000e+00> : vector<128x512xf32>
    %2 = tpu.matmul %0, %1, %cst {dimension_numbers = #tpu.dot_dimension_numbers<[1], [0], [0], [1], [0, 0, 1, 1], [], []>} : vector<128x4xbf16>, vector<4x512xbf16>, vector<128x512xf32> -> vector<128x512xf32>
    %c0_3 = arith.constant 0 : index
    %c0_4 = arith.constant 0 : index
    %3 = vector.load %arg3[%c0_3, %c0_4] : memref<1x512xf32, #tpu.memory_space<vmem>>, vector<1x512xf32>
    %4 = vector.broadcast %3 : vector<1x512xf32> to vector<128x512xf32>
    %5 = arith.addf %2, %4 : vector<128x512xf32>
    %c0_5 = arith.constant 0 : index
    %c0_6 = arith.constant 0 : index
    %6 = vector.load %arg7[%c0_5, %c0_6] : memref<128x512xf32, #tpu.memory_space<vmem>>, vector<128x512xf32>
    tpu.vector_store %arg7[%c0_5, %c0_6], %5 {strides = array<i32>} : memref<128x512xf32, #tpu.memory_space<vmem>>, vector<128x512xf32>,
    %c0_7 = arith.constant 0 : index
    %c0_8 = arith.constant 0 : index
    %7 = vector.load %arg7[%c0_7, %c0_8] : memref<128x512xf32, #tpu.memory_space<vmem>>, vector<8x512xf32>
    %8 = vector.extract_strided_slice %7 {offsets = [0, 0], sizes = [8, 128], strides = [1, 1]} : vector<8x512xf32> to vector<8x128xf32>
    %cst_9 = arith.constant 5.000000e-01 : f32
    %9 = vector.broadcast %cst_9 : f32 to vector<8x128xf32>
    %10 = arith.mulf %9, %8 : vector<8x128xf32>
    %11 = math.tanh %10 : vector<8x128xf32>
    %cst_10 = arith.constant 5.000000e-01 : f32
    %12 = vector.broadcast %cst_10 : f32 to vector<8x128xf32>
    %13 = arith.mulf %12, %11 : vector<8x128xf32>
    %cst_11 = arith.constant 5.000000e-01 : f32
    %14 = vector.broadcast %cst_11 : f32 to vector<8x128xf32>
    %15 = arith.addf %13, %14 : vector<8x128xf32>
    %16 = vector.extract_strided_slice %7 {offsets = [0, 256], sizes = [8, 128], strides = [1, 1]} : vector<8x512xf32> to vector<8x128xf32>
    %17 = math.tanh %16 : vector<8x128xf32>
    %18 = vector.extract_strided_slice %7 {offsets = [0, 384], sizes = [8, 128], strides = [1, 1]} : vector<8x512xf32> to vector<8x128xf32>
    %cst_12 = arith.constant 5.000000e-01 : f32
    %19 = vector.broadcast %cst_12 : f32 to vector<8x128xf32>
    %20 = arith.mulf %19, %18 : vector<8x128xf32>
    %21 = math.tanh %20 : vector<8x128xf32>
    %cst_13 = arith.constant 5.000000e-01 : f32
    %22 = vector.broadcast %cst_13 : f32 to vector<8x128xf32>
    %23 = arith.mulf %22, %21 : vector<8x128xf32>
    %cst_14 = arith.constant 5.000000e-01 : f32
    %24 = vector.broadcast %cst_14 : f32 to vector<8x128xf32>
    %25 = arith.addf %23, %24 : vector<8x128xf32>
    %26 = arith.mulf %15, %17 : vector<8x128xf32>
    %c0_15 = arith.constant 0 : index
    %c0_16 = arith.constant 0 : index
    %27 = vector.load %arg9[%c0_15, %c0_16] : memref<8x128xf32, #tpu.memory_space<vmem>>, vector<8x128xf32>
    tpu.vector_store %arg9[%c0_15, %c0_16], %26 {strides = array<i32>} : memref<8x128xf32, #tpu.memory_space<vmem>>, vector<8x128xf32>,
    %28 = math.tanh %26 : vector<8x128xf32>
    %29 = arith.mulf %25, %28 : vector<8x128xf32>
    %c0_17 = arith.constant 0 : index
    %c0_18 = arith.constant 0 : index
    %30 = vector.load %arg8[%c0_17, %c0_18] : memref<128x128xf32, #tpu.memory_space<vmem>>, vector<8x128xf32>
    tpu.vector_store %arg8[%c0_17, %c0_18], %29 {strides = array<i32>} : memref<128x128xf32, #tpu.memory_space<vmem>>, vector<8x128xf32>,
    %c1_i32 = arith.constant 1 : i32
    %c8_i32 = arith.constant 8 : i32
    %31 = arith.muli %c1_i32, %c8_i32 : i32
    %32 = tpu.assume_multiple %31, 8 : i32
    %c1_i32_19 = arith.constant 1 : i32
    %33 = arith.subi %c1_i32, %c1_i32_19 : i32
    %c8_i32_20 = arith.constant 8 : i32
    %34 = arith.muli %33, %c8_i32_20 : i32
    %35 = tpu.assume_multiple %34, 8 : i32
    %36 = arith.index_cast %35 : i32 to index
    %c0_21 = arith.constant 0 : index
    %37 = vector.load %arg8[%36, %c0_21] : memref<128x128xf32, #tpu.memory_space<vmem>>, vector<8x128xf32>
    %38 = arith.index_cast %32 : i32 to index
    %c0_22 = arith.constant 0 : index
    %39 = vector.load %arg7[%38, %c0_22] : memref<128x512xf32, #tpu.memory_space<vmem>>, vector<8x512xf32>
    %40 = arith.truncf %37 : vector<8x128xf32> to vector<8x128xbf16>
    %c0_23 = arith.constant 0 : index
    %c0_24 = arith.constant 0 : index
    %41 = vector.load %arg2[%c0_23, %c0_24] : memref<128x512xbf16, #tpu.memory_space<vmem>>, vector<128x512xbf16>
    %cst_25 = arith.constant dense<0.000000e+00> : vector<8x512xf32>
    %42 = tpu.matmul %40, %41, %cst_25 {dimension_numbers = #tpu.dot_dimension_numbers<[1], [0], [0], [1], [0, 0, 1, 1], [], []>} : vector<8x128xbf16>, vector<128x512xbf16>, vector<8x512xf32> -> vector<8x512xf32>
    %43 = arith.addf %39, %42 : vector<8x512xf32>
    %44 = vector.extract_strided_slice %43 {offsets = [0, 0], sizes = [8, 128], strides = [1, 1]} : vector<8x512xf32> to vector<8x128xf32>
    %cst_26 = arith.constant 5.000000e-01 : f32
    %45 = vector.broadcast %cst_26 : f32 to vector<8x128xf32>
    %46 = arith.mulf %45, %44 : vector<8x128xf32>
    %47 = math.tanh %46 : vector<8x128xf32>
    %cst_27 = arith.constant 5.000000e-01 : f32
    %48 = vector.broadcast %cst_27 : f32 to vector<8x128xf32>
    %49 = arith.mulf %48, %47 : vector<8x128xf32>
    %cst_28 = arith.constant 5.000000e-01 : f32
    %50 = vector.broadcast %cst_28 : f32 to vector<8x128xf32>
    %51 = arith.addf %49, %50 : vector<8x128xf32>
    %52 = vector.extract_strided_slice %43 {offsets = [0, 128], sizes = [8, 128], strides = [1, 1]} : vector<8x512xf32> to vector<8x128xf32>
    %cst_29 = arith.constant 5.000000e-01 : f32
    %53 = vector.broadcast %cst_29 : f32 to vector<8x128xf32>
    %54 = arith.mulf %53, %52 : vector<8x128xf32>
    %55 = math.tanh %54 : vector<8x128xf32>
    %cst_30 = arith.constant 5.000000e-01 : f32
    %56 = vector.broadcast %cst_30 : f32 to vector<8x128xf32>
    %57 = arith.mulf %56, %55 : vector<8x128xf32>
    %cst_31 = arith.constant 5.000000e-01 : f32
    %58 = vector.broadcast %cst_31 : f32 to vector<8x128xf32>
    %59 = arith.addf %57, %58 : vector<8x128xf32>
    %60 = vector.extract_strided_slice %43 {offsets = [0, 256], sizes = [8, 128], strides = [1, 1]} : vector<8x512xf32> to vector<8x128xf32>
    %61 = math.tanh %60 : vector<8x128xf32>
    %62 = vector.extract_strided_slice %43 {offsets = [0, 384], sizes = [8, 128], strides = [1, 1]} : vector<8x512xf32> to vector<8x128xf32>
    %cst_32 = arith.constant 5.000000e-01 : f32
    %63 = vector.broadcast %cst_32 : f32 to vector<8x128xf32>
    %64 = arith.mulf %63, %62 : vector<8x128xf32>
    %65 = math.tanh %64 : vector<8x128xf32>
    %cst_33 = arith.constant 5.000000e-01 : f32
    %66 = vector.broadcast %cst_33 : f32 to vector<8x128xf32>
    %67 = arith.mulf %66, %65 : vector<8x128xf32>
    %cst_34 = arith.constant 5.000000e-01 : f32
    %68 = vector.broadcast %cst_34 : f32 to vector<8x128xf32>
    %69 = arith.addf %67, %68 : vector<8x128xf32>
    %c0_35 = arith.constant 0 : index
    %c0_36 = arith.constant 0 : index
    %70 = vector.load %arg9[%c0_35, %c0_36] : memref<8x128xf32, #tpu.memory_space<vmem>>, vector<8x128xf32>
    %71 = arith.mulf %59, %70 : vector<8x128xf32>
    %72 = arith.mulf %51, %61 : vector<8x128xf32>
    %73 = arith.addf %71, %72 : vector<8x128xf32>
    %c0_37 = arith.constant 0 : index
    %c0_38 = arith.constant 0 : index
    %74 = vector.load %arg9[%c0_37, %c0_38] : memref<8x128xf32, #tpu.memory_space<vmem>>, vector<8x128xf32>
    tpu.vector_store %arg9[%c0_37, %c0_38], %73 {strides = array<i32>} : memref<8x128xf32, #tpu.memory_space<vmem>>, vector<8x128xf32>,
    %75 = math.tanh %73 : vector<8x128xf32>
    %76 = arith.mulf %69, %75 : vector<8x128xf32>
    %77 = arith.index_cast %32 : i32 to index
    %c0_39 = arith.constant 0 : index
    %78 = vector.load %arg8[%77, %c0_39] : memref<128x128xf32, #tpu.memory_space<vmem>>, vector<8x128xf32>
    tpu.vector_store %arg8[%77, %c0_39], %76 {strides = array<i32>} : memref<128x128xf32, #tpu.memory_space<vmem>>, vector<8x128xf32>,
    %c2_i32 = arith.constant 2 : i32
    %c8_i32_40 = arith.constant 8 : i32
    %79 = arith.muli %c2_i32, %c8_i32_40 : i32
    %80 = tpu.assume_multiple %79, 8 : i32
    %c1_i32_41 = arith.constant 1 : i32
    %81 = arith.subi %c2_i32, %c1_i32_41 : i32
    %c8_i32_42 = arith.constant 8 : i32
    %82 = arith.muli %81, %c8_i32_42 : i32
    %83 = tpu.assume_multiple %82, 8 : i32
    %84 = arith.index_cast %83 : i32 to index
    %c0_43 = arith.constant 0 : index
    %85 = vector.load %arg8[%84, %c0_43] : memref<128x128xf32, #tpu.memory_space<vmem>>, vector<8x128xf32>
    %86 = arith.index_cast %80 : i32 to index
    %c0_44 = arith.constant 0 : index
    %87 = vector.load %arg7[%86, %c0_44] : memref<128x512xf32, #tpu.memory_space<vmem>>, vector<8x512xf32>
    %88 = arith.truncf %85 : vector<8x128xf32> to vector<8x128xbf16>
    %c0_45 = arith.constant 0 : index
    %c0_46 = arith.constant 0 : index
    %89 = vector.load %arg2[%c0_45, %c0_46] : memref<128x512xbf16, #tpu.memory_space<vmem>>, vector<128x512xbf16>
    %cst_47 = arith.constant dense<0.000000e+00> : vector<8x512xf32>
    %90 = tpu.matmul %88, %89, %cst_47 {dimension_numbers = #tpu.dot_dimension_numbers<[1], [0], [0], [1], [0, 0, 1, 1], [], []>} : vector<8x128xbf16>, vector<128x512xbf16>, vector<8x512xf32> -> vector<8x512xf32>
    %91 = arith.addf %87, %90 : vector<8x512xf32>
    %92 = vector.extract_strided_slice %91 {offsets = [0, 0], sizes = [8, 128], strides = [1, 1]} : vector<8x512xf32> to vector<8x128xf32>
    %cst_48 = arith.constant 5.000000e-01 : f32
    %93 = vector.broadcast %cst_48 : f32 to vector<8x128xf32>
    %94 = arith.mulf %93, %92 : vector<8x128xf32>
    %95 = math.tanh %94 : vector<8x128xf32>
    %cst_49 = arith.constant 5.000000e-01 : f32
    %96 = vector.broadcast %cst_49 : f32 to vector<8x128xf32>
    %97 = arith.mulf %96, %95 : vector<8x128xf32>
    %cst_50 = arith.constant 5.000000e-01 : f32
    %98 = vector.broadcast %cst_50 : f32 to vector<8x128xf32>
    %99 = arith.addf %97, %98 : vector<8x128xf32>
    %100 = vector.extract_strided_slice %91 {offsets = [0, 128], sizes = [8, 128], strides = [1, 1]} : vector<8x512xf32> to vector<8x128xf32>
    %cst_51 = arith.constant 5.000000e-01 : f32
    %101 = vector.broadcast %cst_51 : f32 to vector<8x128xf32>
    %102 = arith.mulf %101, %100 : vector<8x128xf32>
    %103 = math.tanh %102 : vector<8x128xf32>
    %cst_52 = arith.constant 5.000000e-01 : f32
    %104 = vector.broadcast %cst_52 : f32 to vector<8x128xf32>
    %105 = arith.mulf %104, %103 : vector<8x128xf32>
    %cst_53 = arith.constant 5.000000e-01 : f32
    %106 = vector.broadcast %cst_53 : f32 to vector<8x128xf32>
    %107 = arith.addf %105, %106 : vector<8x128xf32>
    %108 = vector.extract_strided_slice %91 {offsets = [0, 256], sizes = [8, 128], strides = [1, 1]} : vector<8x512xf32> to vector<8x128xf32>
    %109 = math.tanh %108 : vector<8x128xf32>
    %110 = vector.extract_strided_slice %91 {offsets = [0, 384], sizes = [8, 128], strides = [1, 1]} : vector<8x512xf32> to vector<8x128xf32>
    %cst_54 = arith.constant 5.000000e-01 : f32
    %111 = vector.broadcast %cst_54 : f32 to vector<8x128xf32>
    %112 = arith.mulf %111, %110 : vector<8x128xf32>
    %113 = math.tanh %112 : vector<8x128xf32>
    %cst_55 = arith.constant 5.000000e-01 : f32
    %114 = vector.broadcast %cst_55 : f32 to vector<8x128xf32>
    %115 = arith.mulf %114, %113 : vector<8x128xf32>
    %cst_56 = arith.constant 5.000000e-01 : f32
    %116 = vector.broadcast %cst_56 : f32 to vector<8x128xf32>
    %117 = arith.addf %115, %116 : vector<8x128xf32>
    %c0_57 = arith.constant 0 : index
    %c0_58 = arith.constant 0 : index
    %118 = vector.load %arg9[%c0_57, %c0_58] : memref<8x128xf32, #tpu.memory_space<vmem>>, vector<8x128xf32>
    %119 = arith.mulf %107, %118 : vector<8x128xf32>
    %120 = arith.mulf %99, %109 : vector<8x128xf32>
    %121 = arith.addf %119, %120 : vector<8x128xf32>
    %c0_59 = arith.constant 0 : index
    %c0_60 = arith.constant 0 : index
    %122 = vector.load %arg9[%c0_59, %c0_60] : memref<8x128xf32, #tpu.memory_space<vmem>>, vector<8x128xf32>
    tpu.vector_store %arg9[%c0_59, %c0_60], %121 {strides = array<i32>} : memref<8x128xf32, #tpu.memory_space<vmem>>, vector<8x128xf32>,
    %123 = math.tanh %121 : vector<8x128xf32>
    %124 = arith.mulf %117, %123 : vector<8x128xf32>
    %125 = arith.index_cast %80 : i32 to index
    %c0_61 = arith.constant 0 : index
    %126 = vector.load %arg8[%125, %c0_61] : memref<128x128xf32, #tpu.memory_space<vmem>>, vector<8x128xf32>
    tpu.vector_store %arg8[%125, %c0_61], %124 {strides = array<i32>} : memref<128x128xf32, #tpu.memory_space<vmem>>, vector<8x128xf32>,
    %c3_i32 = arith.constant 3 : i32
    %c8_i32_62 = arith.constant 8 : i32
    %127 = arith.muli %c3_i32, %c8_i32_62 : i32
    %128 = tpu.assume_multiple %127, 8 : i32
    %c1_i32_63 = arith.constant 1 : i32
    %129 = arith.subi %c3_i32, %c1_i32_63 : i32
    %c8_i32_64 = arith.constant 8 : i32
    %130 = arith.muli %129, %c8_i32_64 : i32
    %131 = tpu.assume_multiple %130, 8 : i32
    %132 = arith.index_cast %131 : i32 to index
    %c0_65 = arith.constant 0 : index
    %133 = vector.load %arg8[%132, %c0_65] : memref<128x128xf32, #tpu.memory_space<vmem>>, vector<8x128xf32>
    %134 = arith.index_cast %128 : i32 to index
    %c0_66 = arith.constant 0 : index
    %135 = vector.load %arg7[%134, %c0_66] : memref<128x512xf32, #tpu.memory_space<vmem>>, vector<8x512xf32>
    %136 = arith.truncf %133 : vector<8x128xf32> to vector<8x128xbf16>
    %c0_67 = arith.constant 0 : index
    %c0_68 = arith.constant 0 : index
    %137 = vector.load %arg2[%c0_67, %c0_68] : memref<128x512xbf16, #tpu.memory_space<vmem>>, vector<128x512xbf16>
    %cst_69 = arith.constant dense<0.000000e+00> : vector<8x512xf32>
    %138 = tpu.matmul %136, %137, %cst_69 {dimension_numbers = #tpu.dot_dimension_numbers<[1], [0], [0], [1], [0, 0, 1, 1], [], []>} : vector<8x128xbf16>, vector<128x512xbf16>, vector<8x512xf32> -> vector<8x512xf32>
    %139 = arith.addf %135, %138 : vector<8x512xf32>
    %140 = vector.extract_strided_slice %139 {offsets = [0, 0], sizes = [8, 128], strides = [1, 1]} : vector<8x512xf32> to vector<8x128xf32>
    %cst_70 = arith.constant 5.000000e-01 : f32
    %141 = vector.broadcast %cst_70 : f32 to vector<8x128xf32>
    %142 = arith.mulf %141, %140 : vector<8x128xf32>
    %143 = math.tanh %142 : vector<8x128xf32>
    %cst_71 = arith.constant 5.000000e-01 : f32
    %144 = vector.broadcast %cst_71 : f32 to vector<8x128xf32>
    %145 = arith.mulf %144, %143 : vector<8x128xf32>
    %cst_72 = arith.constant 5.000000e-01 : f32
    %146 = vector.broadcast %cst_72 : f32 to vector<8x128xf32>
    %147 = arith.addf %145, %146 : vector<8x128xf32>
    %148 = vector.extract_strided_slice %139 {offsets = [0, 128], sizes = [8, 128], strides = [1, 1]} : vector<8x512xf32> to vector<8x128xf32>
    %cst_73 = arith.constant 5.000000e-01 : f32
    %149 = vector.broadcast %cst_73 : f32 to vector<8x128xf32>
    %150 = arith.mulf %149, %148 : vector<8x128xf32>
    %151 = math.tanh %150 : vector<8x128xf32>
    %cst_74 = arith.constant 5.000000e-01 : f32
    %152 = vector.broadcast %cst_74 : f32 to vector<8x128xf32>
    %153 = arith.mulf %152, %151 : vector<8x128xf32>
    %cst_75 = arith.constant 5.000000e-01 : f32
    %154 = vector.broadcast %cst_75 : f32 to vector<8x128xf32>
    %155 = arith.addf %153, %154 : vector<8x128xf32>
    %156 = vector.extract_strided_slice %139 {offsets = [0, 256], sizes = [8, 128], strides = [1, 1]} : vector<8x512xf32> to vector<8x128xf32>
    %157 = math.tanh %156 : vector<8x128xf32>
    %158 = vector.extract_strided_slice %139 {offsets = [0, 384], sizes = [8, 128], strides = [1, 1]} : vector<8x512xf32> to vector<8x128xf32>
    %cst_76 = arith.constant 5.000000e-01 : f32
    %159 = vector.broadcast %cst_76 : f32 to vector<8x128xf32>
    %160 = arith.mulf %159, %158 : vector<8x128xf32>
    %161 = math.tanh %160 : vector<8x128xf32>
    %cst_77 = arith.constant 5.000000e-01 : f32
    %162 = vector.broadcast %cst_77 : f32 to vector<8x128xf32>
    %163 = arith.mulf %162, %161 : vector<8x128xf32>
    %cst_78 = arith.constant 5.000000e-01 : f32
    %164 = vector.broadcast %cst_78 : f32 to vector<8x128xf32>
    %165 = arith.addf %163, %164 : vector<8x128xf32>
    %c0_79 = arith.constant 0 : index
    %c0_80 = arith.constant 0 : index
    %166 = vector.load %arg9[%c0_79, %c0_80] : memref<8x128xf32, #tpu.memory_space<vmem>>, vector<8x128xf32>
    %167 = arith.mulf %155, %166 : vector<8x128xf32>
    %168 = arith.mulf %147, %157 : vector<8x128xf32>
    %169 = arith.addf %167, %168 : vector<8x128xf32>
    %c0_81 = arith.constant 0 : index
    %c0_82 = arith.constant 0 : index
    %170 = vector.load %arg9[%c0_81, %c0_82] : memref<8x128xf32, #tpu.memory_space<vmem>>, vector<8x128xf32>
    tpu.vector_store %arg9[%c0_81, %c0_82], %169 {strides = array<i32>} : memref<8x128xf32, #tpu.memory_space<vmem>>, vector<8x128xf32>,
    %171 = math.tanh %169 : vector<8x128xf32>
    %172 = arith.mulf %165, %171 : vector<8x128xf32>
    %173 = arith.index_cast %128 : i32 to index
    %c0_83 = arith.constant 0 : index
    %174 = vector.load %arg8[%173, %c0_83] : memref<128x128xf32, #tpu.memory_space<vmem>>, vector<8x128xf32>
    tpu.vector_store %arg8[%173, %c0_83], %172 {strides = array<i32>} : memref<128x128xf32, #tpu.memory_space<vmem>>, vector<8x128xf32>,
    %c4_i32 = arith.constant 4 : i32
    %c8_i32_84 = arith.constant 8 : i32
    %175 = arith.muli %c4_i32, %c8_i32_84 : i32
    %176 = tpu.assume_multiple %175, 8 : i32
    %c1_i32_85 = arith.constant 1 : i32
    %177 = arith.subi %c4_i32, %c1_i32_85 : i32
    %c8_i32_86 = arith.constant 8 : i32
    %178 = arith.muli %177, %c8_i32_86 : i32
    %179 = tpu.assume_multiple %178, 8 : i32
    %180 = arith.index_cast %179 : i32 to index
    %c0_87 = arith.constant 0 : index
    %181 = vector.load %arg8[%180, %c0_87] : memref<128x128xf32, #tpu.memory_space<vmem>>, vector<8x128xf32>
    %182 = arith.index_cast %176 : i32 to index
    %c0_88 = arith.constant 0 : index
    %183 = vector.load %arg7[%182, %c0_88] : memref<128x512xf32, #tpu.memory_space<vmem>>, vector<8x512xf32>
    %184 = arith.truncf %181 : vector<8x128xf32> to vector<8x128xbf16>
    %c0_89 = arith.constant 0 : index
    %c0_90 = arith.constant 0 : index
    %185 = vector.load %arg2[%c0_89, %c0_90] : memref<128x512xbf16, #tpu.memory_space<vmem>>, vector<128x512xbf16>
    %cst_91 = arith.constant dense<0.000000e+00> : vector<8x512xf32>
    %186 = tpu.matmul %184, %185, %cst_91 {dimension_numbers = #tpu.dot_dimension_numbers<[1], [0], [0], [1], [0, 0, 1, 1], [], []>} : vector<8x128xbf16>, vector<128x512xbf16>, vector<8x512xf32> -> vector<8x512xf32>
    %187 = arith.addf %183, %186 : vector<8x512xf32>
    %188 = vector.extract_strided_slice %187 {offsets = [0, 0], sizes = [8, 128], strides = [1, 1]} : vector<8x512xf32> to vector<8x128xf32>
    %cst_92 = arith.constant 5.000000e-01 : f32
    %189 = vector.broadcast %cst_92 : f32 to vector<8x128xf32>
    %190 = arith.mulf %189, %188 : vector<8x128xf32>
    %191 = math.tanh %190 : vector<8x128xf32>
    %cst_93 = arith.constant 5.000000e-01 : f32
    %192 = vector.broadcast %cst_93 : f32 to vector<8x128xf32>
    %193 = arith.mulf %192, %191 : vector<8x128xf32>
    %cst_94 = arith.constant 5.000000e-01 : f32
    %194 = vector.broadcast %cst_94 : f32 to vector<8x128xf32>
    %195 = arith.addf %193, %194 : vector<8x128xf32>
    %196 = vector.extract_strided_slice %187 {offsets = [0, 128], sizes = [8, 128], strides = [1, 1]} : vector<8x512xf32> to vector<8x128xf32>
    %cst_95 = arith.constant 5.000000e-01 : f32
    %197 = vector.broadcast %cst_95 : f32 to vector<8x128xf32>
    %198 = arith.mulf %197, %196 : vector<8x128xf32>
    %199 = math.tanh %198 : vector<8x128xf32>
    %cst_96 = arith.constant 5.000000e-01 : f32
    %200 = vector.broadcast %cst_96 : f32 to vector<8x128xf32>
    %201 = arith.mulf %200, %199 : vector<8x128xf32>
    %cst_97 = arith.constant 5.000000e-01 : f32
    %202 = vector.broadcast %cst_97 : f32 to vector<8x128xf32>
    %203 = arith.addf %201, %202 : vector<8x128xf32>
    %204 = vector.extract_strided_slice %187 {offsets = [0, 256], sizes = [8, 128], strides = [1, 1]} : vector<8x512xf32> to vector<8x128xf32>
    %205 = math.tanh %204 : vector<8x128xf32>
    %206 = vector.extract_strided_slice %187 {offsets = [0, 384], sizes = [8, 128], strides = [1, 1]} : vector<8x512xf32> to vector<8x128xf32>
    %cst_98 = arith.constant 5.000000e-01 : f32
    %207 = vector.broadcast %cst_98 : f32 to vector<8x128xf32>
    %208 = arith.mulf %207, %206 : vector<8x128xf32>
    %209 = math.tanh %208 : vector<8x128xf32>
    %cst_99 = arith.constant 5.000000e-01 : f32
    %210 = vector.broadcast %cst_99 : f32 to vector<8x128xf32>
    %211 = arith.mulf %210, %209 : vector<8x128xf32>
    %cst_100 = arith.constant 5.000000e-01 : f32
    %212 = vector.broadcast %cst_100 : f32 to vector<8x128xf32>
    %213 = arith.addf %211, %212 : vector<8x128xf32>
    %c0_101 = arith.constant 0 : index
    %c0_102 = arith.constant 0 : index
    %214 = vector.load %arg9[%c0_101, %c0_102] : memref<8x128xf32, #tpu.memory_space<vmem>>, vector<8x128xf32>
    %215 = arith.mulf %203, %214 : vector<8x128xf32>
    %216 = arith.mulf %195, %205 : vector<8x128xf32>
    %217 = arith.addf %215, %216 : vector<8x128xf32>
    %c0_103 = arith.constant 0 : index
    %c0_104 = arith.constant 0 : index
    %218 = vector.load %arg9[%c0_103, %c0_104] : memref<8x128xf32, #tpu.memory_space<vmem>>, vector<8x128xf32>
    tpu.vector_store %arg9[%c0_103, %c0_104], %217 {strides = array<i32>} : memref<8x128xf32, #tpu.memory_space<vmem>>, vector<8x128xf32>,
    %219 = math.tanh %217 : vector<8x128xf32>
    %220 = arith.mulf %213, %219 : vector<8x128xf32>
    %221 = arith.index_cast %176 : i32 to index
    %c0_105 = arith.constant 0 : index
    %222 = vector.load %arg8[%221, %c0_105] : memref<128x128xf32, #tpu.memory_space<vmem>>, vector<8x128xf32>
    tpu.vector_store %arg8[%221, %c0_105], %220 {strides = array<i32>} : memref<128x128xf32, #tpu.memory_space<vmem>>, vector<8x128xf32>,
    %c5_i32 = arith.constant 5 : i32
    %c8_i32_106 = arith.constant 8 : i32
    %223 = arith.muli %c5_i32, %c8_i32_106 : i32
    %224 = tpu.assume_multiple %223, 8 : i32
    %c1_i32_107 = arith.constant 1 : i32
    %225 = arith.subi %c5_i32, %c1_i32_107 : i32
    %c8_i32_108 = arith.constant 8 : i32
    %226 = arith.muli %225, %c8_i32_108 : i32
    %227 = tpu.assume_multiple %226, 8 : i32
    %228 = arith.index_cast %227 : i32 to index
    %c0_109 = arith.constant 0 : index
    %229 = vector.load %arg8[%228, %c0_109] : memref<128x128xf32, #tpu.memory_space<vmem>>, vector<8x128xf32>
    %230 = arith.index_cast %224 : i32 to index
    %c0_110 = arith.constant 0 : index
    %231 = vector.load %arg7[%230, %c0_110] : memref<128x512xf32, #tpu.memory_space<vmem>>, vector<8x512xf32>
    %232 = arith.truncf %229 : vector<8x128xf32> to vector<8x128xbf16>
    %c0_111 = arith.constant 0 : index
    %c0_112 = arith.constant 0 : index
    %233 = vector.load %arg2[%c0_111, %c0_112] : memref<128x512xbf16, #tpu.memory_space<vmem>>, vector<128x512xbf16>
    %cst_113 = arith.constant dense<0.000000e+00> : vector<8x512xf32>
    %234 = tpu.matmul %232, %233, %cst_113 {dimension_numbers = #tpu.dot_dimension_numbers<[1], [0], [0], [1], [0, 0, 1, 1], [], []>} : vector<8x128xbf16>, vector<128x512xbf16>, vector<8x512xf32> -> vector<8x512xf32>
    %235 = arith.addf %231, %234 : vector<8x512xf32>
    %236 = vector.extract_strided_slice %235 {offsets = [0, 0], sizes = [8, 128], strides = [1, 1]} : vector<8x512xf32> to vector<8x128xf32>
    %cst_114 = arith.constant 5.000000e-01 : f32
    %237 = vector.broadcast %cst_114 : f32 to vector<8x128xf32>
    %238 = arith.mulf %237, %236 : vector<8x128xf32>
    %239 = math.tanh %238 : vector<8x128xf32>
    %cst_115 = arith.constant 5.000000e-01 : f32
    %240 = vector.broadcast %cst_115 : f32 to vector<8x128xf32>
    %241 = arith.mulf %240, %239 : vector<8x128xf32>
    %cst_116 = arith.constant 5.000000e-01 : f32
    %242 = vector.broadcast %cst_116 : f32 to vector<8x128xf32>
    %243 = arith.addf %241, %242 : vector<8x128xf32>
    %244 = vector.extract_strided_slice %235 {offsets = [0, 128], sizes = [8, 128], strides = [1, 1]} : vector<8x512xf32> to vector<8x128xf32>
    %cst_117 = arith.constant 5.000000e-01 : f32
    %245 = vector.broadcast %cst_117 : f32 to vector<8x128xf32>
    %246 = arith.mulf %245, %244 : vector<8x128xf32>
    %247 = math.tanh %246 : vector<8x128xf32>
    %cst_118 = arith.constant 5.000000e-01 : f32
    %248 = vector.broadcast %cst_118 : f32 to vector<8x128xf32>
    %249 = arith.mulf %248, %247 : vector<8x128xf32>
    %cst_119 = arith.constant 5.000000e-01 : f32
    %250 = vector.broadcast %cst_119 : f32 to vector<8x128xf32>
    %251 = arith.addf %249, %250 : vector<8x128xf32>
    %252 = vector.extract_strided_slice %235 {offsets = [0, 256], sizes = [8, 128], strides = [1, 1]} : vector<8x512xf32> to vector<8x128xf32>
    %253 = math.tanh %252 : vector<8x128xf32>
    %254 = vector.extract_strided_slice %235 {offsets = [0, 384], sizes = [8, 128], strides = [1, 1]} : vector<8x512xf32> to vector<8x128xf32>
    %cst_120 = arith.constant 5.000000e-01 : f32
    %255 = vector.broadcast %cst_120 : f32 to vector<8x128xf32>
    %256 = arith.mulf %255, %254 : vector<8x128xf32>
    %257 = math.tanh %256 : vector<8x128xf32>
    %cst_121 = arith.constant 5.000000e-01 : f32
    %258 = vector.broadcast %cst_121 : f32 to vector<8x128xf32>
    %259 = arith.mulf %258, %257 : vector<8x128xf32>
    %cst_122 = arith.constant 5.000000e-01 : f32
    %260 = vector.broadcast %cst_122 : f32 to vector<8x128xf32>
    %261 = arith.addf %259, %260 : vector<8x128xf32>
    %c0_123 = arith.constant 0 : index
    %c0_124 = arith.constant 0 : index
    %262 = vector.load %arg9[%c0_123, %c0_124] : memref<8x128xf32, #tpu.memory_space<vmem>>, vector<8x128xf32>
    %263 = arith.mulf %251, %262 : vector<8x128xf32>
    %264 = arith.mulf %243, %253 : vector<8x128xf32>
    %265 = arith.addf %263, %264 : vector<8x128xf32>
    %c0_125 = arith.constant 0 : index
    %c0_126 = arith.constant 0 : index
    %266 = vector.load %arg9[%c0_125, %c0_126] : memref<8x128xf32, #tpu.memory_space<vmem>>, vector<8x128xf32>
    tpu.vector_store %arg9[%c0_125, %c0_126], %265 {strides = array<i32>} : memref<8x128xf32, #tpu.memory_space<vmem>>, vector<8x128xf32>,
    %267 = math.tanh %265 : vector<8x128xf32>
    %268 = arith.mulf %261, %267 : vector<8x128xf32>
    %269 = arith.index_cast %224 : i32 to index
    %c0_127 = arith.constant 0 : index
    %270 = vector.load %arg8[%269, %c0_127] : memref<128x128xf32, #tpu.memory_space<vmem>>, vector<8x128xf32>
    tpu.vector_store %arg8[%269, %c0_127], %268 {strides = array<i32>} : memref<128x128xf32, #tpu.memory_space<vmem>>, vector<8x128xf32>,
    %c6_i32 = arith.constant 6 : i32
    %c8_i32_128 = arith.constant 8 : i32
    %271 = arith.muli %c6_i32, %c8_i32_128 : i32
    %272 = tpu.assume_multiple %271, 8 : i32
    %c1_i32_129 = arith.constant 1 : i32
    %273 = arith.subi %c6_i32, %c1_i32_129 : i32
    %c8_i32_130 = arith.constant 8 : i32
    %274 = arith.muli %273, %c8_i32_130 : i32
    %275 = tpu.assume_multiple %274, 8 : i32
    %276 = arith.index_cast %275 : i32 to index
    %c0_131 = arith.constant 0 : index
    %277 = vector.load %arg8[%276, %c0_131] : memref<128x128xf32, #tpu.memory_space<vmem>>, vector<8x128xf32>
    %278 = arith.index_cast %272 : i32 to index
    %c0_132 = arith.constant 0 : index
    %279 = vector.load %arg7[%278, %c0_132] : memref<128x512xf32, #tpu.memory_space<vmem>>, vector<8x512xf32>
    %280 = arith.truncf %277 : vector<8x128xf32> to vector<8x128xbf16>
    %c0_133 = arith.constant 0 : index
    %c0_134 = arith.constant 0 : index
    %281 = vector.load %arg2[%c0_133, %c0_134] : memref<128x512xbf16, #tpu.memory_space<vmem>>, vector<128x512xbf16>
    %cst_135 = arith.constant dense<0.000000e+00> : vector<8x512xf32>
    %282 = tpu.matmul %280, %281, %cst_135 {dimension_numbers = #tpu.dot_dimension_numbers<[1], [0], [0], [1], [0, 0, 1, 1], [], []>} : vector<8x128xbf16>, vector<128x512xbf16>, vector<8x512xf32> -> vector<8x512xf32>
    %283 = arith.addf %279, %282 : vector<8x512xf32>
    %284 = vector.extract_strided_slice %283 {offsets = [0, 0], sizes = [8, 128], strides = [1, 1]} : vector<8x512xf32> to vector<8x128xf32>
    %cst_136 = arith.constant 5.000000e-01 : f32
    %285 = vector.broadcast %cst_136 : f32 to vector<8x128xf32>
    %286 = arith.mulf %285, %284 : vector<8x128xf32>
    %287 = math.tanh %286 : vector<8x128xf32>
    %cst_137 = arith.constant 5.000000e-01 : f32
    %288 = vector.broadcast %cst_137 : f32 to vector<8x128xf32>
    %289 = arith.mulf %288, %287 : vector<8x128xf32>
    %cst_138 = arith.constant 5.000000e-01 : f32
    %290 = vector.broadcast %cst_138 : f32 to vector<8x128xf32>
    %291 = arith.addf %289, %290 : vector<8x128xf32>
    %292 = vector.extract_strided_slice %283 {offsets = [0, 128], sizes = [8, 128], strides = [1, 1]} : vector<8x512xf32> to vector<8x128xf32>
    %cst_139 = arith.constant 5.000000e-01 : f32
    %293 = vector.broadcast %cst_139 : f32 to vector<8x128xf32>
    %294 = arith.mulf %293, %292 : vector<8x128xf32>
    %295 = math.tanh %294 : vector<8x128xf32>
    %cst_140 = arith.constant 5.000000e-01 : f32
    %296 = vector.broadcast %cst_140 : f32 to vector<8x128xf32>
    %297 = arith.mulf %296, %295 : vector<8x128xf32>
    %cst_141 = arith.constant 5.000000e-01 : f32
    %298 = vector.broadcast %cst_141 : f32 to vector<8x128xf32>
    %299 = arith.addf %297, %298 : vector<8x128xf32>
    %300 = vector.extract_strided_slice %283 {offsets = [0, 256], sizes = [8, 128], strides = [1, 1]} : vector<8x512xf32> to vector<8x128xf32>
    %301 = math.tanh %300 : vector<8x128xf32>
    %302 = vector.extract_strided_slice %283 {offsets = [0, 384], sizes = [8, 128], strides = [1, 1]} : vector<8x512xf32> to vector<8x128xf32>
    %cst_142 = arith.constant 5.000000e-01 : f32
    %303 = vector.broadcast %cst_142 : f32 to vector<8x128xf32>
    %304 = arith.mulf %303, %302 : vector<8x128xf32>
    %305 = math.tanh %304 : vector<8x128xf32>
    %cst_143 = arith.constant 5.000000e-01 : f32
    %306 = vector.broadcast %cst_143 : f32 to vector<8x128xf32>
    %307 = arith.mulf %306, %305 : vector<8x128xf32>
    %cst_144 = arith.constant 5.000000e-01 : f32
    %308 = vector.broadcast %cst_144 : f32 to vector<8x128xf32>
    %309 = arith.addf %307, %308 : vector<8x128xf32>
    %c0_145 = arith.constant 0 : index
    %c0_146 = arith.constant 0 : index
    %310 = vector.load %arg9[%c0_145, %c0_146] : memref<8x128xf32, #tpu.memory_space<vmem>>, vector<8x128xf32>
    %311 = arith.mulf %299, %310 : vector<8x128xf32>
    %312 = arith.mulf %291, %301 : vector<8x128xf32>
    %313 = arith.addf %311, %312 : vector<8x128xf32>
    %c0_147 = arith.constant 0 : index
    %c0_148 = arith.constant 0 : index
    %314 = vector.load %arg9[%c0_147, %c0_148] : memref<8x128xf32, #tpu.memory_space<vmem>>, vector<8x128xf32>
    tpu.vector_store %arg9[%c0_147, %c0_148], %313 {strides = array<i32>} : memref<8x128xf32, #tpu.memory_space<vmem>>, vector<8x128xf32>,
    %315 = math.tanh %313 : vector<8x128xf32>
    %316 = arith.mulf %309, %315 : vector<8x128xf32>
    %317 = arith.index_cast %272 : i32 to index
    %c0_149 = arith.constant 0 : index
    %318 = vector.load %arg8[%317, %c0_149] : memref<128x128xf32, #tpu.memory_space<vmem>>, vector<8x128xf32>
    tpu.vector_store %arg8[%317, %c0_149], %316 {strides = array<i32>} : memref<128x128xf32, #tpu.memory_space<vmem>>, vector<8x128xf32>,
    %c7_i32 = arith.constant 7 : i32
    %c8_i32_150 = arith.constant 8 : i32
    %319 = arith.muli %c7_i32, %c8_i32_150 : i32
    %320 = tpu.assume_multiple %319, 8 : i32
    %c1_i32_151 = arith.constant 1 : i32
    %321 = arith.subi %c7_i32, %c1_i32_151 : i32
    %c8_i32_152 = arith.constant 8 : i32
    %322 = arith.muli %321, %c8_i32_152 : i32
    %323 = tpu.assume_multiple %322, 8 : i32
    %324 = arith.index_cast %323 : i32 to index
    %c0_153 = arith.constant 0 : index
    %325 = vector.load %arg8[%324, %c0_153] : memref<128x128xf32, #tpu.memory_space<vmem>>, vector<8x128xf32>
    %326 = arith.index_cast %320 : i32 to index
    %c0_154 = arith.constant 0 : index
    %327 = vector.load %arg7[%326, %c0_154] : memref<128x512xf32, #tpu.memory_space<vmem>>, vector<8x512xf32>
    %328 = arith.truncf %325 : vector<8x128xf32> to vector<8x128xbf16>
    %c0_155 = arith.constant 0 : index
    %c0_156 = arith.constant 0 : index
    %329 = vector.load %arg2[%c0_155, %c0_156] : memref<128x512xbf16, #tpu.memory_space<vmem>>, vector<128x512xbf16>
    %cst_157 = arith.constant dense<0.000000e+00> : vector<8x512xf32>
    %330 = tpu.matmul %328, %329, %cst_157 {dimension_numbers = #tpu.dot_dimension_numbers<[1], [0], [0], [1], [0, 0, 1, 1], [], []>} : vector<8x128xbf16>, vector<128x512xbf16>, vector<8x512xf32> -> vector<8x512xf32>
    %331 = arith.addf %327, %330 : vector<8x512xf32>
    %332 = vector.extract_strided_slice %331 {offsets = [0, 0], sizes = [8, 128], strides = [1, 1]} : vector<8x512xf32> to vector<8x128xf32>
    %cst_158 = arith.constant 5.000000e-01 : f32
    %333 = vector.broadcast %cst_158 : f32 to vector<8x128xf32>
    %334 = arith.mulf %333, %332 : vector<8x128xf32>
    %335 = math.tanh %334 : vector<8x128xf32>
    %cst_159 = arith.constant 5.000000e-01 : f32
    %336 = vector.broadcast %cst_159 : f32 to vector<8x128xf32>
    %337 = arith.mulf %336, %335 : vector<8x128xf32>
    %cst_160 = arith.constant 5.000000e-01 : f32
    %338 = vector.broadcast %cst_160 : f32 to vector<8x128xf32>
    %339 = arith.addf %337, %338 : vector<8x128xf32>
    %340 = vector.extract_strided_slice %331 {offsets = [0, 128], sizes = [8, 128], strides = [1, 1]} : vector<8x512xf32> to vector<8x128xf32>
    %cst_161 = arith.constant 5.000000e-01 : f32
    %341 = vector.broadcast %cst_161 : f32 to vector<8x128xf32>
    %342 = arith.mulf %341, %340 : vector<8x128xf32>
    %343 = math.tanh %342 : vector<8x128xf32>
    %cst_162 = arith.constant 5.000000e-01 : f32
    %344 = vector.broadcast %cst_162 : f32 to vector<8x128xf32>
    %345 = arith.mulf %344, %343 : vector<8x128xf32>
    %cst_163 = arith.constant 5.000000e-01 : f32
    %346 = vector.broadcast %cst_163 : f32 to vector<8x128xf32>
    %347 = arith.addf %345, %346 : vector<8x128xf32>
    %348 = vector.extract_strided_slice %331 {offsets = [0, 256], sizes = [8, 128], strides = [1, 1]} : vector<8x512xf32> to vector<8x128xf32>
    %349 = math.tanh %348 : vector<8x128xf32>
    %350 = vector.extract_strided_slice %331 {offsets = [0, 384], sizes = [8, 128], strides = [1, 1]} : vector<8x512xf32> to vector<8x128xf32>
    %cst_164 = arith.constant 5.000000e-01 : f32
    %351 = vector.broadcast %cst_164 : f32 to vector<8x128xf32>
    %352 = arith.mulf %351, %350 : vector<8x128xf32>
    %353 = math.tanh %352 : vector<8x128xf32>
    %cst_165 = arith.constant 5.000000e-01 : f32
    %354 = vector.broadcast %cst_165 : f32 to vector<8x128xf32>
    %355 = arith.mulf %354, %353 : vector<8x128xf32>
    %cst_166 = arith.constant 5.000000e-01 : f32
    %356 = vector.broadcast %cst_166 : f32 to vector<8x128xf32>
    %357 = arith.addf %355, %356 : vector<8x128xf32>
    %c0_167 = arith.constant 0 : index
    %c0_168 = arith.constant 0 : index
    %358 = vector.load %arg9[%c0_167, %c0_168] : memref<8x128xf32, #tpu.memory_space<vmem>>, vector<8x128xf32>
    %359 = arith.mulf %347, %358 : vector<8x128xf32>
    %360 = arith.mulf %339, %349 : vector<8x128xf32>
    %361 = arith.addf %359, %360 : vector<8x128xf32>
    %c0_169 = arith.constant 0 : index
    %c0_170 = arith.constant 0 : index
    %362 = vector.load %arg9[%c0_169, %c0_170] : memref<8x128xf32, #tpu.memory_space<vmem>>, vector<8x128xf32>
    tpu.vector_store %arg9[%c0_169, %c0_170], %361 {strides = array<i32>} : memref<8x128xf32, #tpu.memory_space<vmem>>, vector<8x128xf32>,
    %363 = math.tanh %361 : vector<8x128xf32>
    %364 = arith.mulf %357, %363 : vector<8x128xf32>
    %365 = arith.index_cast %320 : i32 to index
    %c0_171 = arith.constant 0 : index
    %366 = vector.load %arg8[%365, %c0_171] : memref<128x128xf32, #tpu.memory_space<vmem>>, vector<8x128xf32>
    tpu.vector_store %arg8[%365, %c0_171], %364 {strides = array<i32>} : memref<128x128xf32, #tpu.memory_space<vmem>>, vector<8x128xf32>,
    %c8_i32_172 = arith.constant 8 : i32
    %c8_i32_173 = arith.constant 8 : i32
    %367 = arith.muli %c8_i32_172, %c8_i32_173 : i32
    %368 = tpu.assume_multiple %367, 8 : i32
    %c1_i32_174 = arith.constant 1 : i32
    %369 = arith.subi %c8_i32_172, %c1_i32_174 : i32
    %c8_i32_175 = arith.constant 8 : i32
    %370 = arith.muli %369, %c8_i32_175 : i32
    %371 = tpu.assume_multiple %370, 8 : i32
    %372 = arith.index_cast %371 : i32 to index
    %c0_176 = arith.constant 0 : index
    %373 = vector.load %arg8[%372, %c0_176] : memref<128x128xf32, #tpu.memory_space<vmem>>, vector<8x128xf32>
    %374 = arith.index_cast %368 : i32 to index
    %c0_177 = arith.constant 0 : index
    %375 = vector.load %arg7[%374, %c0_177] : memref<128x512xf32, #tpu.memory_space<vmem>>, vector<8x512xf32>
    %376 = arith.truncf %373 : vector<8x128xf32> to vector<8x128xbf16>
    %c0_178 = arith.constant 0 : index
    %c0_179 = arith.constant 0 : index
    %377 = vector.load %arg2[%c0_178, %c0_179] : memref<128x512xbf16, #tpu.memory_space<vmem>>, vector<128x512xbf16>
    %cst_180 = arith.constant dense<0.000000e+00> : vector<8x512xf32>
    %378 = tpu.matmul %376, %377, %cst_180 {dimension_numbers = #tpu.dot_dimension_numbers<[1], [0], [0], [1], [0, 0, 1, 1], [], []>} : vector<8x128xbf16>, vector<128x512xbf16>, vector<8x512xf32> -> vector<8x512xf32>
    %379 = arith.addf %375, %378 : vector<8x512xf32>
    %380 = vector.extract_strided_slice %379 {offsets = [0, 0], sizes = [8, 128], strides = [1, 1]} : vector<8x512xf32> to vector<8x128xf32>
    %cst_181 = arith.constant 5.000000e-01 : f32
    %381 = vector.broadcast %cst_181 : f32 to vector<8x128xf32>
    %382 = arith.mulf %381, %380 : vector<8x128xf32>
    %383 = math.tanh %382 : vector<8x128xf32>
    %cst_182 = arith.constant 5.000000e-01 : f32
    %384 = vector.broadcast %cst_182 : f32 to vector<8x128xf32>
    %385 = arith.mulf %384, %383 : vector<8x128xf32>
    %cst_183 = arith.constant 5.000000e-01 : f32
    %386 = vector.broadcast %cst_183 : f32 to vector<8x128xf32>
    %387 = arith.addf %385, %386 : vector<8x128xf32>
    %388 = vector.extract_strided_slice %379 {offsets = [0, 128], sizes = [8, 128], strides = [1, 1]} : vector<8x512xf32> to vector<8x128xf32>
    %cst_184 = arith.constant 5.000000e-01 : f32
    %389 = vector.broadcast %cst_184 : f32 to vector<8x128xf32>
    %390 = arith.mulf %389, %388 : vector<8x128xf32>
    %391 = math.tanh %390 : vector<8x128xf32>
    %cst_185 = arith.constant 5.000000e-01 : f32
    %392 = vector.broadcast %cst_185 : f32 to vector<8x128xf32>
    %393 = arith.mulf %392, %391 : vector<8x128xf32>
    %cst_186 = arith.constant 5.000000e-01 : f32
    %394 = vector.broadcast %cst_186 : f32 to vector<8x128xf32>
    %395 = arith.addf %393, %394 : vector<8x128xf32>
    %396 = vector.extract_strided_slice %379 {offsets = [0, 256], sizes = [8, 128], strides = [1, 1]} : vector<8x512xf32> to vector<8x128xf32>
    %397 = math.tanh %396 : vector<8x128xf32>
    %398 = vector.extract_strided_slice %379 {offsets = [0, 384], sizes = [8, 128], strides = [1, 1]} : vector<8x512xf32> to vector<8x128xf32>
    %cst_187 = arith.constant 5.000000e-01 : f32
    %399 = vector.broadcast %cst_187 : f32 to vector<8x128xf32>
    %400 = arith.mulf %399, %398 : vector<8x128xf32>
    %401 = math.tanh %400 : vector<8x128xf32>
    %cst_188 = arith.constant 5.000000e-01 : f32
    %402 = vector.broadcast %cst_188 : f32 to vector<8x128xf32>
    %403 = arith.mulf %402, %401 : vector<8x128xf32>
    %cst_189 = arith.constant 5.000000e-01 : f32
    %404 = vector.broadcast %cst_189 : f32 to vector<8x128xf32>
    %405 = arith.addf %403, %404 : vector<8x128xf32>
    %c0_190 = arith.constant 0 : index
    %c0_191 = arith.constant 0 : index
    %406 = vector.load %arg9[%c0_190, %c0_191] : memref<8x128xf32, #tpu.memory_space<vmem>>, vector<8x128xf32>
    %407 = arith.mulf %395, %406 : vector<8x128xf32>
    %408 = arith.mulf %387, %397 : vector<8x128xf32>
    %409 = arith.addf %407, %408 : vector<8x128xf32>
    %c0_192 = arith.constant 0 : index
    %c0_193 = arith.constant 0 : index
    %410 = vector.load %arg9[%c0_192, %c0_193] : memref<8x128xf32, #tpu.memory_space<vmem>>, vector<8x128xf32>
    tpu.vector_store %arg9[%c0_192, %c0_193], %409 {strides = array<i32>} : memref<8x128xf32, #tpu.memory_space<vmem>>, vector<8x128xf32>,
    %411 = math.tanh %409 : vector<8x128xf32>
    %412 = arith.mulf %405, %411 : vector<8x128xf32>
    %413 = arith.index_cast %368 : i32 to index
    %c0_194 = arith.constant 0 : index
    %414 = vector.load %arg8[%413, %c0_194] : memref<128x128xf32, #tpu.memory_space<vmem>>, vector<8x128xf32>
    tpu.vector_store %arg8[%413, %c0_194], %412 {strides = array<i32>} : memref<128x128xf32, #tpu.memory_space<vmem>>, vector<8x128xf32>,
    %c9_i32 = arith.constant 9 : i32
    %c8_i32_195 = arith.constant 8 : i32
    %415 = arith.muli %c9_i32, %c8_i32_195 : i32
    %416 = tpu.assume_multiple %415, 8 : i32
    %c1_i32_196 = arith.constant 1 : i32
    %417 = arith.subi %c9_i32, %c1_i32_196 : i32
    %c8_i32_197 = arith.constant 8 : i32
    %418 = arith.muli %417, %c8_i32_197 : i32
    %419 = tpu.assume_multiple %418, 8 : i32
    %420 = arith.index_cast %419 : i32 to index
    %c0_198 = arith.constant 0 : index
    %421 = vector.load %arg8[%420, %c0_198] : memref<128x128xf32, #tpu.memory_space<vmem>>, vector<8x128xf32>
    %422 = arith.index_cast %416 : i32 to index
    %c0_199 = arith.constant 0 : index
    %423 = vector.load %arg7[%422, %c0_199] : memref<128x512xf32, #tpu.memory_space<vmem>>, vector<8x512xf32>
    %424 = arith.truncf %421 : vector<8x128xf32> to vector<8x128xbf16>
    %c0_200 = arith.constant 0 : index
    %c0_201 = arith.constant 0 : index
    %425 = vector.load %arg2[%c0_200, %c0_201] : memref<128x512xbf16, #tpu.memory_space<vmem>>, vector<128x512xbf16>
    %cst_202 = arith.constant dense<0.000000e+00> : vector<8x512xf32>
    %426 = tpu.matmul %424, %425, %cst_202 {dimension_numbers = #tpu.dot_dimension_numbers<[1], [0], [0], [1], [0, 0, 1, 1], [], []>} : vector<8x128xbf16>, vector<128x512xbf16>, vector<8x512xf32> -> vector<8x512xf32>
    %427 = arith.addf %423, %426 : vector<8x512xf32>
    %428 = vector.extract_strided_slice %427 {offsets = [0, 0], sizes = [8, 128], strides = [1, 1]} : vector<8x512xf32> to vector<8x128xf32>
    %cst_203 = arith.constant 5.000000e-01 : f32
    %429 = vector.broadcast %cst_203 : f32 to vector<8x128xf32>
    %430 = arith.mulf %429, %428 : vector<8x128xf32>
    %431 = math.tanh %430 : vector<8x128xf32>
    %cst_204 = arith.constant 5.000000e-01 : f32
    %432 = vector.broadcast %cst_204 : f32 to vector<8x128xf32>
    %433 = arith.mulf %432, %431 : vector<8x128xf32>
    %cst_205 = arith.constant 5.000000e-01 : f32
    %434 = vector.broadcast %cst_205 : f32 to vector<8x128xf32>
    %435 = arith.addf %433, %434 : vector<8x128xf32>
    %436 = vector.extract_strided_slice %427 {offsets = [0, 128], sizes = [8, 128], strides = [1, 1]} : vector<8x512xf32> to vector<8x128xf32>
    %cst_206 = arith.constant 5.000000e-01 : f32
    %437 = vector.broadcast %cst_206 : f32 to vector<8x128xf32>
    %438 = arith.mulf %437, %436 : vector<8x128xf32>
    %439 = math.tanh %438 : vector<8x128xf32>
    %cst_207 = arith.constant 5.000000e-01 : f32
    %440 = vector.broadcast %cst_207 : f32 to vector<8x128xf32>
    %441 = arith.mulf %440, %439 : vector<8x128xf32>
    %cst_208 = arith.constant 5.000000e-01 : f32
    %442 = vector.broadcast %cst_208 : f32 to vector<8x128xf32>
    %443 = arith.addf %441, %442 : vector<8x128xf32>
    %444 = vector.extract_strided_slice %427 {offsets = [0, 256], sizes = [8, 128], strides = [1, 1]} : vector<8x512xf32> to vector<8x128xf32>
    %445 = math.tanh %444 : vector<8x128xf32>
    %446 = vector.extract_strided_slice %427 {offsets = [0, 384], sizes = [8, 128], strides = [1, 1]} : vector<8x512xf32> to vector<8x128xf32>
    %cst_209 = arith.constant 5.000000e-01 : f32
    %447 = vector.broadcast %cst_209 : f32 to vector<8x128xf32>
    %448 = arith.mulf %447, %446 : vector<8x128xf32>
    %449 = math.tanh %448 : vector<8x128xf32>
    %cst_210 = arith.constant 5.000000e-01 : f32
    %450 = vector.broadcast %cst_210 : f32 to vector<8x128xf32>
    %451 = arith.mulf %450, %449 : vector<8x128xf32>
    %cst_211 = arith.constant 5.000000e-01 : f32
    %452 = vector.broadcast %cst_211 : f32 to vector<8x128xf32>
    %453 = arith.addf %451, %452 : vector<8x128xf32>
    %c0_212 = arith.constant 0 : index
    %c0_213 = arith.constant 0 : index
    %454 = vector.load %arg9[%c0_212, %c0_213] : memref<8x128xf32, #tpu.memory_space<vmem>>, vector<8x128xf32>
    %455 = arith.mulf %443, %454 : vector<8x128xf32>
    %456 = arith.mulf %435, %445 : vector<8x128xf32>
    %457 = arith.addf %455, %456 : vector<8x128xf32>
    %c0_214 = arith.constant 0 : index
    %c0_215 = arith.constant 0 : index
    %458 = vector.load %arg9[%c0_214, %c0_215] : memref<8x128xf32, #tpu.memory_space<vmem>>, vector<8x128xf32>
    tpu.vector_store %arg9[%c0_214, %c0_215], %457 {strides = array<i32>} : memref<8x128xf32, #tpu.memory_space<vmem>>, vector<8x128xf32>,
    %459 = math.tanh %457 : vector<8x128xf32>
    %460 = arith.mulf %453, %459 : vector<8x128xf32>
    %461 = arith.index_cast %416 : i32 to index
    %c0_216 = arith.constant 0 : index
    %462 = vector.load %arg8[%461, %c0_216] : memref<128x128xf32, #tpu.memory_space<vmem>>, vector<8x128xf32>
    tpu.vector_store %arg8[%461, %c0_216], %460 {strides = array<i32>} : memref<128x128xf32, #tpu.memory_space<vmem>>, vector<8x128xf32>,
    %c10_i32 = arith.constant 10 : i32
    %c8_i32_217 = arith.constant 8 : i32
    %463 = arith.muli %c10_i32, %c8_i32_217 : i32
    %464 = tpu.assume_multiple %463, 8 : i32
    %c1_i32_218 = arith.constant 1 : i32
    %465 = arith.subi %c10_i32, %c1_i32_218 : i32
    %c8_i32_219 = arith.constant 8 : i32
    %466 = arith.muli %465, %c8_i32_219 : i32
    %467 = tpu.assume_multiple %466, 8 : i32
    %468 = arith.index_cast %467 : i32 to index
    %c0_220 = arith.constant 0 : index
    %469 = vector.load %arg8[%468, %c0_220] : memref<128x128xf32, #tpu.memory_space<vmem>>, vector<8x128xf32>
    %470 = arith.index_cast %464 : i32 to index
    %c0_221 = arith.constant 0 : index
    %471 = vector.load %arg7[%470, %c0_221] : memref<128x512xf32, #tpu.memory_space<vmem>>, vector<8x512xf32>
    %472 = arith.truncf %469 : vector<8x128xf32> to vector<8x128xbf16>
    %c0_222 = arith.constant 0 : index
    %c0_223 = arith.constant 0 : index
    %473 = vector.load %arg2[%c0_222, %c0_223] : memref<128x512xbf16, #tpu.memory_space<vmem>>, vector<128x512xbf16>
    %cst_224 = arith.constant dense<0.000000e+00> : vector<8x512xf32>
    %474 = tpu.matmul %472, %473, %cst_224 {dimension_numbers = #tpu.dot_dimension_numbers<[1], [0], [0], [1], [0, 0, 1, 1], [], []>} : vector<8x128xbf16>, vector<128x512xbf16>, vector<8x512xf32> -> vector<8x512xf32>
    %475 = arith.addf %471, %474 : vector<8x512xf32>
    %476 = vector.extract_strided_slice %475 {offsets = [0, 0], sizes = [8, 128], strides = [1, 1]} : vector<8x512xf32> to vector<8x128xf32>
    %cst_225 = arith.constant 5.000000e-01 : f32
    %477 = vector.broadcast %cst_225 : f32 to vector<8x128xf32>
    %478 = arith.mulf %477, %476 : vector<8x128xf32>
    %479 = math.tanh %478 : vector<8x128xf32>
    %cst_226 = arith.constant 5.000000e-01 : f32
    %480 = vector.broadcast %cst_226 : f32 to vector<8x128xf32>
    %481 = arith.mulf %480, %479 : vector<8x128xf32>
    %cst_227 = arith.constant 5.000000e-01 : f32
    %482 = vector.broadcast %cst_227 : f32 to vector<8x128xf32>
    %483 = arith.addf %481, %482 : vector<8x128xf32>
    %484 = vector.extract_strided_slice %475 {offsets = [0, 128], sizes = [8, 128], strides = [1, 1]} : vector<8x512xf32> to vector<8x128xf32>
    %cst_228 = arith.constant 5.000000e-01 : f32
    %485 = vector.broadcast %cst_228 : f32 to vector<8x128xf32>
    %486 = arith.mulf %485, %484 : vector<8x128xf32>
    %487 = math.tanh %486 : vector<8x128xf32>
    %cst_229 = arith.constant 5.000000e-01 : f32
    %488 = vector.broadcast %cst_229 : f32 to vector<8x128xf32>
    %489 = arith.mulf %488, %487 : vector<8x128xf32>
    %cst_230 = arith.constant 5.000000e-01 : f32
    %490 = vector.broadcast %cst_230 : f32 to vector<8x128xf32>
    %491 = arith.addf %489, %490 : vector<8x128xf32>
    %492 = vector.extract_strided_slice %475 {offsets = [0, 256], sizes = [8, 128], strides = [1, 1]} : vector<8x512xf32> to vector<8x128xf32>
    %493 = math.tanh %492 : vector<8x128xf32>
    %494 = vector.extract_strided_slice %475 {offsets = [0, 384], sizes = [8, 128], strides = [1, 1]} : vector<8x512xf32> to vector<8x128xf32>
    %cst_231 = arith.constant 5.000000e-01 : f32
    %495 = vector.broadcast %cst_231 : f32 to vector<8x128xf32>
    %496 = arith.mulf %495, %494 : vector<8x128xf32>
    %497 = math.tanh %496 : vector<8x128xf32>
    %cst_232 = arith.constant 5.000000e-01 : f32
    %498 = vector.broadcast %cst_232 : f32 to vector<8x128xf32>
    %499 = arith.mulf %498, %497 : vector<8x128xf32>
    %cst_233 = arith.constant 5.000000e-01 : f32
    %500 = vector.broadcast %cst_233 : f32 to vector<8x128xf32>
    %501 = arith.addf %499, %500 : vector<8x128xf32>
    %c0_234 = arith.constant 0 : index
    %c0_235 = arith.constant 0 : index
    %502 = vector.load %arg9[%c0_234, %c0_235] : memref<8x128xf32, #tpu.memory_space<vmem>>, vector<8x128xf32>
    %503 = arith.mulf %491, %502 : vector<8x128xf32>
    %504 = arith.mulf %483, %493 : vector<8x128xf32>
    %505 = arith.addf %503, %504 : vector<8x128xf32>
    %c0_236 = arith.constant 0 : index
    %c0_237 = arith.constant 0 : index
    %506 = vector.load %arg9[%c0_236, %c0_237] : memref<8x128xf32, #tpu.memory_space<vmem>>, vector<8x128xf32>
    tpu.vector_store %arg9[%c0_236, %c0_237], %505 {strides = array<i32>} : memref<8x128xf32, #tpu.memory_space<vmem>>, vector<8x128xf32>,
    %507 = math.tanh %505 : vector<8x128xf32>
    %508 = arith.mulf %501, %507 : vector<8x128xf32>
    %509 = arith.index_cast %464 : i32 to index
    %c0_238 = arith.constant 0 : index
    %510 = vector.load %arg8[%509, %c0_238] : memref<128x128xf32, #tpu.memory_space<vmem>>, vector<8x128xf32>
    tpu.vector_store %arg8[%509, %c0_238], %508 {strides = array<i32>} : memref<128x128xf32, #tpu.memory_space<vmem>>, vector<8x128xf32>,
    %c11_i32 = arith.constant 11 : i32
    %c8_i32_239 = arith.constant 8 : i32
    %511 = arith.muli %c11_i32, %c8_i32_239 : i32
    %512 = tpu.assume_multiple %511, 8 : i32
    %c1_i32_240 = arith.constant 1 : i32
    %513 = arith.subi %c11_i32, %c1_i32_240 : i32
    %c8_i32_241 = arith.constant 8 : i32
    %514 = arith.muli %513, %c8_i32_241 : i32
    %515 = tpu.assume_multiple %514, 8 : i32
    %516 = arith.index_cast %515 : i32 to index
    %c0_242 = arith.constant 0 : index
    %517 = vector.load %arg8[%516, %c0_242] : memref<128x128xf32, #tpu.memory_space<vmem>>, vector<8x128xf32>
    %518 = arith.index_cast %512 : i32 to index
    %c0_243 = arith.constant 0 : index
    %519 = vector.load %arg7[%518, %c0_243] : memref<128x512xf32, #tpu.memory_space<vmem>>, vector<8x512xf32>
    %520 = arith.truncf %517 : vector<8x128xf32> to vector<8x128xbf16>
    %c0_244 = arith.constant 0 : index
    %c0_245 = arith.constant 0 : index
    %521 = vector.load %arg2[%c0_244, %c0_245] : memref<128x512xbf16, #tpu.memory_space<vmem>>, vector<128x512xbf16>
    %cst_246 = arith.constant dense<0.000000e+00> : vector<8x512xf32>
    %522 = tpu.matmul %520, %521, %cst_246 {dimension_numbers = #tpu.dot_dimension_numbers<[1], [0], [0], [1], [0, 0, 1, 1], [], []>} : vector<8x128xbf16>, vector<128x512xbf16>, vector<8x512xf32> -> vector<8x512xf32>
    %523 = arith.addf %519, %522 : vector<8x512xf32>
    %524 = vector.extract_strided_slice %523 {offsets = [0, 0], sizes = [8, 128], strides = [1, 1]} : vector<8x512xf32> to vector<8x128xf32>
    %cst_247 = arith.constant 5.000000e-01 : f32
    %525 = vector.broadcast %cst_247 : f32 to vector<8x128xf32>
    %526 = arith.mulf %525, %524 : vector<8x128xf32>
    %527 = math.tanh %526 : vector<8x128xf32>
    %cst_248 = arith.constant 5.000000e-01 : f32
    %528 = vector.broadcast %cst_248 : f32 to vector<8x128xf32>
    %529 = arith.mulf %528, %527 : vector<8x128xf32>
    %cst_249 = arith.constant 5.000000e-01 : f32
    %530 = vector.broadcast %cst_249 : f32 to vector<8x128xf32>
    %531 = arith.addf %529, %530 : vector<8x128xf32>
    %532 = vector.extract_strided_slice %523 {offsets = [0, 128], sizes = [8, 128], strides = [1, 1]} : vector<8x512xf32> to vector<8x128xf32>
    %cst_250 = arith.constant 5.000000e-01 : f32
    %533 = vector.broadcast %cst_250 : f32 to vector<8x128xf32>
    %534 = arith.mulf %533, %532 : vector<8x128xf32>
    %535 = math.tanh %534 : vector<8x128xf32>
    %cst_251 = arith.constant 5.000000e-01 : f32
    %536 = vector.broadcast %cst_251 : f32 to vector<8x128xf32>
    %537 = arith.mulf %536, %535 : vector<8x128xf32>
    %cst_252 = arith.constant 5.000000e-01 : f32
    %538 = vector.broadcast %cst_252 : f32 to vector<8x128xf32>
    %539 = arith.addf %537, %538 : vector<8x128xf32>
    %540 = vector.extract_strided_slice %523 {offsets = [0, 256], sizes = [8, 128], strides = [1, 1]} : vector<8x512xf32> to vector<8x128xf32>
    %541 = math.tanh %540 : vector<8x128xf32>
    %542 = vector.extract_strided_slice %523 {offsets = [0, 384], sizes = [8, 128], strides = [1, 1]} : vector<8x512xf32> to vector<8x128xf32>
    %cst_253 = arith.constant 5.000000e-01 : f32
    %543 = vector.broadcast %cst_253 : f32 to vector<8x128xf32>
    %544 = arith.mulf %543, %542 : vector<8x128xf32>
    %545 = math.tanh %544 : vector<8x128xf32>
    %cst_254 = arith.constant 5.000000e-01 : f32
    %546 = vector.broadcast %cst_254 : f32 to vector<8x128xf32>
    %547 = arith.mulf %546, %545 : vector<8x128xf32>
    %cst_255 = arith.constant 5.000000e-01 : f32
    %548 = vector.broadcast %cst_255 : f32 to vector<8x128xf32>
    %549 = arith.addf %547, %548 : vector<8x128xf32>
    %c0_256 = arith.constant 0 : index
    %c0_257 = arith.constant 0 : index
    %550 = vector.load %arg9[%c0_256, %c0_257] : memref<8x128xf32, #tpu.memory_space<vmem>>, vector<8x128xf32>
    %551 = arith.mulf %539, %550 : vector<8x128xf32>
    %552 = arith.mulf %531, %541 : vector<8x128xf32>
    %553 = arith.addf %551, %552 : vector<8x128xf32>
    %c0_258 = arith.constant 0 : index
    %c0_259 = arith.constant 0 : index
    %554 = vector.load %arg9[%c0_258, %c0_259] : memref<8x128xf32, #tpu.memory_space<vmem>>, vector<8x128xf32>
    tpu.vector_store %arg9[%c0_258, %c0_259], %553 {strides = array<i32>} : memref<8x128xf32, #tpu.memory_space<vmem>>, vector<8x128xf32>,
    %555 = math.tanh %553 : vector<8x128xf32>
    %556 = arith.mulf %549, %555 : vector<8x128xf32>
    %557 = arith.index_cast %512 : i32 to index
    %c0_260 = arith.constant 0 : index
    %558 = vector.load %arg8[%557, %c0_260] : memref<128x128xf32, #tpu.memory_space<vmem>>, vector<8x128xf32>
    tpu.vector_store %arg8[%557, %c0_260], %556 {strides = array<i32>} : memref<128x128xf32, #tpu.memory_space<vmem>>, vector<8x128xf32>,
    %c12_i32 = arith.constant 12 : i32
    %c8_i32_261 = arith.constant 8 : i32
    %559 = arith.muli %c12_i32, %c8_i32_261 : i32
    %560 = tpu.assume_multiple %559, 8 : i32
    %c1_i32_262 = arith.constant 1 : i32
    %561 = arith.subi %c12_i32, %c1_i32_262 : i32
    %c8_i32_263 = arith.constant 8 : i32
    %562 = arith.muli %561, %c8_i32_263 : i32
    %563 = tpu.assume_multiple %562, 8 : i32
    %564 = arith.index_cast %563 : i32 to index
    %c0_264 = arith.constant 0 : index
    %565 = vector.load %arg8[%564, %c0_264] : memref<128x128xf32, #tpu.memory_space<vmem>>, vector<8x128xf32>
    %566 = arith.index_cast %560 : i32 to index
    %c0_265 = arith.constant 0 : index
    %567 = vector.load %arg7[%566, %c0_265] : memref<128x512xf32, #tpu.memory_space<vmem>>, vector<8x512xf32>
    %568 = arith.truncf %565 : vector<8x128xf32> to vector<8x128xbf16>
    %c0_266 = arith.constant 0 : index
    %c0_267 = arith.constant 0 : index
    %569 = vector.load %arg2[%c0_266, %c0_267] : memref<128x512xbf16, #tpu.memory_space<vmem>>, vector<128x512xbf16>
    %cst_268 = arith.constant dense<0.000000e+00> : vector<8x512xf32>
    %570 = tpu.matmul %568, %569, %cst_268 {dimension_numbers = #tpu.dot_dimension_numbers<[1], [0], [0], [1], [0, 0, 1, 1], [], []>} : vector<8x128xbf16>, vector<128x512xbf16>, vector<8x512xf32> -> vector<8x512xf32>
    %571 = arith.addf %567, %570 : vector<8x512xf32>
    %572 = vector.extract_strided_slice %571 {offsets = [0, 0], sizes = [8, 128], strides = [1, 1]} : vector<8x512xf32> to vector<8x128xf32>
    %cst_269 = arith.constant 5.000000e-01 : f32
    %573 = vector.broadcast %cst_269 : f32 to vector<8x128xf32>
    %574 = arith.mulf %573, %572 : vector<8x128xf32>
    %575 = math.tanh %574 : vector<8x128xf32>
    %cst_270 = arith.constant 5.000000e-01 : f32
    %576 = vector.broadcast %cst_270 : f32 to vector<8x128xf32>
    %577 = arith.mulf %576, %575 : vector<8x128xf32>
    %cst_271 = arith.constant 5.000000e-01 : f32
    %578 = vector.broadcast %cst_271 : f32 to vector<8x128xf32>
    %579 = arith.addf %577, %578 : vector<8x128xf32>
    %580 = vector.extract_strided_slice %571 {offsets = [0, 128], sizes = [8, 128], strides = [1, 1]} : vector<8x512xf32> to vector<8x128xf32>
    %cst_272 = arith.constant 5.000000e-01 : f32
    %581 = vector.broadcast %cst_272 : f32 to vector<8x128xf32>
    %582 = arith.mulf %581, %580 : vector<8x128xf32>
    %583 = math.tanh %582 : vector<8x128xf32>
    %cst_273 = arith.constant 5.000000e-01 : f32
    %584 = vector.broadcast %cst_273 : f32 to vector<8x128xf32>
    %585 = arith.mulf %584, %583 : vector<8x128xf32>
    %cst_274 = arith.constant 5.000000e-01 : f32
    %586 = vector.broadcast %cst_274 : f32 to vector<8x128xf32>
    %587 = arith.addf %585, %586 : vector<8x128xf32>
    %588 = vector.extract_strided_slice %571 {offsets = [0, 256], sizes = [8, 128], strides = [1, 1]} : vector<8x512xf32> to vector<8x128xf32>
    %589 = math.tanh %588 : vector<8x128xf32>
    %590 = vector.extract_strided_slice %571 {offsets = [0, 384], sizes = [8, 128], strides = [1, 1]} : vector<8x512xf32> to vector<8x128xf32>
    %cst_275 = arith.constant 5.000000e-01 : f32
    %591 = vector.broadcast %cst_275 : f32 to vector<8x128xf32>
    %592 = arith.mulf %591, %590 : vector<8x128xf32>
    %593 = math.tanh %592 : vector<8x128xf32>
    %cst_276 = arith.constant 5.000000e-01 : f32
    %594 = vector.broadcast %cst_276 : f32 to vector<8x128xf32>
    %595 = arith.mulf %594, %593 : vector<8x128xf32>
    %cst_277 = arith.constant 5.000000e-01 : f32
    %596 = vector.broadcast %cst_277 : f32 to vector<8x128xf32>
    %597 = arith.addf %595, %596 : vector<8x128xf32>
    %c0_278 = arith.constant 0 : index
    %c0_279 = arith.constant 0 : index
    %598 = vector.load %arg9[%c0_278, %c0_279] : memref<8x128xf32, #tpu.memory_space<vmem>>, vector<8x128xf32>
    %599 = arith.mulf %587, %598 : vector<8x128xf32>
    %600 = arith.mulf %579, %589 : vector<8x128xf32>
    %601 = arith.addf %599, %600 : vector<8x128xf32>
    %c0_280 = arith.constant 0 : index
    %c0_281 = arith.constant 0 : index
    %602 = vector.load %arg9[%c0_280, %c0_281] : memref<8x128xf32, #tpu.memory_space<vmem>>, vector<8x128xf32>
    tpu.vector_store %arg9[%c0_280, %c0_281], %601 {strides = array<i32>} : memref<8x128xf32, #tpu.memory_space<vmem>>, vector<8x128xf32>,
    %603 = math.tanh %601 : vector<8x128xf32>
    %604 = arith.mulf %597, %603 : vector<8x128xf32>
    %605 = arith.index_cast %560 : i32 to index
    %c0_282 = arith.constant 0 : index
    %606 = vector.load %arg8[%605, %c0_282] : memref<128x128xf32, #tpu.memory_space<vmem>>, vector<8x128xf32>
    tpu.vector_store %arg8[%605, %c0_282], %604 {strides = array<i32>} : memref<128x128xf32, #tpu.memory_space<vmem>>, vector<8x128xf32>,
    %c13_i32 = arith.constant 13 : i32
    %c8_i32_283 = arith.constant 8 : i32
    %607 = arith.muli %c13_i32, %c8_i32_283 : i32
    %608 = tpu.assume_multiple %607, 8 : i32
    %c1_i32_284 = arith.constant 1 : i32
    %609 = arith.subi %c13_i32, %c1_i32_284 : i32
    %c8_i32_285 = arith.constant 8 : i32
    %610 = arith.muli %609, %c8_i32_285 : i32
    %611 = tpu.assume_multiple %610, 8 : i32
    %612 = arith.index_cast %611 : i32 to index
    %c0_286 = arith.constant 0 : index
    %613 = vector.load %arg8[%612, %c0_286] : memref<128x128xf32, #tpu.memory_space<vmem>>, vector<8x128xf32>
    %614 = arith.index_cast %608 : i32 to index
    %c0_287 = arith.constant 0 : index
    %615 = vector.load %arg7[%614, %c0_287] : memref<128x512xf32, #tpu.memory_space<vmem>>, vector<8x512xf32>
    %616 = arith.truncf %613 : vector<8x128xf32> to vector<8x128xbf16>
    %c0_288 = arith.constant 0 : index
    %c0_289 = arith.constant 0 : index
    %617 = vector.load %arg2[%c0_288, %c0_289] : memref<128x512xbf16, #tpu.memory_space<vmem>>, vector<128x512xbf16>
    %cst_290 = arith.constant dense<0.000000e+00> : vector<8x512xf32>
    %618 = tpu.matmul %616, %617, %cst_290 {dimension_numbers = #tpu.dot_dimension_numbers<[1], [0], [0], [1], [0, 0, 1, 1], [], []>} : vector<8x128xbf16>, vector<128x512xbf16>, vector<8x512xf32> -> vector<8x512xf32>
    %619 = arith.addf %615, %618 : vector<8x512xf32>
    %620 = vector.extract_strided_slice %619 {offsets = [0, 0], sizes = [8, 128], strides = [1, 1]} : vector<8x512xf32> to vector<8x128xf32>
    %cst_291 = arith.constant 5.000000e-01 : f32
    %621 = vector.broadcast %cst_291 : f32 to vector<8x128xf32>
    %622 = arith.mulf %621, %620 : vector<8x128xf32>
    %623 = math.tanh %622 : vector<8x128xf32>
    %cst_292 = arith.constant 5.000000e-01 : f32
    %624 = vector.broadcast %cst_292 : f32 to vector<8x128xf32>
    %625 = arith.mulf %624, %623 : vector<8x128xf32>
    %cst_293 = arith.constant 5.000000e-01 : f32
    %626 = vector.broadcast %cst_293 : f32 to vector<8x128xf32>
    %627 = arith.addf %625, %626 : vector<8x128xf32>
    %628 = vector.extract_strided_slice %619 {offsets = [0, 128], sizes = [8, 128], strides = [1, 1]} : vector<8x512xf32> to vector<8x128xf32>
    %cst_294 = arith.constant 5.000000e-01 : f32
    %629 = vector.broadcast %cst_294 : f32 to vector<8x128xf32>
    %630 = arith.mulf %629, %628 : vector<8x128xf32>
    %631 = math.tanh %630 : vector<8x128xf32>
    %cst_295 = arith.constant 5.000000e-01 : f32
    %632 = vector.broadcast %cst_295 : f32 to vector<8x128xf32>
    %633 = arith.mulf %632, %631 : vector<8x128xf32>
    %cst_296 = arith.constant 5.000000e-01 : f32
    %634 = vector.broadcast %cst_296 : f32 to vector<8x128xf32>
    %635 = arith.addf %633, %634 : vector<8x128xf32>
    %636 = vector.extract_strided_slice %619 {offsets = [0, 256], sizes = [8, 128], strides = [1, 1]} : vector<8x512xf32> to vector<8x128xf32>
    %637 = math.tanh %636 : vector<8x128xf32>
    %638 = vector.extract_strided_slice %619 {offsets = [0, 384], sizes = [8, 128], strides = [1, 1]} : vector<8x512xf32> to vector<8x128xf32>
    %cst_297 = arith.constant 5.000000e-01 : f32
    %639 = vector.broadcast %cst_297 : f32 to vector<8x128xf32>
    %640 = arith.mulf %639, %638 : vector<8x128xf32>
    %641 = math.tanh %640 : vector<8x128xf32>
    %cst_298 = arith.constant 5.000000e-01 : f32
    %642 = vector.broadcast %cst_298 : f32 to vector<8x128xf32>
    %643 = arith.mulf %642, %641 : vector<8x128xf32>
    %cst_299 = arith.constant 5.000000e-01 : f32
    %644 = vector.broadcast %cst_299 : f32 to vector<8x128xf32>
    %645 = arith.addf %643, %644 : vector<8x128xf32>
    %c0_300 = arith.constant 0 : index
    %c0_301 = arith.constant 0 : index
    %646 = vector.load %arg9[%c0_300, %c0_301] : memref<8x128xf32, #tpu.memory_space<vmem>>, vector<8x128xf32>
    %647 = arith.mulf %635, %646 : vector<8x128xf32>
    %648 = arith.mulf %627, %637 : vector<8x128xf32>
    %649 = arith.addf %647, %648 : vector<8x128xf32>
    %c0_302 = arith.constant 0 : index
    %c0_303 = arith.constant 0 : index
    %650 = vector.load %arg9[%c0_302, %c0_303] : memref<8x128xf32, #tpu.memory_space<vmem>>, vector<8x128xf32>
    tpu.vector_store %arg9[%c0_302, %c0_303], %649 {strides = array<i32>} : memref<8x128xf32, #tpu.memory_space<vmem>>, vector<8x128xf32>,
    %651 = math.tanh %649 : vector<8x128xf32>
    %652 = arith.mulf %645, %651 : vector<8x128xf32>
    %653 = arith.index_cast %608 : i32 to index
    %c0_304 = arith.constant 0 : index
    %654 = vector.load %arg8[%653, %c0_304] : memref<128x128xf32, #tpu.memory_space<vmem>>, vector<8x128xf32>
    tpu.vector_store %arg8[%653, %c0_304], %652 {strides = array<i32>} : memref<128x128xf32, #tpu.memory_space<vmem>>, vector<8x128xf32>,
    %c14_i32 = arith.constant 14 : i32
    %c8_i32_305 = arith.constant 8 : i32
    %655 = arith.muli %c14_i32, %c8_i32_305 : i32
    %656 = tpu.assume_multiple %655, 8 : i32
    %c1_i32_306 = arith.constant 1 : i32
    %657 = arith.subi %c14_i32, %c1_i32_306 : i32
    %c8_i32_307 = arith.constant 8 : i32
    %658 = arith.muli %657, %c8_i32_307 : i32
    %659 = tpu.assume_multiple %658, 8 : i32
    %660 = arith.index_cast %659 : i32 to index
    %c0_308 = arith.constant 0 : index
    %661 = vector.load %arg8[%660, %c0_308] : memref<128x128xf32, #tpu.memory_space<vmem>>, vector<8x128xf32>
    %662 = arith.index_cast %656 : i32 to index
    %c0_309 = arith.constant 0 : index
    %663 = vector.load %arg7[%662, %c0_309] : memref<128x512xf32, #tpu.memory_space<vmem>>, vector<8x512xf32>
    %664 = arith.truncf %661 : vector<8x128xf32> to vector<8x128xbf16>
    %c0_310 = arith.constant 0 : index
    %c0_311 = arith.constant 0 : index
    %665 = vector.load %arg2[%c0_310, %c0_311] : memref<128x512xbf16, #tpu.memory_space<vmem>>, vector<128x512xbf16>
    %cst_312 = arith.constant dense<0.000000e+00> : vector<8x512xf32>
    %666 = tpu.matmul %664, %665, %cst_312 {dimension_numbers = #tpu.dot_dimension_numbers<[1], [0], [0], [1], [0, 0, 1, 1], [], []>} : vector<8x128xbf16>, vector<128x512xbf16>, vector<8x512xf32> -> vector<8x512xf32>
    %667 = arith.addf %663, %666 : vector<8x512xf32>
    %668 = vector.extract_strided_slice %667 {offsets = [0, 0], sizes = [8, 128], strides = [1, 1]} : vector<8x512xf32> to vector<8x128xf32>
    %cst_313 = arith.constant 5.000000e-01 : f32
    %669 = vector.broadcast %cst_313 : f32 to vector<8x128xf32>
    %670 = arith.mulf %669, %668 : vector<8x128xf32>
    %671 = math.tanh %670 : vector<8x128xf32>
    %cst_314 = arith.constant 5.000000e-01 : f32
    %672 = vector.broadcast %cst_314 : f32 to vector<8x128xf32>
    %673 = arith.mulf %672, %671 : vector<8x128xf32>
    %cst_315 = arith.constant 5.000000e-01 : f32
    %674 = vector.broadcast %cst_315 : f32 to vector<8x128xf32>
    %675 = arith.addf %673, %674 : vector<8x128xf32>
    %676 = vector.extract_strided_slice %667 {offsets = [0, 128], sizes = [8, 128], strides = [1, 1]} : vector<8x512xf32> to vector<8x128xf32>
    %cst_316 = arith.constant 5.000000e-01 : f32
    %677 = vector.broadcast %cst_316 : f32 to vector<8x128xf32>
    %678 = arith.mulf %677, %676 : vector<8x128xf32>
    %679 = math.tanh %678 : vector<8x128xf32>
    %cst_317 = arith.constant 5.000000e-01 : f32
    %680 = vector.broadcast %cst_317 : f32 to vector<8x128xf32>
    %681 = arith.mulf %680, %679 : vector<8x128xf32>
    %cst_318 = arith.constant 5.000000e-01 : f32
    %682 = vector.broadcast %cst_318 : f32 to vector<8x128xf32>
    %683 = arith.addf %681, %682 : vector<8x128xf32>
    %684 = vector.extract_strided_slice %667 {offsets = [0, 256], sizes = [8, 128], strides = [1, 1]} : vector<8x512xf32> to vector<8x128xf32>
    %685 = math.tanh %684 : vector<8x128xf32>
    %686 = vector.extract_strided_slice %667 {offsets = [0, 384], sizes = [8, 128], strides = [1, 1]} : vector<8x512xf32> to vector<8x128xf32>
    %cst_319 = arith.constant 5.000000e-01 : f32
    %687 = vector.broadcast %cst_319 : f32 to vector<8x128xf32>
    %688 = arith.mulf %687, %686 : vector<8x128xf32>
    %689 = math.tanh %688 : vector<8x128xf32>
    %cst_320 = arith.constant 5.000000e-01 : f32
    %690 = vector.broadcast %cst_320 : f32 to vector<8x128xf32>
    %691 = arith.mulf %690, %689 : vector<8x128xf32>
    %cst_321 = arith.constant 5.000000e-01 : f32
    %692 = vector.broadcast %cst_321 : f32 to vector<8x128xf32>
    %693 = arith.addf %691, %692 : vector<8x128xf32>
    %c0_322 = arith.constant 0 : index
    %c0_323 = arith.constant 0 : index
    %694 = vector.load %arg9[%c0_322, %c0_323] : memref<8x128xf32, #tpu.memory_space<vmem>>, vector<8x128xf32>
    %695 = arith.mulf %683, %694 : vector<8x128xf32>
    %696 = arith.mulf %675, %685 : vector<8x128xf32>
    %697 = arith.addf %695, %696 : vector<8x128xf32>
    %c0_324 = arith.constant 0 : index
    %c0_325 = arith.constant 0 : index
    %698 = vector.load %arg9[%c0_324, %c0_325] : memref<8x128xf32, #tpu.memory_space<vmem>>, vector<8x128xf32>
    tpu.vector_store %arg9[%c0_324, %c0_325], %697 {strides = array<i32>} : memref<8x128xf32, #tpu.memory_space<vmem>>, vector<8x128xf32>,
    %699 = math.tanh %697 : vector<8x128xf32>
    %700 = arith.mulf %693, %699 : vector<8x128xf32>
    %701 = arith.index_cast %656 : i32 to index
    %c0_326 = arith.constant 0 : index
    %702 = vector.load %arg8[%701, %c0_326] : memref<128x128xf32, #tpu.memory_space<vmem>>, vector<8x128xf32>
    tpu.vector_store %arg8[%701, %c0_326], %700 {strides = array<i32>} : memref<128x128xf32, #tpu.memory_space<vmem>>, vector<8x128xf32>,
    %c15_i32 = arith.constant 15 : i32
    %c8_i32_327 = arith.constant 8 : i32
    %703 = arith.muli %c15_i32, %c8_i32_327 : i32
    %704 = tpu.assume_multiple %703, 8 : i32
    %c1_i32_328 = arith.constant 1 : i32
    %705 = arith.subi %c15_i32, %c1_i32_328 : i32
    %c8_i32_329 = arith.constant 8 : i32
    %706 = arith.muli %705, %c8_i32_329 : i32
    %707 = tpu.assume_multiple %706, 8 : i32
    %708 = arith.index_cast %707 : i32 to index
    %c0_330 = arith.constant 0 : index
    %709 = vector.load %arg8[%708, %c0_330] : memref<128x128xf32, #tpu.memory_space<vmem>>, vector<8x128xf32>
    %710 = arith.index_cast %704 : i32 to index
    %c0_331 = arith.constant 0 : index
    %711 = vector.load %arg7[%710, %c0_331] : memref<128x512xf32, #tpu.memory_space<vmem>>, vector<8x512xf32>
    %712 = arith.truncf %709 : vector<8x128xf32> to vector<8x128xbf16>
    %c0_332 = arith.constant 0 : index
    %c0_333 = arith.constant 0 : index
    %713 = vector.load %arg2[%c0_332, %c0_333] : memref<128x512xbf16, #tpu.memory_space<vmem>>, vector<128x512xbf16>
    %cst_334 = arith.constant dense<0.000000e+00> : vector<8x512xf32>
    %714 = tpu.matmul %712, %713, %cst_334 {dimension_numbers = #tpu.dot_dimension_numbers<[1], [0], [0], [1], [0, 0, 1, 1], [], []>} : vector<8x128xbf16>, vector<128x512xbf16>, vector<8x512xf32> -> vector<8x512xf32>
    %715 = arith.addf %711, %714 : vector<8x512xf32>
    %716 = vector.extract_strided_slice %715 {offsets = [0, 0], sizes = [8, 128], strides = [1, 1]} : vector<8x512xf32> to vector<8x128xf32>
    %cst_335 = arith.constant 5.000000e-01 : f32
    %717 = vector.broadcast %cst_335 : f32 to vector<8x128xf32>
    %718 = arith.mulf %717, %716 : vector<8x128xf32>
    %719 = math.tanh %718 : vector<8x128xf32>
    %cst_336 = arith.constant 5.000000e-01 : f32
    %720 = vector.broadcast %cst_336 : f32 to vector<8x128xf32>
    %721 = arith.mulf %720, %719 : vector<8x128xf32>
    %cst_337 = arith.constant 5.000000e-01 : f32
    %722 = vector.broadcast %cst_337 : f32 to vector<8x128xf32>
    %723 = arith.addf %721, %722 : vector<8x128xf32>
    %724 = vector.extract_strided_slice %715 {offsets = [0, 128], sizes = [8, 128], strides = [1, 1]} : vector<8x512xf32> to vector<8x128xf32>
    %cst_338 = arith.constant 5.000000e-01 : f32
    %725 = vector.broadcast %cst_338 : f32 to vector<8x128xf32>
    %726 = arith.mulf %725, %724 : vector<8x128xf32>
    %727 = math.tanh %726 : vector<8x128xf32>
    %cst_339 = arith.constant 5.000000e-01 : f32
    %728 = vector.broadcast %cst_339 : f32 to vector<8x128xf32>
    %729 = arith.mulf %728, %727 : vector<8x128xf32>
    %cst_340 = arith.constant 5.000000e-01 : f32
    %730 = vector.broadcast %cst_340 : f32 to vector<8x128xf32>
    %731 = arith.addf %729, %730 : vector<8x128xf32>
    %732 = vector.extract_strided_slice %715 {offsets = [0, 256], sizes = [8, 128], strides = [1, 1]} : vector<8x512xf32> to vector<8x128xf32>
    %733 = math.tanh %732 : vector<8x128xf32>
    %734 = vector.extract_strided_slice %715 {offsets = [0, 384], sizes = [8, 128], strides = [1, 1]} : vector<8x512xf32> to vector<8x128xf32>
    %cst_341 = arith.constant 5.000000e-01 : f32
    %735 = vector.broadcast %cst_341 : f32 to vector<8x128xf32>
    %736 = arith.mulf %735, %734 : vector<8x128xf32>
    %737 = math.tanh %736 : vector<8x128xf32>
    %cst_342 = arith.constant 5.000000e-01 : f32
    %738 = vector.broadcast %cst_342 : f32 to vector<8x128xf32>
    %739 = arith.mulf %738, %737 : vector<8x128xf32>
    %cst_343 = arith.constant 5.000000e-01 : f32
    %740 = vector.broadcast %cst_343 : f32 to vector<8x128xf32>
    %741 = arith.addf %739, %740 : vector<8x128xf32>
    %c0_344 = arith.constant 0 : index
    %c0_345 = arith.constant 0 : index
    %742 = vector.load %arg9[%c0_344, %c0_345] : memref<8x128xf32, #tpu.memory_space<vmem>>, vector<8x128xf32>
    %743 = arith.mulf %731, %742 : vector<8x128xf32>
    %744 = arith.mulf %723, %733 : vector<8x128xf32>
    %745 = arith.addf %743, %744 : vector<8x128xf32>
    %c0_346 = arith.constant 0 : index
    %c0_347 = arith.constant 0 : index
    %746 = vector.load %arg9[%c0_346, %c0_347] : memref<8x128xf32, #tpu.memory_space<vmem>>, vector<8x128xf32>
    tpu.vector_store %arg9[%c0_346, %c0_347], %745 {strides = array<i32>} : memref<8x128xf32, #tpu.memory_space<vmem>>, vector<8x128xf32>,
    %747 = math.tanh %745 : vector<8x128xf32>
    %748 = arith.mulf %741, %747 : vector<8x128xf32>
    %749 = arith.index_cast %704 : i32 to index
    %c0_348 = arith.constant 0 : index
    %750 = vector.load %arg8[%749, %c0_348] : memref<128x128xf32, #tpu.memory_space<vmem>>, vector<8x128xf32>
    tpu.vector_store %arg8[%749, %c0_348], %748 {strides = array<i32>} : memref<128x128xf32, #tpu.memory_space<vmem>>, vector<8x128xf32>,
    %c15_i32_349 = arith.constant 15 : i32
    %c0_350 = arith.constant 0 : index
    %c0_351 = arith.constant 0 : index
    %751 = vector.load %arg8[%c0_350, %c0_351] : memref<128x128xf32, #tpu.memory_space<vmem>>, vector<128x128xf32>
    %752 = arith.truncf %751 : vector<128x128xf32> to vector<128x128xbf16>
    %c0_352 = arith.constant 0 : index
    %c0_353 = arith.constant 0 : index
    %753 = vector.load %arg4[%c0_352, %c0_353] : memref<128x128xbf16, #tpu.memory_space<vmem>>, vector<128x128xbf16>
    %cst_354 = arith.constant dense<0.000000e+00> : vector<128x128xf32>
    %754 = tpu.matmul %752, %753, %cst_354 {dimension_numbers = #tpu.dot_dimension_numbers<[1], [0], [0], [1], [0, 0, 1, 1], [], []>} : vector<128x128xbf16>, vector<128x128xbf16>, vector<128x128xf32> -> vector<128x128xf32>
    %c0_355 = arith.constant 0 : index
    %c0_356 = arith.constant 0 : index
    %755 = vector.load %arg5[%c0_355, %c0_356] : memref<1x128xf32, #tpu.memory_space<vmem>>, vector<1x128xf32>
    %756 = vector.broadcast %755 : vector<1x128xf32> to vector<128x128xf32>
    %757 = arith.addf %754, %756 : vector<128x128xf32>
    %758 = arith.truncf %757 : vector<128x128xf32> to vector<128x128xbf16>
    %c0_357 = arith.constant 0 : index
    %c0_358 = arith.constant 0 : index
    %759 = vector.load %arg6[%c0_357, %c0_358] : memref<128x128xbf16, #tpu.memory_space<vmem>>, vector<128x128xbf16>
    tpu.vector_store %arg6[%c0_357, %c0_358], %758 {strides = array<i32>} : memref<128x128xbf16, #tpu.memory_space<vmem>>, vector<128x128xbf16>,
    return
  }
}

</mosaic_0001>

<bundles_post_ra>
// kernel: tpu_custom_call.1
= control target key start
LH: loop header
LB: loop body
LE: loop exit
PB: predicated region body
PF: predicated region fallthrough
CT: control target
= control target key end

     0   :  { %11 = vsyncpa [#allocation6], 0  ;;  %s7812_s0 = inlined_call_operand.vmem [shape: bf16[128,4], index: 0, kind: input, shape index: {}]   ;;  %s7813_s1 = inlined_call_operand.vmem [shape: bf16[4,512], index: 1, kind: input, shape index: {}]   ;;  %s7814_s2 = inlined_call_operand.hbm [shape: bf16[128,512], index: 2, kind: input, shape index: {}]   ;;  %s7815_s3 = inlined_call_operand.vmem [shape: f32[1,512], index: 3, kind: input, shape index: {}]   ;;  %s7816_s4 = inlined_call_operand.vmem [shape: bf16[128,128], index: 4, kind: input, shape index: {}]   ;;  %s7817_s5 = inlined_call_operand.vmem [shape: f32[1,128], index: 5, kind: input, shape index: {}]   ;;  %s7818_s6 = inlined_call_operand.hbm [shape: bf16[128,128], index: 6, kind: output, shape index: {}]  }
   0x1   :  { %12 = vsyncpa [#allocation7], 0  ;;  %s6487_s21 = smov [#allocation5]   ;;  %s6439_s25 = scalar_lea.hbm %s7814_s2, 4096 }
   0x2   :  { %s22_s22 = sshll.u32 %s6487_s21, 4  ;;  %p6440_p0 = scmp.ne.s32.totalorder %s7814_s2, %s6439_s25  ;;  %s23_s22 = int_to_ptr.vmem [resolvable:$true] %s22_s22 }
   0x3   :  { %p6443_p1 = scmp.lt.u32.totalorder %s6439_s25, %s7814_s2 }
   0x5   :  { %p6445_p2 = pnand %p6443_p1, %p6440_p0 }
   0x7   :  { %6448 = shalt.err (!%p6445_p2)
}
   0x8   :  { %s6449_s30 = scalar_lea.vmem %s23_s22, 4096  ;;  %p6454_p4 = scmp.lt.s32.totalorder %s23_s22, %s23_s22 }
   0x9   :  { %p6450_p3 = scmp.ne.s32.totalorder %s23_s22, %s6449_s30  ;;  %p6455_p5 = scmp.lt.s32.totalorder %s6449_s30, %s6449_s30 }
   0xb   :  { %p6456_p6 = por %p6455_p5, %p6454_p4 }
   0xd   :  { %p6457_p7 = pnand %p6456_p6, %p6450_p3 }
   0xf   :  { %6460 = shalt.err (!%p6457_p7)
}
  0x10   :  { %s6488_s7 = smov 256   ;;  %s6489_s8 = smov 16  }
  0x11   :  { %28 = dma.hbm_to_vmem [thread:$0]  %s7814_s2, 4096, %s23_s22, [#allocation6], %s6488_s7, %s6488_s7, %s6489_s8  }
  0x12   :  { %6483 = dma.done.wait [#allocation6], 4096  }
  0x13   :  { %6484 = vsyncadd [#allocation6], 4294963200  ;;  %v58_v0 = vlaneseq  ;;  %v6490_v1 = vmov 1983009808   ;;  %v7819_v3 = vmov 0   ;;  %v55_v8 = vld [vmem:[%s7813_s1] sm:$0xff] }
  0x14   :  { %v121_v2 = vunpack.c.l.s4 %v6490_v1  ;;  %246 = vmatprep.mubr.bf16.mxu1 %v7819_v3  ;;  %206 = vmatprep.mubr.bf16.mxu0 %v7819_v3  ;;  %v6554_v9 = vld [vmem:[%s7815_s3] sm:$0xf]  ;;  %vm161_vm0 = vcmask 1041408   ;;  %v119_v11 = vcombine.high %v55_v8, %v55_v8  ;;  %vm136_vm1 = vcmask 31744   ;;  %v6074_v20 = vld [vmem:[%s7812_s0 + $0x28] sm:$0xff]   ;;  %v6075_v21 = vld [vmem:[%s7812_s0 + $0x30] sm:$0xff]  }
  0x15   :  { %v6544_v4 = vshrl.u32 %v58_v0, 7  ;;  %v6073_v16 = vld [vmem:[%s7812_s0 + $0x20] sm:$0xff]   ;;  %v6582_v22 = vld [vmem:[%s7812_s0 + $0x38] sm:$0xff]   ;;  %v6081_v25 = vld [vmem:[%s7812_s0 + $0x8] sm:$0xff]  }
  0x16   :  { %v122_v5 = vunpack.c.0.s8 %v121_v2  ;;  %v6076_v17 = vld [vmem:[%s7812_s0] sm:$0xff]   ;;  %v6589_v23 = vld [vmem:[#allocation5 + $0x8] ss:$16 sps:$4 sm:$0xff]   ;;  %v6591_v24 = vld [vmem:[#allocation5 + $0xc] ss:$16 sps:$4 sm:$0xff]  }
  0x17   :  { %v64_v6 = vsub.s32 1, %v6544_v4  ;;  %v6602_v26 = vld [vmem:[#allocation5 + $0x28] ss:$16 sps:$4 sm:$0xff]   ;;  %v6604_v27 = vld [vmem:[#allocation5 + $0x2c] ss:$16 sps:$4 sm:$0xff]   ;;  %v6085_v28 = vld [vmem:[%s7812_s0 + $0x10] sm:$0xff]  }
  0x18   :  { %v125_v7 = vsub.s32 %v122_v5, %v6544_v4  ;;  %v6615_v29 = vld [vmem:[#allocation5 + $0x48] ss:$16 sps:$4 sm:$0xff]   ;;  %v6617_v30 = vld [vmem:[#allocation5 + $0x4c] ss:$16 sps:$4 sm:$0xff]   ;;  %v6632_v34 = vld [vmem:[#allocation5] ss:$16 sps:$4 sm:$0xff]  }
  0x19   :  { %v6557_v10 = vrot.slane %v6554_v9, %v64_v6  ;;  %v6089_v31 = vld [vmem:[%s7812_s0 + $0x18] sm:$0xff]   ;;  %v6634_v35 = vld [vmem:[#allocation5 + $0x4] ss:$16 sps:$4 sm:$0xff]   ;;  %v6644_v37 = vld [vmem:[#allocation5 + $0x20] ss:$16 sps:$4 sm:$0xff]  }
  0x1a   :  { %v126_v12 = vrot.slane %v55_v8, %v125_v7  ;;  %v133_v13 = vrot.slane %v119_v11, %v125_v7  ;;  %v6628_v32 = vld [vmem:[#allocation5 + $0x68] ss:$16 sps:$4 sm:$0xff]   ;;  %v6630_v33 = vld [vmem:[#allocation5 + $0x6c] ss:$16 sps:$4 sm:$0xff]   ;;  %v6642_v36 = vld [vmem:[#allocation5 + $0x24] ss:$16 sps:$4 sm:$0xff]  }
  0x1b   :  { %v6648_v38 = vld [vmem:[#allocation5 + $0x44] ss:$16 sps:$4 sm:$0xff]   ;;  %v6651_v39 = vld [vmem:[#allocation5 + $0x40] ss:$16 sps:$4 sm:$0xff]   ;;  %v6662_v42 = vld [vmem:[#allocation5 + $0x8c] ss:$16 sps:$4 sm:$0xff]  }
  0x1c   :  { %v134_v14 = vcombine.high %v126_v12, %v126_v12  ;;  %v163_v15 = vsel %vm161_vm0, %v126_v12, 0  ;;  %v135_v18 = vcombine.high %v133_v13, %v133_v13  ;;  %v169_v19 = vsel %vm161_vm0, %v133_v13, 0  ;;  %v6656_v40 = vld [vmem:[#allocation5 + $0x64] ss:$16 sps:$4 sm:$0xff]   ;;  %v6658_v41 = vld [vmem:[#allocation5 + $0x60] ss:$16 sps:$4 sm:$0xff]  }
  0x1d   :  { %v6664_v43 = vld [vmem:[#allocation5 + $0x84] ss:$16 sps:$4 sm:$0xff]   ;;  %v6666_v44 = vld [vmem:[#allocation5 + $0x88] ss:$16 sps:$4 sm:$0xff]   ;;  %v6669_v45 = vld [vmem:[#allocation5 + $0x80] ss:$16 sps:$4 sm:$0xff]  }
  0x1e   :  { %6062 = vmatprep.subr.msk.bf16.mxu1 %vm161_vm0, %v134_v14  ;;  %5428 = vmatprep.subr.msk.bf16.mxu0 %vm161_vm0, %v134_v14  ;;  %v6675_v46 = vld [vmem:[#allocation5 + $0xac] ss:$16 sps:$4 sm:$0xff]   ;;  %v6677_v47 = vld [vmem:[#allocation5 + $0xa4] ss:$16 sps:$4 sm:$0xff]   ;;  %v6680_v48 = vld [vmem:[#allocation5 + $0xa8] ss:$16 sps:$4 sm:$0xff]  }
  0x1f   :  { %6063 = vmatpush1.bf16.msra.mxu1 %v163_v15  ;;  %175 = vmatpush1.bf16.msra.mxu0 %v163_v15  ;;  %v6682_v49 = vld [vmem:[#allocation5 + $0xa0] ss:$16 sps:$4 sm:$0xff]   ;;  %v6688_v50 = vld [vmem:[#allocation5 + $0xcc] ss:$16 sps:$4 sm:$0xff]   ;;  %v6690_v51 = vld [vmem:[#allocation5 + $0xc4] ss:$16 sps:$4 sm:$0xff]  }
  0x20   :  { %5437 = vmatprep.subr.msk.bf16.mxu1 %vm161_vm0, %v135_v18  ;;  %682 = vmatprep.subr.bf16.mxu0 %v6634_v35  ;;  %v6692_v52 = vld [vmem:[#allocation5 + $0xc8] ss:$16 sps:$4 sm:$0xff]   ;;  %v6696_v53 = vld [vmem:[#allocation5 + $0xc0] ss:$16 sps:$4 sm:$0xff]   ;;  %v6702_v54 = vld [vmem:[#allocation5 + $0xe4] ss:$16 sps:$4 sm:$0xff]  }
  0x21   :  { %v6704_v55 = vld [vmem:[#allocation5 + $0xec] ss:$16 sps:$4 sm:$0xff]   ;;  %v6707_v56 = vld [vmem:[#allocation5 + $0xe0] ss:$16 sps:$4 sm:$0xff]   ;;  %v6709_v57 = vld [vmem:[#allocation5 + $0xe8] ss:$16 sps:$4 sm:$0xff]  }
  0x22   :  { %5433 = vmatmul.mubr.msk.bf16.vlgmr.msra.gmra.mrb[0].mxu1 %vm136_vm1, %v6073_v16  ;;  %5429 = vmatmul.mubr.msk.bf16.vlgmr.msra.gmra.mrb[0].mxu0 %vm136_vm1, %v6076_v17  ;;  %v60_v7 = vsub.s32 0, %v6544_v4 }
  0x23   :  { %288 = vmatpush1.bf16.msra.mxu1 %v169_v19  ;;  %256 = vmatprep.mubr.bf16.mxu1 %v7819_v3  ;;  %v68_v19 = vsub.s32 2, %v6544_v4 }
  0x24   :  { %216 = vmatprep.mubr.bf16.mxu0 %v7819_v3  ;;  %723 = vmatprep.subr.bf16.mxu1 %v6591_v24  ;;  %v6739_v11 = vrot.slane %v6554_v9, %v60_v7 }
  0x25   :  { %683 = vmatpush1.bf16.msra.mxu0 %v6632_v34 }
  0x26   :  { %684 = vmatprep.subr.bf16.mxu0 %v6642_v36 }
  0x29   :  { %685 = vmatpush1.bf16.msra.mxu0 %v6644_v37 }
  0x2a   :  { %5434 = vmatmul.mubr.msk.bf16.gmra.mrb[4].mxu1 %vm136_vm1, %v6074_v20  ;;  %5430 = vmatmul.mubr.msk.bf16.gmra.mrb[4].mxu0 %vm136_vm1, %v6081_v25 }
  0x2b   :  { %266 = vmatprep.mubr.bf16.mxu1 %v7819_v3  ;;  %226 = vmatprep.mubr.bf16.mxu0 %v7819_v3 }
  0x2c   :  { %686 = vmatprep.subr.bf16.mxu0 %v6648_v38 }
  0x2d   :  { %687 = vmatpush1.bf16.msra.mxu0 %v6651_v39 }
  0x2e   :  { %688 = vmatprep.subr.bf16.mxu0 %v6656_v40 }
  0x31   :  { %689 = vmatpush1.bf16.msra.mxu0 %v6658_v41 }
  0x32   :  { %5435 = vmatmul.mubr.msk.bf16.gmra.mrb[8].mxu1 %vm136_vm1, %v6075_v21  ;;  %5431 = vmatmul.mubr.msk.bf16.gmra.mrb[8].mxu0 %vm136_vm1, %v6085_v28 }
  0x33   :  { %276 = vmatprep.mubr.bf16.mxu1 %v7819_v3  ;;  %236 = vmatprep.mubr.bf16.mxu0 %v7819_v3 }
  0x34   :  { %690 = vmatprep.subr.bf16.mxu0 %v6664_v43 }
  0x35   :  { %691 = vmatpush1.bf16.msra.mxu0 %v6669_v45 }
  0x36   :  { %692 = vmatprep.subr.bf16.mxu0 %v6677_v47 }
  0x39   :  { %693 = vmatpush1.bf16.msra.mxu0 %v6682_v49 }
  0x3a   :  { %5436 = vmatmul.mubr.msk.bf16.gmra.mrb[12].mxu1 %vm136_vm1, %v6582_v22  ;;  %5432 = vmatmul.mubr.msk.bf16.gmra.mrb[12].mxu0 %vm136_vm1, %v6089_v31 }
  0x3b   :  { %319 = vmatprep.mubr.bf16.mxu1 %v7819_v3  ;;  %714 = vmatprep.mubr.bf16.mxu0 %v7819_v3 }
  0x3c   :  { %694 = vmatprep.subr.bf16.mxu0 %v6690_v51 }
  0x3d   :  { %695 = vmatpush1.bf16.msra.mxu0 %v6696_v53 }
  0x3e   :  { %696 = vmatprep.subr.bf16.mxu0 %v6702_v54 }
  0x41   :  { %697 = vmatpush1.bf16.msra.mxu0 %v6707_v56 }
  0x42   :  { %5438 = vmatmul.mubr.msk.bf16.vlgmr.msra.gmra.mrb[16].mxu1 %vm136_vm1, %v6076_v17  ;;  %991 = vmatprep.subr.bf16.mxu0 %v6634_v35 }
  0x43   :  { %329 = vmatprep.mubr.bf16.mxu1 %v7819_v3  ;;  %724 = vmatpush1.bf16.msra.mxu1 %v6589_v23 }
  0x44   :  { %725 = vmatprep.subr.bf16.mxu1 %v6604_v27 }
  0x47   :  { %726 = vmatpush1.bf16.msra.mxu1 %v6602_v26 }
  0x48   :  { %727 = vmatprep.subr.bf16.mxu1 %v6617_v30 }
  0x4a   :  { %5439 = vmatmul.mubr.msk.bf16.gmra.mrb[20].mxu1 %vm136_vm1, %v6081_v25 }
  0x4b   :  { %339 = vmatprep.mubr.bf16.mxu1 %v7819_v3  ;;  %728 = vmatpush1.bf16.msra.mxu1 %v6615_v29 }
  0x4c   :  { %729 = vmatprep.subr.bf16.mxu1 %v6630_v33 }
  0x4f   :  { %730 = vmatpush1.bf16.msra.mxu1 %v6628_v32 }
  0x50   :  { %731 = vmatprep.subr.bf16.mxu1 %v6662_v42 }
  0x52   :  { %5440 = vmatmul.mubr.msk.bf16.gmra.mrb[24].mxu1 %vm136_vm1, %v6085_v28  ;;  %v6761_v28 = vrot.slane %v6554_v9, %v68_v19 }
  0x53   :  { %349 = vmatprep.mubr.bf16.mxu1 %v7819_v3  ;;  %732 = vmatpush1.bf16.msra.mxu1 %v6666_v44 }
  0x54   :  { %733 = vmatprep.subr.bf16.mxu1 %v6675_v46 }
  0x57   :  { %734 = vmatpush1.bf16.msra.mxu1 %v6680_v48 }
  0x58   :  { %735 = vmatprep.subr.bf16.mxu1 %v6688_v50 }
  0x5a   :  { %5441 = vmatmul.mubr.msk.bf16.gmra.mrb[28].mxu1 %vm136_vm1, %v6089_v31 }
  0x5b   :  { %359 = vmatprep.mubr.bf16.mxu1 %v7819_v3  ;;  %736 = vmatpush1.bf16.msra.mxu1 %v6692_v52 }
  0x5c   :  { %737 = vmatprep.subr.bf16.mxu1 %v6704_v55 }
  0x5f   :  { %738 = vmatpush1.bf16.msra.mxu1 %v6709_v57 }
  0x60   :  { %1032 = vmatprep.subr.bf16.mxu1 %v6591_v24 }
  0x62   :  { %5442 = vmatmul.mubr.msk.bf16.gmra.mrb[32].mxu1 %vm136_vm1, %v6073_v16 }
  0x63   :  { %369 = vmatprep.mubr.bf16.mxu1 %v7819_v3 }
  0x6a   :  { %5443 = vmatmul.mubr.msk.bf16.gmra.mrb[36].mxu1 %vm136_vm1, %v6074_v20 }
  0x6b   :  { %379 = vmatprep.mubr.bf16.mxu1 %v7819_v3 }
  0x72   :  { %5444 = vmatmul.mubr.msk.bf16.gmra.mrb[40].mxu1 %vm136_vm1, %v6075_v21  ;;  %v72_v21 = vsub.s32 3, %v6544_v4 }
  0x73   :  { %389 = vmatprep.mubr.bf16.mxu1 %v7819_v3 }
  0x74   :  { %v6764_v31 = vrot.slane %v6554_v9, %v72_v21 }
  0x7a   :  { %5445 = vmatmul.mubr.msk.bf16.gmra.mrb[44].mxu1 %vm136_vm1, %v6582_v22 }
  0x7b   :  { %755 = vmatprep.mubr.bf16.mxu1 %v7819_v3 }
  0xf5   :  { %v6717_v58 = vpop.f32.mrb[0].mxu1  ;;  %v208_v59 = vpop.f32.mrb[0].mxu0 }
  0xf6   :  { %7830 = vst [vmem:[#allocation11_spill] sm:$0xff] %v6717_v58  ;;  %v6719_v60 = vpop.f32.mrb[1].mxu1  ;;  %v210_v61 = vpop.f32.mrb[1].mxu0  ;;  %v209_v14 = vadd.f32 %v208_v59, %v6739_v11 }
  0xf7   :  { %7831 = vst [vmem:[#allocation12_spill] sm:$0xff] %v6719_v60  ;;  %v6721_v62 = vpop.f32.mrb[2].mxu1  ;;  %v6723_v63 = vpop.f32.mrb[2].mxu0 }
  0xf8   :  { %7832 = vst [vmem:[#allocation13_spill] sm:$0xff] %v6721_v62  ;;  %v6725_v0 = vpop.f32.mrb[3].mxu1  ;;  %v6727_v1 = vpop.f32.mrb[3].mxu0  ;;  %v467_v17 = vmul.f32 0.5, %v209_v14 }
  0xf9   :  { %7833 = vst [vmem:[#allocation14_spill] sm:$0xff] %v6725_v0 }
  0xfa   :  { %6281 = vtanh.f32 %v467_v17 }
  0xfd   :  { %v6729_v2 = vpop.f32.mrb[4].mxu1 }
  0xfe   :  { %7834 = vst [vmem:[#allocation15_spill] sm:$0xff] %v6729_v2  ;;  %v6731_v5 = vpop.f32.mrb[5].mxu1 }
  0xff   :  { %7835 = vst [vmem:[#allocation16_spill] sm:$0xff] %v6731_v5  ;;  %v6733_v6 = vpop.f32.mrb[6].mxu1 }
 0x100   :  { %7836 = vst [vmem:[#allocation17_spill] sm:$0xff] %v6733_v6  ;;  %v6736_v8 = vpop.f32.mrb[7].mxu1 }
 0x101   :  { %7837 = vst [vmem:[#allocation18_spill] sm:$0xff] %v6736_v8 }
 0x104   :  { %v6282_v3 = vpop.eup %6281 }
 0x105   :  { %v6741_v12 = vpop.f32.mrb[8].mxu1 }
 0x106   :  { %7838 = vst [vmem:[#allocation19_spill] sm:$0xff] %v6741_v12  ;;  %v6743_v13 = vpop.f32.mrb[9].mxu1 }
 0x107   :  { %7839 = vst [vmem:[#allocation20_spill] sm:$0xff] %v6743_v13  ;;  %v6746_v15 = vpop.f32.mrb[10].mxu1 }
 0x108   :  { %7840 = vst [vmem:[#allocation21_spill] sm:$0xff] %v6746_v15  ;;  %v6748_v16 = vpop.f32.mrb[11].mxu1 }
 0x109   :  { %7841 = vst [vmem:[#allocation22_spill] sm:$0xff] %v6748_v16 }
 0x10d   :  { %v6750_v18 = vpop.f32.mrb[12].mxu1 }
 0x10e   :  { %7842 = vst [vmem:[#allocation23_spill] sm:$0xff] %v6750_v18  ;;  %v6753_v20 = vpop.f32.mrb[13].mxu1 }
 0x10f   :  { %7843 = vst [vmem:[#allocation24_spill] sm:$0xff] %v6753_v20  ;;  %v6756_v22 = vpop.f32.mrb[14].mxu1 }
 0x110   :  { %7844 = vst [vmem:[#allocation25_spill] sm:$0xff] %v6756_v22  ;;  %v6758_v25 = vpop.f32.mrb[15].mxu1 }
 0x111   :  { %7845 = vst [vmem:[#allocation26_spill] sm:$0xff] %v6758_v25  ;;  %v469_v25 = vmul.f32 0.5, %v6282_v3  ;;  %v7847_v3 = vmov 0  }
 0x113   :  { %v470_v19 = vadd.f32 0.5, %v469_v25  ;;  %v6815_v25 = vpop.f32.mrb[4].mxu0 }
 0x115   :  { %v321_v59 = vpop.f32.mrb[16].mxu1 }
 0x116   :  { %v322_v61 = vadd.f32 %v321_v59, %v6761_v28  ;;  %v323_v7 = vpop.f32.mrb[17].mxu1 }
 0x117   :  { %v324_v14 = vadd.f32 %v323_v7, %v6764_v31  ;;  %v6768_v17 = vpop.f32.mrb[18].mxu1 }
 0x118   :  { %6283 = vtanh.f32 %v322_v61  ;;  %v6770_v4 = vpop.f32.mrb[19].mxu1 }
 0x119   :  { %v472_v22 = vmul.f32 0.5, %v324_v14 }
 0x11b   :  { %6285 = vtanh.f32 %v472_v22 }
 0x122   :  { %v6284_v20 = vpop.eup %6283 }
 0x123   :  { %v6772_v18 = vmul.f32 %v6284_v20, %v470_v19  ;;  %v6819_v19 = vpop.f32.mrb[5].mxu0 }
 0x125   :  { %6287 = vtanh.f32 %v6772_v18  ;;  %v6286_v9 = vpop.eup %6285 }
 0x126   :  { %v474_v21 = vmul.f32 0.5, %v6286_v9  ;;  %v6823_v9 = vpop.f32.mrb[6].mxu0 }
 0x127   :  { %7850 = vst [vmem:[#allocation30_spill] sm:$0xff] %v6823_v9 }
 0x128   :  { %v475_v59 = vadd.f32 0.5, %v474_v21  ;;  %v6827_v21 = vpop.f32.mrb[7].mxu0 }
 0x129   :  { %7851 = vst [vmem:[#allocation31_spill] sm:$0xff] %v6827_v21  ;;  %v6835_v15 = vpop.f32.mrb[8].mxu0 }
 0x12a   :  { %7855 = vst [vmem:[#allocation35_spill] sm:$0xff] %v6835_v15  ;;  %v6839_v12 = vpop.f32.mrb[9].mxu0 }
 0x12b   :  { %7857 = vst [vmem:[#allocation37_spill] sm:$0xff] %v6839_v12  ;;  %v6841_v8 = vpop.f32.mrb[10].mxu0 }
 0x12c   :  { %7858 = vst [vmem:[#allocation38_spill] sm:$0xff] %v6841_v8  ;;  %v6843_v6 = vpop.f32.mrb[11].mxu0 }
 0x12d   :  { %7859 = vst [vmem:[#allocation39_spill] sm:$0xff] %v6843_v6  ;;  %v6851_v0 = vpop.f32.mrb[12].mxu0 }
 0x12e   :  { %7863 = vst [vmem:[#allocation43_spill] sm:$0xff] %v6851_v0  ;;  %v6855_v60 = vpop.f32.mrb[13].mxu0 }
 0x12f   :  { %v6288_v16 = vpop.eup %6287  ;;  %7865 = vst [vmem:[#allocation45_spill] sm:$0xff] %v6855_v60  ;;  %v6857_v58 = vpop.f32.mrb[14].mxu0 }
 0x130   :  { %v6775_v7 = vmul.f32 %v6288_v16, %v475_v59  ;;  %v6807_v16 = vpop.f32.mrb[20].mxu1  ;;  %7866 = vst [vmem:[#allocation46_spill] sm:$0xff] %v6857_v58 }
 0x131   :  { %v6811_v20 = vpop.f32.mrb[21].mxu1 }
 0x132   :  { %7846 = vst [vmem:[#allocation27_spill] sm:$0xff] %v6775_v7  ;;  %v489_v61 = vpack.c.bf16 %v6775_v7, %v6775_v7  ;;  %v6813_v22 = vpop.f32.mrb[22].mxu1 }
 0x133   :  { %7848 = vst [vmem:[#allocation28_spill] sm:$0xff] %v6813_v22  ;;  %v6817_v14 = vpop.f32.mrb[23].mxu1 }
 0x134   :  { %715 = vmatmul.mubr.bf16.vlgmr.msra.gmra.mrb[16].mxu0 %v489_v61  ;;  %756 = vmatmul.mubr.bf16.vlgmr.msra.gmra.mrb[48].mxu1 %v489_v61  ;;  %7849 = vst [vmem:[#allocation29_spill] sm:$0xff] %v6817_v14  ;;  %v6829_v59 = vpop.f32.mrb[24].mxu1 }
 0x135   :  { %992 = vmatpush1.bf16.msra.mxu0 %v6632_v34  ;;  %1033 = vmatpush1.bf16.msra.mxu1 %v6589_v23  ;;  %7852 = vst [vmem:[#allocation32_spill] sm:$0xff] %v6829_v59  ;;  %v6831_v61 = vpop.f32.mrb[25].mxu1 }
 0x136   :  { %993 = vmatprep.subr.bf16.mxu0 %v6642_v36  ;;  %1034 = vmatprep.subr.bf16.mxu1 %v6604_v27  ;;  %7853 = vst [vmem:[#allocation33_spill] sm:$0xff] %v6831_v61  ;;  %v6833_v7 = vpop.f32.mrb[26].mxu1 }
 0x137   :  { %1023 = vmatprep.mubr.bf16.mxu0 %v7847_v3  ;;  %1064 = vmatprep.mubr.bf16.mxu1 %v7847_v3  ;;  %7854 = vst [vmem:[#allocation34_spill] sm:$0xff] %v6833_v7  ;;  %v6837_v13 = vpop.f32.mrb[27].mxu1 }
 0x138   :  { %7856 = vst [vmem:[#allocation36_spill] sm:$0xff] %v6837_v13  ;;  %v6845_v5 = vpop.f32.mrb[28].mxu1  ;;  %v6859_v13 = vpop.f32.mrb[15].mxu0 }
 0x139   :  { %994 = vmatpush1.bf16.msra.mxu0 %v6644_v37  ;;  %1035 = vmatpush1.bf16.msra.mxu1 %v6602_v26  ;;  %7860 = vst [vmem:[#allocation40_spill] sm:$0xff] %v6845_v5  ;;  %7867 = vst [vmem:[#allocation47_spill] sm:$0xff] %v6859_v13 }
 0x13a   :  { %995 = vmatprep.subr.bf16.mxu0 %v6648_v38  ;;  %1036 = vmatprep.subr.bf16.mxu1 %v6617_v30 }
 0x13d   :  { %996 = vmatpush1.bf16.msra.mxu0 %v6651_v39  ;;  %1037 = vmatpush1.bf16.msra.mxu1 %v6615_v29 }
 0x13e   :  { %997 = vmatprep.subr.bf16.mxu0 %v6656_v40  ;;  %1038 = vmatprep.subr.bf16.mxu1 %v6630_v33 }
 0x141   :  { %998 = vmatpush1.bf16.msra.mxu0 %v6658_v41  ;;  %1039 = vmatpush1.bf16.msra.mxu1 %v6628_v32 }
 0x142   :  { %999 = vmatprep.subr.bf16.mxu0 %v6664_v43  ;;  %1040 = vmatprep.subr.bf16.mxu1 %v6662_v42 }
 0x145   :  { %1000 = vmatpush1.bf16.msra.mxu0 %v6669_v45  ;;  %1041 = vmatpush1.bf16.msra.mxu1 %v6666_v44 }
 0x146   :  { %1001 = vmatprep.subr.bf16.mxu0 %v6677_v47  ;;  %1042 = vmatprep.subr.bf16.mxu1 %v6675_v46 }
 0x149   :  { %1002 = vmatpush1.bf16.msra.mxu0 %v6682_v49  ;;  %1043 = vmatpush1.bf16.msra.mxu1 %v6680_v48 }
 0x14a   :  { %1003 = vmatprep.subr.bf16.mxu0 %v6690_v51  ;;  %1044 = vmatprep.subr.bf16.mxu1 %v6688_v50 }
 0x14d   :  { %1004 = vmatpush1.bf16.msra.mxu0 %v6696_v53  ;;  %1045 = vmatpush1.bf16.msra.mxu1 %v6692_v52 }
 0x14e   :  { %1005 = vmatprep.subr.bf16.mxu0 %v6702_v54  ;;  %1046 = vmatprep.subr.bf16.mxu1 %v6704_v55 }
 0x151   :  { %1006 = vmatpush1.bf16.msra.mxu0 %v6707_v56  ;;  %1047 = vmatpush1.bf16.msra.mxu1 %v6709_v57 }
 0x152   :  { %1300 = vmatprep.subr.bf16.mxu0 %v6634_v35  ;;  %1341 = vmatprep.subr.bf16.mxu1 %v6591_v24  ;;  %v6847_v24 = vpop.f32.mrb[29].mxu1 }
 0x153   :  { %7861 = vst [vmem:[#allocation41_spill] sm:$0xff] %v6847_v24  ;;  %v6849_v2 = vpop.f32.mrb[30].mxu1 }
 0x154   :  { %7862 = vst [vmem:[#allocation42_spill] sm:$0xff] %v6849_v2  ;;  %v6853_v62 = vpop.f32.mrb[31].mxu1 }
 0x155   :  { %7864 = vst [vmem:[#allocation44_spill] sm:$0xff] %v6853_v62  ;;  %v6861_v7 = vpop.f32.mrb[32].mxu1 }
 0x156   :  { %7868 = vst [vmem:[#allocation48_spill] sm:$0xff] %v6861_v7  ;;  %v6863_v8 = vpop.f32.mrb[33].mxu1 }
 0x157   :  { %7869 = vst [vmem:[#allocation49_spill] sm:$0xff] %v6863_v8  ;;  %v6865_v6 = vpop.f32.mrb[34].mxu1 }
 0x158   :  { %7870 = vst [vmem:[#allocation50_spill] sm:$0xff] %v6865_v6  ;;  %v6867_v5 = vpop.f32.mrb[35].mxu1 }
 0x159   :  { %7871 = vst [vmem:[#allocation51_spill] sm:$0xff] %v6867_v5  ;;  %v6869_v24 = vpop.f32.mrb[36].mxu1 }
 0x15a   :  { %7872 = vst [vmem:[#allocation52_spill] sm:$0xff] %v6869_v24  ;;  %v6871_v2 = vpop.f32.mrb[37].mxu1 }
 0x15b   :  { %7873 = vst [vmem:[#allocation53_spill] sm:$0xff] %v6871_v2  ;;  %v6873_v0 = vpop.f32.mrb[38].mxu1 }
 0x15c   :  { %7874 = vst [vmem:[#allocation54_spill] sm:$0xff] %v6873_v0  ;;  %v6875_v62 = vpop.f32.mrb[39].mxu1  ;;  %v213_v0 = vadd.f32 %v6723_v63, %v6739_v11 }
 0x15d   :  { %7875 = vst [vmem:[#allocation55_spill] sm:$0xff] %v6875_v62  ;;  %v6877_v60 = vpop.f32.mrb[40].mxu1 }
 0x15e   :  { %7876 = vst [vmem:[#allocation56_spill] sm:$0xff] %v6877_v60  ;;  %v6879_v58 = vpop.f32.mrb[41].mxu1  ;;  %v326_v60 = vadd.f32 %v6768_v17, %v6761_v28 }
 0x15f   :  { %7877 = vst [vmem:[#allocation57_spill] sm:$0xff] %v6879_v58  ;;  %v6881_v13 = vpop.f32.mrb[42].mxu1  ;;  %v215_v58 = vadd.f32 %v6727_v1, %v6557_v10 }
 0x160   :  { %7878 = vst [vmem:[#allocation58_spill] sm:$0xff] %v6881_v13  ;;  %v6883_v7 = vpop.f32.mrb[43].mxu1 }
 0x161   :  { %7879 = vst [vmem:[#allocation59_spill] sm:$0xff] %v6883_v7  ;;  %v6885_v8 = vpop.f32.mrb[44].mxu1  ;;  %v328_v7 = vadd.f32 %v6770_v4, %v6764_v31 }
 0x162   :  { %7880 = vst [vmem:[#allocation60_spill] sm:$0xff] %v6885_v8  ;;  %v6887_v6 = vpop.f32.mrb[45].mxu1 }
 0x163   :  { %7881 = vst [vmem:[#allocation61_spill] sm:$0xff] %v6887_v6  ;;  %v6889_v5 = vpop.f32.mrb[46].mxu1 }
 0x164   :  { %7882 = vst [vmem:[#allocation62_spill] sm:$0xff] %v6889_v5  ;;  %v6891_v24 = vpop.f32.mrb[47].mxu1 }
 0x165   :  { %7883 = vst [vmem:[#allocation63_spill] sm:$0xff] %v6891_v24 }
 0x207   :  { %v716_v13 = vpop.f32.mrb[16].mxu0  ;;  %v757_v8 = vpop.f32.mrb[48].mxu1 }
 0x208   :  { %v764_v62 = vadd.f32 %v716_v13, %v213_v0  ;;  %v766_v6 = vadd.f32 %v757_v8, %v326_v60  ;;  %v718_v2 = vpop.f32.mrb[17].mxu0  ;;  %v759_v5 = vpop.f32.mrb[49].mxu1 }
 0x209   :  { %v765_v12 = vadd.f32 %v718_v2, %v215_v58  ;;  %v767_v24 = vadd.f32 %v759_v5, %v328_v7  ;;  %v720_v61 = vpop.f32.mrb[18].mxu0  ;;  %v761_v15 = vpop.f32.mrb[50].mxu1 }
 0x20a   :  { %v768_v63 = vmul.f32 0.5, %v764_v62  ;;  %v721_v59 = vpop.f32.mrb[19].mxu0  ;;  %v762_v21 = vpop.f32.mrb[51].mxu1 }
 0x20b   :  { %v772_v17 = vmul.f32 0.5, %v765_v12  ;;  %v777_v1 = vmul.f32 0.5, %v767_v24 }
 0x20c   :  { %6289 = vtanh.f32 %v768_v63 }
 0x20d   :  { %6291 = vtanh.f32 %v772_v17 }
 0x20e   :  { %6293 = vtanh.f32 %v766_v6 }
 0x20f   :  { %6295 = vtanh.f32 %v777_v1 }
 0x216   :  { %v6290_v14 = vpop.eup %6289 }
 0x217   :  { %v6292_v4 = vpop.eup %6291  ;;  %v770_v9 = vmul.f32 0.5, %v6290_v14 }
 0x218   :  { %v774_v22 = vmul.f32 0.5, %v6292_v4  ;;  %v6294_v0 = vpop.eup %6293 }
 0x219   :  { %v771_v60 = vadd.f32 0.5, %v770_v9  ;;  %v6296_v62 = vpop.eup %6295 }
 0x21a   :  { %v775_v8 = vadd.f32 0.5, %v774_v22  ;;  %v779_v12 = vmul.f32 0.5, %v6296_v62 }
 0x21b   :  { %v783_v58 = vmul.f32 %v6294_v0, %v771_v60 }
 0x21c   :  { %v782_v2 = vmul.f32 %v775_v8, %v6772_v18  ;;  %v780_v13 = vadd.f32 0.5, %v779_v12 }
 0x21e   :  { %v6902_v5 = vadd.f32 %v783_v58, %v782_v2 }
 0x220   :  { %6297 = vtanh.f32 %v6902_v5 }
 0x22a   :  { %v6298_v6 = vpop.eup %6297 }
 0x22b   :  { %v6905_v15 = vmul.f32 %v6298_v6, %v780_v13 }
 0x22d   :  { %v798_v7 = vpack.c.bf16 %v6905_v15, %v6905_v15 }
 0x22f   :  { %1024 = vmatmul.mubr.bf16.vlgmr.msra.gmra.mrb[20].mxu0 %v798_v7  ;;  %1065 = vmatmul.mubr.bf16.vlgmr.msra.gmra.mrb[52].mxu1 %v798_v7 }
 0x230   :  { %1301 = vmatpush1.bf16.msra.mxu0 %v6632_v34  ;;  %1342 = vmatpush1.bf16.msra.mxu1 %v6589_v23  ;;  %v332_v23 = vadd.f32 %v6807_v16, %v6761_v28 }
 0x231   :  { %1302 = vmatprep.subr.bf16.mxu0 %v6642_v36  ;;  %1343 = vmatprep.subr.bf16.mxu1 %v6604_v27  ;;  %v334_v27 = vadd.f32 %v6811_v20, %v6764_v31 }
 0x232   :  { %1332 = vmatprep.mubr.bf16.mxu0 %v7847_v3  ;;  %1373 = vmatprep.mubr.bf16.mxu1 %v7847_v3 }
 0x234   :  { %1303 = vmatpush1.bf16.msra.mxu0 %v6644_v37  ;;  %1344 = vmatpush1.bf16.msra.mxu1 %v6602_v26  ;;  %v219_v26 = vadd.f32 %v6815_v25, %v6739_v11 }
 0x235   :  { %1304 = vmatprep.subr.bf16.mxu0 %v6648_v38  ;;  %1345 = vmatprep.subr.bf16.mxu1 %v6617_v30 }
 0x238   :  { %1305 = vmatpush1.bf16.msra.mxu0 %v6651_v39  ;;  %1346 = vmatpush1.bf16.msra.mxu1 %v6615_v29  ;;  %v221_v29 = vadd.f32 %v6819_v19, %v6557_v10 }
 0x239   :  { %1306 = vmatprep.subr.bf16.mxu0 %v6656_v40  ;;  %1347 = vmatprep.subr.bf16.mxu1 %v6630_v33 }
 0x23c   :  { %1307 = vmatpush1.bf16.msra.mxu0 %v6658_v41  ;;  %1348 = vmatpush1.bf16.msra.mxu1 %v6628_v32 }
 0x23d   :  { %1308 = vmatprep.subr.bf16.mxu0 %v6664_v43  ;;  %1349 = vmatprep.subr.bf16.mxu1 %v6662_v42 }
 0x240   :  { %1309 = vmatpush1.bf16.msra.mxu0 %v6669_v45  ;;  %1350 = vmatpush1.bf16.msra.mxu1 %v6666_v44 }
 0x241   :  { %1310 = vmatprep.subr.bf16.mxu0 %v6677_v47  ;;  %1351 = vmatprep.subr.bf16.mxu1 %v6675_v46 }
 0x244   :  { %1311 = vmatpush1.bf16.msra.mxu0 %v6682_v49  ;;  %1352 = vmatpush1.bf16.msra.mxu1 %v6680_v48 }
 0x245   :  { %1312 = vmatprep.subr.bf16.mxu0 %v6690_v51  ;;  %1353 = vmatprep.subr.bf16.mxu1 %v6688_v50 }
 0x248   :  { %1313 = vmatpush1.bf16.msra.mxu0 %v6696_v53  ;;  %1354 = vmatpush1.bf16.msra.mxu1 %v6692_v52 }
 0x249   :  { %1314 = vmatprep.subr.bf16.mxu0 %v6702_v54  ;;  %1355 = vmatprep.subr.bf16.mxu1 %v6704_v55 }
 0x24c   :  { %1315 = vmatpush1.bf16.msra.mxu0 %v6707_v56  ;;  %1356 = vmatpush1.bf16.msra.mxu1 %v6709_v57 }
 0x24d   :  { %1609 = vmatprep.subr.bf16.mxu0 %v6634_v35 }
 0x302   :  { %v1025_v30 = vpop.f32.mrb[20].mxu0  ;;  %v1066_v32 = vpop.f32.mrb[52].mxu1 }
 0x303   :  { %v1073_v33 = vadd.f32 %v1025_v30, %v219_v26  ;;  %v1075_v18 = vadd.f32 %v1066_v32, %v332_v23  ;;  %v1027_v22 = vpop.f32.mrb[21].mxu0  ;;  %v1068_v14 = vpop.f32.mrb[53].mxu1 }
 0x304   :  { %v1074_v9 = vadd.f32 %v1027_v22, %v221_v29  ;;  %v1076_v35 = vadd.f32 %v1068_v14, %v334_v27  ;;  %v1029_v21 = vpop.f32.mrb[22].mxu0  ;;  %v1070_v59 = vpop.f32.mrb[54].mxu1 }
 0x305   :  { %v1077_v16 = vmul.f32 0.5, %v1073_v33  ;;  %v1030_v61 = vpop.f32.mrb[23].mxu0  ;;  %v1071_v24 = vpop.f32.mrb[55].mxu1 }
 0x306   :  { %v1081_v25 = vmul.f32 0.5, %v1074_v9  ;;  %v1086_v20 = vmul.f32 0.5, %v1076_v35 }
 0x307   :  { %6299 = vtanh.f32 %v1077_v16 }
 0x308   :  { %6301 = vtanh.f32 %v1081_v25 }
 0x309   :  { %6303 = vtanh.f32 %v1075_v18 }
 0x30a   :  { %6305 = vtanh.f32 %v1086_v20 }
 0x311   :  { %v6300_v63 = vpop.eup %6299 }
 0x312   :  { %v6302_v19 = vpop.eup %6301  ;;  %v1079_v17 = vmul.f32 0.5, %v6300_v63 }
 0x313   :  { %v1083_v1 = vmul.f32 0.5, %v6302_v19  ;;  %v6304_v60 = vpop.eup %6303 }
 0x314   :  { %v1080_v4 = vadd.f32 0.5, %v1079_v17  ;;  %v6306_v62 = vpop.eup %6305 }
 0x315   :  { %v1084_v0 = vadd.f32 0.5, %v1083_v1  ;;  %v1088_v12 = vmul.f32 0.5, %v6306_v62  ;;  %v7047_v62 = vld [vmem:[#allocation5 + $0x40] ss:$16 sps:$4 sm:$0xff]  }
 0x316   :  { %v1092_v8 = vmul.f32 %v6304_v60, %v1080_v4  ;;  %v7033_v60 = vld [vmem:[#allocation5 + $0x4] ss:$16 sps:$4 sm:$0xff]  }
 0x317   :  { %v1091_v58 = vmul.f32 %v1084_v0, %v6902_v5  ;;  %v1089_v13 = vadd.f32 0.5, %v1088_v12  ;;  %v7035_v0 = vld [vmem:[#allocation5] ss:$16 sps:$4 sm:$0xff]   ;;  %v7051_v12 = vld [vmem:[#allocation5 + $0x64] ss:$16 sps:$4 sm:$0xff]  }
 0x319   :  { %v6951_v2 = vadd.f32 %v1092_v8, %v1091_v58  ;;  %v7039_v8 = vld [vmem:[#allocation5 + $0x24] ss:$16 sps:$4 sm:$0xff]   ;;  %v7041_v58 = vld [vmem:[#allocation5 + $0x20] ss:$16 sps:$4 sm:$0xff]  }
 0x31b   :  { %6307 = vtanh.f32 %v6951_v2 }
 0x325   :  { %v6308_v6 = vpop.eup %6307 }
 0x326   :  { %v6954_v7 = vmul.f32 %v6308_v6, %v1089_v13  ;;  %v7053_v13 = vld [vmem:[#allocation5 + $0x60] ss:$16 sps:$4 sm:$0xff]   ;;  %v7057_v6 = vld [vmem:[#allocation5 + $0x84] ss:$16 sps:$4 sm:$0xff]  }
 0x328   :  { %v1107_v23 = vpack.c.bf16 %v6954_v7, %v6954_v7 }
 0x32a   :  { %1333 = vmatmul.mubr.bf16.vlgmr.msra.gmra.mrb[24].mxu0 %v1107_v23  ;;  %1374 = vmatmul.mubr.bf16.vlgmr.msra.gmra.mrb[56].mxu1 %v1107_v23  ;;  %v7059_v23 = vld [vmem:[#allocation5 + $0x8c] ss:$16 sps:$4 sm:$0xff]  }
 0x32b   :  { %1610 = vmatpush1.bf16.msra.mxu0 %v6632_v34  ;;  %1641 = vmatprep.mubr.bf16.mxu0 %v7847_v3  ;;  %v6975_v34 = vld [vmem:[#allocation5 + $0xc] ss:$16 sps:$4 sm:$0xff]  }
 0x32c   :  { %1611 = vmatprep.subr.bf16.mxu0 %v6642_v36  ;;  %1682 = vmatprep.mubr.bf16.mxu1 %v7847_v3  ;;  %v6977_v36 = vld [vmem:[#allocation5 + $0x8] ss:$16 sps:$4 sm:$0xff]  }
 0x32d   :  { %1650 = vmatprep.subr.bf16.mxu1 %v6975_v34 }
 0x32e   :  { %1651 = vmatpush1.bf16.msra.mxu1 %v6977_v36 }
 0x32f   :  { %1612 = vmatpush1.bf16.msra.mxu0 %v6644_v37  ;;  %v6981_v37 = vld [vmem:[#allocation5 + $0x2c] ss:$16 sps:$4 sm:$0xff]  }
 0x330   :  { %1613 = vmatprep.subr.bf16.mxu0 %v6648_v38  ;;  %v6983_v38 = vld [vmem:[#allocation5 + $0x28] ss:$16 sps:$4 sm:$0xff]   ;;  %1652 = vmatprep.subr.bf16.mxu1 %v6981_v37 }
 0x332   :  { %1653 = vmatpush1.bf16.msra.mxu1 %v6983_v38 }
 0x333   :  { %1614 = vmatpush1.bf16.msra.mxu0 %v6651_v39  ;;  %v6987_v39 = vld [vmem:[#allocation5 + $0x4c] ss:$16 sps:$4 sm:$0xff]  }
 0x334   :  { %1615 = vmatprep.subr.bf16.mxu0 %v6656_v40  ;;  %v6989_v40 = vld [vmem:[#allocation5 + $0x48] ss:$16 sps:$4 sm:$0xff]   ;;  %1654 = vmatprep.subr.bf16.mxu1 %v6987_v39 }
 0x336   :  { %1655 = vmatpush1.bf16.msra.mxu1 %v6989_v40 }
 0x337   :  { %1616 = vmatpush1.bf16.msra.mxu0 %v6658_v41  ;;  %v6993_v41 = vld [vmem:[#allocation5 + $0x6c] ss:$16 sps:$4 sm:$0xff]  }
 0x338   :  { %1617 = vmatprep.subr.bf16.mxu0 %v6664_v43  ;;  %v6995_v43 = vld [vmem:[#allocation5 + $0x68] ss:$16 sps:$4 sm:$0xff]   ;;  %1656 = vmatprep.subr.bf16.mxu1 %v6993_v41 }
 0x33a   :  { %1657 = vmatpush1.bf16.msra.mxu1 %v6995_v43 }
 0x33b   :  { %1618 = vmatpush1.bf16.msra.mxu0 %v6669_v45  ;;  %1658 = vmatprep.subr.bf16.mxu1 %v6662_v42  ;;  %v7884_v45 = vld [vmem:[#allocation28_spill] sm:$0xff]  ;;  %v7885_v42 = vld [vmem:[#allocation30_spill] sm:$0xff] }
 0x33c   :  { %1619 = vmatprep.subr.bf16.mxu0 %v6677_v47  ;;  %v336_v47 = vadd.f32 %v7884_v45, %v6761_v28  ;;  %v7061_v45 = vld [vmem:[#allocation5 + $0x80] ss:$16 sps:$4 sm:$0xff]  }
 0x33e   :  { %1659 = vmatpush1.bf16.msra.mxu1 %v6666_v44  ;;  %v223_v44 = vadd.f32 %v7885_v42, %v6739_v11  ;;  %v7069_v42 = vld [vmem:[#allocation5 + $0xa4] ss:$16 sps:$4 sm:$0xff]  }
 0x33f   :  { %1620 = vmatpush1.bf16.msra.mxu0 %v6682_v49  ;;  %1660 = vmatprep.subr.bf16.mxu1 %v6675_v46  ;;  %v7886_v46 = vld [vmem:[#allocation29_spill] sm:$0xff] }
 0x340   :  { %1621 = vmatprep.subr.bf16.mxu0 %v6690_v51  ;;  %v338_v49 = vadd.f32 %v7886_v46, %v6764_v31  ;;  %v7073_v46 = vld [vmem:[#allocation5 + $0xa0] ss:$16 sps:$4 sm:$0xff]  }
 0x342   :  { %1661 = vmatpush1.bf16.msra.mxu1 %v6680_v48  ;;  %v7887_v48 = vld [vmem:[#allocation31_spill] sm:$0xff] }
 0x343   :  { %1622 = vmatpush1.bf16.msra.mxu0 %v6696_v53  ;;  %1662 = vmatprep.subr.bf16.mxu1 %v6688_v50  ;;  %v225_v50 = vadd.f32 %v7887_v48, %v6557_v10  ;;  %v7081_v48 = vld [vmem:[#allocation5 + $0xc4] ss:$16 sps:$4 sm:$0xff]  }
 0x344   :  { %1623 = vmatprep.subr.bf16.mxu0 %v6702_v54 }
 0x346   :  { %1663 = vmatpush1.bf16.msra.mxu1 %v6692_v52 }
 0x347   :  { %1624 = vmatpush1.bf16.msra.mxu0 %v6707_v56  ;;  %1664 = vmatprep.subr.bf16.mxu1 %v6704_v55 }
 0x348   :  { %1918 = vmatprep.subr.bf16.mxu0 %v7033_v60 }
 0x34a   :  { %1665 = vmatpush1.bf16.msra.mxu1 %v6709_v57 }
 0x34b   :  { %1959 = vmatprep.subr.bf16.mxu1 %v6975_v34 }
 0x3fd   :  { %v1334_v51 = vpop.f32.mrb[24].mxu0  ;;  %v1375_v52 = vpop.f32.mrb[56].mxu1 }
 0x3fe   :  { %v1382_v53 = vadd.f32 %v1334_v51, %v223_v44  ;;  %v1384_v54 = vadd.f32 %v1375_v52, %v336_v47  ;;  %v1336_v55 = vpop.f32.mrb[25].mxu0  ;;  %v1377_v56 = vpop.f32.mrb[57].mxu1  ;;  %v7063_v47 = vld [vmem:[#allocation5 + $0x88] ss:$16 sps:$4 sm:$0xff]   ;;  %v7071_v44 = vld [vmem:[#allocation5 + $0xac] ss:$16 sps:$4 sm:$0xff]  }
 0x3ff   :  { %v1383_v57 = vadd.f32 %v1336_v55, %v225_v50  ;;  %v1385_v5 = vadd.f32 %v1377_v56, %v338_v49  ;;  %v1338_v26 = vpop.f32.mrb[26].mxu0  ;;  %v1379_v27 = vpop.f32.mrb[58].mxu1  ;;  %v7075_v49 = vld [vmem:[#allocation5 + $0xa8] ss:$16 sps:$4 sm:$0xff]   ;;  %v7083_v50 = vld [vmem:[#allocation5 + $0xcc] ss:$16 sps:$4 sm:$0xff]  }
 0x400   :  { %v1386_v29 = vmul.f32 0.5, %v1382_v53  ;;  %v1339_v30 = vpop.f32.mrb[27].mxu0  ;;  %v1380_v32 = vpop.f32.mrb[59].mxu1  ;;  %v7085_v51 = vld [vmem:[#allocation5 + $0xc0] ss:$16 sps:$4 sm:$0xff]  }
 0x401   :  { %v1390_v33 = vmul.f32 0.5, %v1383_v57  ;;  %v1395_v18 = vmul.f32 0.5, %v1385_v5  ;;  %v7087_v52 = vld [vmem:[#allocation5 + $0xc8] ss:$16 sps:$4 sm:$0xff]   ;;  %v7093_v53 = vld [vmem:[#allocation5 + $0xe4] ss:$16 sps:$4 sm:$0xff]  }
 0x402   :  { %6309 = vtanh.f32 %v1386_v29  ;;  %v7097_v55 = vld [vmem:[#allocation5 + $0xe0] ss:$16 sps:$4 sm:$0xff]   ;;  %v7099_v56 = vld [vmem:[#allocation5 + $0xe8] ss:$16 sps:$4 sm:$0xff]  }
 0x403   :  { %6311 = vtanh.f32 %v1390_v33  ;;  %v7888_v57 = vld [vmem:[#allocation32_spill] sm:$0xff]  ;;  %v7889_v26 = vld [vmem:[#allocation35_spill] sm:$0xff]  ;;  %v7890_v29 = vld [vmem:[#allocation33_spill] sm:$0xff] }
 0x404   :  { %6313 = vtanh.f32 %v1384_v54  ;;  %v7095_v54 = vld [vmem:[#allocation5 + $0xec] ss:$16 sps:$4 sm:$0xff]   ;;  %v342_v5 = vadd.f32 %v7888_v57, %v6761_v28  ;;  %v229_v27 = vadd.f32 %v7889_v26, %v6739_v11  ;;  %v344_v30 = vadd.f32 %v7890_v29, %v6764_v31  ;;  %v7891_v32 = vld [vmem:[#allocation37_spill] sm:$0xff] }
 0x405   :  { %6315 = vtanh.f32 %v1395_v18  ;;  %v231_v33 = vadd.f32 %v7891_v32, %v6557_v10 }
 0x40c   :  { %v6310_v22 = vpop.eup %6309 }
 0x40d   :  { %v6312_v14 = vpop.eup %6311  ;;  %v1388_v9 = vmul.f32 0.5, %v6310_v22 }
 0x40e   :  { %v1392_v35 = vmul.f32 0.5, %v6312_v14  ;;  %v6314_v59 = vpop.eup %6313 }
 0x40f   :  { %v1389_v21 = vadd.f32 0.5, %v1388_v9  ;;  %v6316_v20 = vpop.eup %6315 }
 0x410   :  { %v1393_v16 = vadd.f32 0.5, %v1392_v35  ;;  %v1397_v63 = vmul.f32 0.5, %v6316_v20 }
 0x411   :  { %v1401_v61 = vmul.f32 %v6314_v59, %v1389_v21 }
 0x412   :  { %v1400_v24 = vmul.f32 %v1393_v16, %v6951_v2  ;;  %v1398_v19 = vadd.f32 0.5, %v1397_v63  ;;  %v7045_v2 = vld [vmem:[#allocation5 + $0x44] ss:$16 sps:$4 sm:$0xff]  }
 0x414   :  { %v7017_v25 = vadd.f32 %v1401_v61, %v1400_v24 }
 0x416   :  { %6317 = vtanh.f32 %v7017_v25 }
 0x420   :  { %v6318_v17 = vpop.eup %6317 }
 0x421   :  { %v7020_v1 = vmul.f32 %v6318_v17, %v1398_v19 }
 0x423   :  { %v1416_v4 = vpack.c.bf16 %v7020_v1, %v7020_v1 }
 0x425   :  { %1642 = vmatmul.mubr.bf16.vlgmr.msra.gmra.mrb[28].mxu0 %v1416_v4  ;;  %1683 = vmatmul.mubr.bf16.vlgmr.msra.gmra.mrb[60].mxu1 %v1416_v4 }
 0x426   :  { %1960 = vmatpush1.bf16.msra.mxu1 %v6977_v36  ;;  %1950 = vmatprep.mubr.bf16.mxu0 %v7847_v3 }
 0x427   :  { %1961 = vmatprep.subr.bf16.mxu1 %v6981_v37  ;;  %1991 = vmatprep.mubr.bf16.mxu1 %v7847_v3 }
 0x428   :  { %1919 = vmatpush1.bf16.msra.mxu0 %v7035_v0 }
 0x429   :  { %1920 = vmatprep.subr.bf16.mxu0 %v7039_v8 }
 0x42a   :  { %1962 = vmatpush1.bf16.msra.mxu1 %v6983_v38 }
 0x42b   :  { %1963 = vmatprep.subr.bf16.mxu1 %v6987_v39 }
 0x42c   :  { %1921 = vmatpush1.bf16.msra.mxu0 %v7041_v58 }
 0x42d   :  { %1922 = vmatprep.subr.bf16.mxu0 %v7045_v2 }
 0x42e   :  { %1964 = vmatpush1.bf16.msra.mxu1 %v6989_v40 }
 0x42f   :  { %1965 = vmatprep.subr.bf16.mxu1 %v6993_v41 }
 0x430   :  { %1923 = vmatpush1.bf16.msra.mxu0 %v7047_v62 }
 0x431   :  { %1924 = vmatprep.subr.bf16.mxu0 %v7051_v12 }
 0x432   :  { %1966 = vmatpush1.bf16.msra.mxu1 %v6995_v43 }
 0x433   :  { %1967 = vmatprep.subr.bf16.mxu1 %v7059_v23 }
 0x434   :  { %1925 = vmatpush1.bf16.msra.mxu0 %v7053_v13 }
 0x435   :  { %1926 = vmatprep.subr.bf16.mxu0 %v7057_v6 }
 0x436   :  { %1968 = vmatpush1.bf16.msra.mxu1 %v7063_v47 }
 0x437   :  { %1969 = vmatprep.subr.bf16.mxu1 %v7071_v44 }
 0x438   :  { %1927 = vmatpush1.bf16.msra.mxu0 %v7061_v45 }
 0x439   :  { %1928 = vmatprep.subr.bf16.mxu0 %v7069_v42 }
 0x43a   :  { %1970 = vmatpush1.bf16.msra.mxu1 %v7075_v49 }
 0x43b   :  { %1971 = vmatprep.subr.bf16.mxu1 %v7083_v50 }
 0x43c   :  { %1929 = vmatpush1.bf16.msra.mxu0 %v7073_v46 }
 0x43d   :  { %1930 = vmatprep.subr.bf16.mxu0 %v7081_v48 }
 0x43e   :  { %1972 = vmatpush1.bf16.msra.mxu1 %v7087_v52 }
 0x43f   :  { %1973 = vmatprep.subr.bf16.mxu1 %v7095_v54 }
 0x440   :  { %1931 = vmatpush1.bf16.msra.mxu0 %v7085_v51 }
 0x441   :  { %1932 = vmatprep.subr.bf16.mxu0 %v7093_v53 }
 0x442   :  { %1974 = vmatpush1.bf16.msra.mxu1 %v7099_v56 }
 0x443   :  { %2268 = vmatprep.subr.bf16.mxu1 %v6975_v34 }
 0x444   :  { %1933 = vmatpush1.bf16.msra.mxu0 %v7097_v55 }
 0x445   :  { %2227 = vmatprep.subr.bf16.mxu0 %v7033_v60 }
 0x4f8   :  { %v1643_v18 = vpop.f32.mrb[28].mxu0  ;;  %v1684_v22 = vpop.f32.mrb[60].mxu1 }
 0x4f9   :  { %v1691_v14 = vadd.f32 %v1643_v18, %v229_v27  ;;  %v1693_v9 = vadd.f32 %v1684_v22, %v342_v5  ;;  %v1645_v35 = vpop.f32.mrb[29].mxu0  ;;  %v1686_v21 = vpop.f32.mrb[61].mxu1 }
 0x4fa   :  { %v1692_v59 = vadd.f32 %v1645_v35, %v231_v33  ;;  %v1694_v16 = vadd.f32 %v1686_v21, %v344_v30  ;;  %v1647_v61 = vpop.f32.mrb[30].mxu0  ;;  %v1688_v24 = vpop.f32.mrb[62].mxu1 }
 0x4fb   :  { %v1695_v20 = vmul.f32 0.5, %v1691_v14  ;;  %v1648_v63 = vpop.f32.mrb[31].mxu0  ;;  %v1689_v19 = vpop.f32.mrb[63].mxu1  ;;  %v7894_v24 = vld [vmem:[#allocation38_spill] sm:$0xff] }
 0x4fc   :  { %v1699_v17 = vmul.f32 0.5, %v1692_v59  ;;  %v1704_v4 = vmul.f32 0.5, %v1694_v16  ;;  %v7895_v63 = vld [vmem:[#allocation36_spill] sm:$0xff] }
 0x4fd   :  { %6319 = vtanh.f32 %v1695_v20  ;;  %v233_v20 = vadd.f32 %v7894_v24, %v6739_v11  ;;  %v348_v19 = vadd.f32 %v7895_v63, %v6764_v31 }
 0x4fe   :  { %6321 = vtanh.f32 %v1699_v17  ;;  %v7896_v17 = vld [vmem:[#allocation39_spill] sm:$0xff] }
 0x4ff   :  { %6323 = vtanh.f32 %v1693_v9 }
 0x500   :  { %6325 = vtanh.f32 %v1704_v4  ;;  %v235_v4 = vadd.f32 %v7896_v17, %v6557_v10 }
 0x507   :  { %v6320_v57 = vpop.eup %6319 }
 0x508   :  { %v6322_v26 = vpop.eup %6321  ;;  %v1697_v29 = vmul.f32 0.5, %v6320_v57 }
 0x509   :  { %v1701_v32 = vmul.f32 0.5, %v6322_v26  ;;  %v6324_v27 = vpop.eup %6323 }
 0x50a   :  { %v1698_v5 = vadd.f32 0.5, %v1697_v29  ;;  %v6326_v14 = vpop.eup %6325 }
 0x50b   :  { %v1702_v18 = vadd.f32 0.5, %v1701_v32  ;;  %v1706_v35 = vmul.f32 0.5, %v6326_v14 }
 0x50c   :  { %v1710_v33 = vmul.f32 %v6324_v27, %v1698_v5 }
 0x50d   :  { %v1709_v30 = vmul.f32 %v1702_v18, %v7017_v25  ;;  %v1707_v21 = vadd.f32 0.5, %v1706_v35  ;;  %v7893_v25 = vld [vmem:[#allocation34_spill] sm:$0xff] }
 0x50e   :  { %v346_v61 = vadd.f32 %v7893_v25, %v6761_v28 }
 0x50f   :  { %v7116_v22 = vadd.f32 %v1710_v33, %v1709_v30 }
 0x511   :  { %6327 = vtanh.f32 %v7116_v22 }
 0x51b   :  { %v6328_v9 = vpop.eup %6327 }
 0x51c   :  { %v7119_v59 = vmul.f32 %v6328_v9, %v1707_v21 }
 0x51e   :  { %7892 = vst [vmem:[#allocation28_spill] sm:$0xff] %v7119_v59  ;;  %v1725_v16 = vpack.c.bf16 %v7119_v59, %v7119_v59 }
 0x520   :  { %1951 = vmatmul.mubr.bf16.vlgmr.msra.gmra.mrb[32].mxu0 %v1725_v16  ;;  %1992 = vmatmul.mubr.bf16.vlgmr.msra.gmra.mrb[64].mxu1 %v1725_v16 }
 0x521   :  { %2228 = vmatpush1.bf16.msra.mxu0 %v7035_v0  ;;  %2269 = vmatpush1.bf16.msra.mxu1 %v6977_v36 }
 0x522   :  { %2229 = vmatprep.subr.bf16.mxu0 %v7039_v8  ;;  %2270 = vmatprep.subr.bf16.mxu1 %v6981_v37 }
 0x523   :  { %2259 = vmatprep.mubr.bf16.mxu0 %v7847_v3  ;;  %2300 = vmatprep.mubr.bf16.mxu1 %v7847_v3 }
 0x525   :  { %2230 = vmatpush1.bf16.msra.mxu0 %v7041_v58  ;;  %2271 = vmatpush1.bf16.msra.mxu1 %v6983_v38 }
 0x526   :  { %2231 = vmatprep.subr.bf16.mxu0 %v7045_v2  ;;  %2272 = vmatprep.subr.bf16.mxu1 %v6987_v39 }
 0x529   :  { %2232 = vmatpush1.bf16.msra.mxu0 %v7047_v62  ;;  %2273 = vmatpush1.bf16.msra.mxu1 %v6989_v40 }
 0x52a   :  { %2233 = vmatprep.subr.bf16.mxu0 %v7051_v12  ;;  %2274 = vmatprep.subr.bf16.mxu1 %v6993_v41 }
 0x52d   :  { %2234 = vmatpush1.bf16.msra.mxu0 %v7053_v13  ;;  %2275 = vmatpush1.bf16.msra.mxu1 %v6995_v43 }
 0x52e   :  { %2235 = vmatprep.subr.bf16.mxu0 %v7057_v6  ;;  %2276 = vmatprep.subr.bf16.mxu1 %v7059_v23 }
 0x531   :  { %2236 = vmatpush1.bf16.msra.mxu0 %v7061_v45  ;;  %2277 = vmatpush1.bf16.msra.mxu1 %v7063_v47 }
 0x532   :  { %2237 = vmatprep.subr.bf16.mxu0 %v7069_v42  ;;  %2278 = vmatprep.subr.bf16.mxu1 %v7071_v44 }
 0x535   :  { %2238 = vmatpush1.bf16.msra.mxu0 %v7073_v46  ;;  %2279 = vmatpush1.bf16.msra.mxu1 %v7075_v49 }
 0x536   :  { %2239 = vmatprep.subr.bf16.mxu0 %v7081_v48  ;;  %2280 = vmatprep.subr.bf16.mxu1 %v7083_v50 }
 0x539   :  { %2240 = vmatpush1.bf16.msra.mxu0 %v7085_v51  ;;  %2281 = vmatpush1.bf16.msra.mxu1 %v7087_v52 }
 0x53a   :  { %2241 = vmatprep.subr.bf16.mxu0 %v7093_v53  ;;  %2282 = vmatprep.subr.bf16.mxu1 %v7095_v54 }
 0x53d   :  { %2242 = vmatpush1.bf16.msra.mxu0 %v7097_v55  ;;  %2283 = vmatpush1.bf16.msra.mxu1 %v7099_v56 }
 0x53e   :  { %2536 = vmatprep.subr.bf16.mxu0 %v7033_v60  ;;  %2577 = vmatprep.subr.bf16.mxu1 %v6975_v34 }
 0x5f3   :  { %v1952_v57 = vpop.f32.mrb[32].mxu0  ;;  %v1993_v26 = vpop.f32.mrb[64].mxu1 }
 0x5f4   :  { %v2000_v29 = vadd.f32 %v1952_v57, %v233_v20  ;;  %v2002_v32 = vadd.f32 %v1993_v26, %v346_v61  ;;  %v1954_v5 = vpop.f32.mrb[33].mxu0  ;;  %v1995_v27 = vpop.f32.mrb[65].mxu1 }
 0x5f5   :  { %v2001_v18 = vadd.f32 %v1954_v5, %v235_v4  ;;  %v2003_v34 = vadd.f32 %v1995_v27, %v348_v19  ;;  %v1956_v33 = vpop.f32.mrb[34].mxu0  ;;  %v1997_v30 = vpop.f32.mrb[66].mxu1 }
 0x5f6   :  { %v2004_v14 = vmul.f32 0.5, %v2000_v29  ;;  %v1957_v35 = vpop.f32.mrb[35].mxu0  ;;  %v1998_v21 = vpop.f32.mrb[67].mxu1 }
 0x5f7   :  { %v2008_v9 = vmul.f32 0.5, %v2001_v18  ;;  %v2013_v16 = vmul.f32 0.5, %v2003_v34 }
 0x5f8   :  { %6329 = vtanh.f32 %v2004_v14 }
 0x5f9   :  { %6331 = vtanh.f32 %v2008_v9 }
 0x5fa   :  { %6333 = vtanh.f32 %v2002_v32 }
 0x5fb   :  { %6335 = vtanh.f32 %v2013_v16 }
 0x602   :  { %v6330_v25 = vpop.eup %6329 }
 0x603   :  { %v6332_v24 = vpop.eup %6331  ;;  %v2006_v63 = vmul.f32 0.5, %v6330_v25 }
 0x604   :  { %v2010_v17 = vmul.f32 0.5, %v6332_v24  ;;  %v6334_v20 = vpop.eup %6333 }
 0x605   :  { %v2007_v61 = vadd.f32 0.5, %v2006_v63  ;;  %v6336_v29 = vpop.eup %6335 }
 0x606   :  { %v2011_v57 = vadd.f32 0.5, %v2010_v17  ;;  %v2015_v5 = vmul.f32 0.5, %v6336_v29 }
 0x607   :  { %v2019_v4 = vmul.f32 %v6334_v20, %v2007_v61 }
 0x608   :  { %v2018_v19 = vmul.f32 %v2011_v57, %v7116_v22  ;;  %v2016_v27 = vadd.f32 0.5, %v2015_v5 }
 0x60a   :  { %v7166_v26 = vadd.f32 %v2019_v4, %v2018_v19 }
 0x60c   :  { %6337 = vtanh.f32 %v7166_v26 }
 0x616   :  { %v6338_v32 = vpop.eup %6337 }
 0x617   :  { %v7169_v18 = vmul.f32 %v6338_v32, %v2016_v27 }
 0x619   :  { %7897 = vst [vmem:[#allocation30_spill] sm:$0xff] %v7169_v18  ;;  %v2034_v34 = vpack.c.bf16 %v7169_v18, %v7169_v18 }
 0x61b   :  { %2260 = vmatmul.mubr.bf16.vlgmr.msra.gmra.mrb[36].mxu0 %v2034_v34  ;;  %2301 = vmatmul.mubr.bf16.vlgmr.msra.gmra.mrb[68].mxu1 %v2034_v34 }
 0x61c   :  { %2537 = vmatpush1.bf16.msra.mxu0 %v7035_v0  ;;  %2578 = vmatpush1.bf16.msra.mxu1 %v6977_v36  ;;  %v7898_v36 = vld [vmem:[#allocation40_spill] sm:$0xff] }
 0x61d   :  { %2538 = vmatprep.subr.bf16.mxu0 %v7039_v8  ;;  %2579 = vmatprep.subr.bf16.mxu1 %v6981_v37  ;;  %v352_v37 = vadd.f32 %v7898_v36, %v6761_v28 }
 0x61e   :  { %2568 = vmatprep.mubr.bf16.mxu0 %v7847_v3  ;;  %2609 = vmatprep.mubr.bf16.mxu1 %v7847_v3 }
 0x620   :  { %2539 = vmatpush1.bf16.msra.mxu0 %v7041_v58  ;;  %2580 = vmatpush1.bf16.msra.mxu1 %v6983_v38  ;;  %v7899_v38 = vld [vmem:[#allocation43_spill] sm:$0xff] }
 0x621   :  { %2540 = vmatprep.subr.bf16.mxu0 %v7045_v2  ;;  %2581 = vmatprep.subr.bf16.mxu1 %v6987_v39  ;;  %v239_v39 = vadd.f32 %v7899_v38, %v6739_v11 }
 0x624   :  { %2541 = vmatpush1.bf16.msra.mxu0 %v7047_v62  ;;  %2582 = vmatpush1.bf16.msra.mxu1 %v6989_v40  ;;  %v7900_v40 = vld [vmem:[#allocation41_spill] sm:$0xff] }
 0x625   :  { %2542 = vmatprep.subr.bf16.mxu0 %v7051_v12  ;;  %2583 = vmatprep.subr.bf16.mxu1 %v6993_v41  ;;  %v354_v41 = vadd.f32 %v7900_v40, %v6764_v31 }
 0x628   :  { %2543 = vmatpush1.bf16.msra.mxu0 %v7053_v13  ;;  %2584 = vmatpush1.bf16.msra.mxu1 %v6995_v43  ;;  %v7901_v43 = vld [vmem:[#allocation45_spill] sm:$0xff] }
 0x629   :  { %2544 = vmatprep.subr.bf16.mxu0 %v7057_v6  ;;  %2585 = vmatprep.subr.bf16.mxu1 %v7059_v23  ;;  %v241_v22 = vadd.f32 %v7901_v43, %v6557_v10 }
 0x62c   :  { %2545 = vmatpush1.bf16.msra.mxu0 %v7061_v45  ;;  %2586 = vmatpush1.bf16.msra.mxu1 %v7063_v47 }
 0x62d   :  { %2546 = vmatprep.subr.bf16.mxu0 %v7069_v42  ;;  %2587 = vmatprep.subr.bf16.mxu1 %v7071_v44 }
 0x630   :  { %2547 = vmatpush1.bf16.msra.mxu0 %v7073_v46  ;;  %2588 = vmatpush1.bf16.msra.mxu1 %v7075_v49 }
 0x631   :  { %2548 = vmatprep.subr.bf16.mxu0 %v7081_v48  ;;  %2589 = vmatprep.subr.bf16.mxu1 %v7083_v50 }
 0x634   :  { %2549 = vmatpush1.bf16.msra.mxu0 %v7085_v51  ;;  %2590 = vmatpush1.bf16.msra.mxu1 %v7087_v52 }
 0x635   :  { %2550 = vmatprep.subr.bf16.mxu0 %v7093_v53  ;;  %2591 = vmatprep.subr.bf16.mxu1 %v7095_v54 }
 0x638   :  { %2551 = vmatpush1.bf16.msra.mxu0 %v7097_v55  ;;  %2592 = vmatpush1.bf16.msra.mxu1 %v7099_v56 }
 0x639   :  { %2845 = vmatprep.subr.bf16.mxu0 %v7033_v60 }
 0x6ee   :  { %v2261_v33 = vpop.f32.mrb[36].mxu0  ;;  %v2302_v30 = vpop.f32.mrb[68].mxu1 }
 0x6ef   :  { %v2309_v14 = vadd.f32 %v2261_v33, %v239_v39  ;;  %v2311_v35 = vadd.f32 %v2302_v30, %v352_v37  ;;  %v2263_v21 = vpop.f32.mrb[37].mxu0  ;;  %v2304_v9 = vpop.f32.mrb[69].mxu1 }
 0x6f0   :  { %v2310_v16 = vadd.f32 %v2263_v21, %v241_v22  ;;  %v2312_v60 = vadd.f32 %v2304_v9, %v354_v41  ;;  %v2265_v25 = vpop.f32.mrb[38].mxu0  ;;  %v2306_v24 = vpop.f32.mrb[70].mxu1 }
 0x6f1   :  { %v2313_v63 = vmul.f32 0.5, %v2309_v14  ;;  %v2266_v17 = vpop.f32.mrb[39].mxu0  ;;  %v2307_v61 = vpop.f32.mrb[71].mxu1 }
 0x6f2   :  { %v2317_v20 = vmul.f32 0.5, %v2310_v16  ;;  %v2322_v57 = vmul.f32 0.5, %v2312_v60 }
 0x6f3   :  { %6339 = vtanh.f32 %v2313_v63 }
 0x6f4   :  { %6341 = vtanh.f32 %v2317_v20 }
 0x6f5   :  { %6343 = vtanh.f32 %v2311_v35 }
 0x6f6   :  { %6345 = vtanh.f32 %v2322_v57 }
 0x6fd   :  { %v6340_v4 = vpop.eup %6339 }
 0x6fe   :  { %v6342_v19 = vpop.eup %6341  ;;  %v2315_v29 = vmul.f32 0.5, %v6340_v4 }
 0x6ff   :  { %v2319_v5 = vmul.f32 0.5, %v6342_v19  ;;  %v6344_v32 = vpop.eup %6343 }
 0x700   :  { %v2316_v27 = vadd.f32 0.5, %v2315_v29  ;;  %v6346_v39 = vpop.eup %6345 }
 0x701   :  { %v2320_v34 = vadd.f32 0.5, %v2319_v5  ;;  %v2324_v40 = vmul.f32 0.5, %v6346_v39  ;;  %v7299_v39 = vld [vmem:[#allocation5] ss:$16 sps:$4 sm:$0xff]  }
 0x702   :  { %v2328_v36 = vmul.f32 %v6344_v32, %v2316_v27 }
 0x703   :  { %v2327_v37 = vmul.f32 %v2320_v34, %v7166_v26  ;;  %v2325_v41 = vadd.f32 0.5, %v2324_v40  ;;  %v7303_v40 = vld [vmem:[#allocation5 + $0x24] ss:$16 sps:$4 sm:$0xff]  }
 0x705   :  { %v7215_v38 = vadd.f32 %v2328_v36, %v2327_v37 }
 0x707   :  { %6347 = vtanh.f32 %v7215_v38 }
 0x711   :  { %v6348_v43 = vpop.eup %6347 }
 0x712   :  { %v7218_v22 = vmul.f32 %v6348_v43, %v2325_v41  ;;  %v7305_v41 = vld [vmem:[#allocation5 + $0x20] ss:$16 sps:$4 sm:$0xff]   ;;  %v7309_v43 = vld [vmem:[#allocation5 + $0x44] ss:$16 sps:$4 sm:$0xff]  }
 0x714   :  { %7902 = vst [vmem:[#allocation29_spill] sm:$0xff] %v7218_v22  ;;  %v2343_v33 = vpack.c.bf16 %v7218_v22, %v7218_v22 }
 0x716   :  { %2569 = vmatmul.mubr.bf16.vlgmr.msra.gmra.mrb[40].mxu0 %v2343_v33  ;;  %2610 = vmatmul.mubr.bf16.vlgmr.msra.gmra.mrb[72].mxu1 %v2343_v33  ;;  %v7311_v33 = vld [vmem:[#allocation5 + $0x40] ss:$16 sps:$4 sm:$0xff]  }
 0x717   :  { %2846 = vmatpush1.bf16.msra.mxu0 %v7035_v0  ;;  %2877 = vmatprep.mubr.bf16.mxu0 %v7847_v3  ;;  %v7239_v0 = vld [vmem:[#allocation5 + $0xc] ss:$16 sps:$4 sm:$0xff]  }
 0x718   :  { %2847 = vmatprep.subr.bf16.mxu0 %v7039_v8  ;;  %2918 = vmatprep.mubr.bf16.mxu1 %v7847_v3  ;;  %v7241_v8 = vld [vmem:[#allocation5 + $0x8] ss:$16 sps:$4 sm:$0xff]  }
 0x719   :  { %2886 = vmatprep.subr.bf16.mxu1 %v7239_v0 }
 0x71a   :  { %2887 = vmatpush1.bf16.msra.mxu1 %v7241_v8 }
 0x71b   :  { %2848 = vmatpush1.bf16.msra.mxu0 %v7041_v58  ;;  %v7245_v58 = vld [vmem:[#allocation5 + $0x2c] ss:$16 sps:$4 sm:$0xff]  }
 0x71c   :  { %2849 = vmatprep.subr.bf16.mxu0 %v7045_v2  ;;  %v7247_v2 = vld [vmem:[#allocation5 + $0x28] ss:$16 sps:$4 sm:$0xff]   ;;  %2888 = vmatprep.subr.bf16.mxu1 %v7245_v58 }
 0x71e   :  { %2889 = vmatpush1.bf16.msra.mxu1 %v7247_v2 }
 0x71f   :  { %2850 = vmatpush1.bf16.msra.mxu0 %v7047_v62  ;;  %v7251_v62 = vld [vmem:[#allocation5 + $0x4c] ss:$16 sps:$4 sm:$0xff]  }
 0x720   :  { %2851 = vmatprep.subr.bf16.mxu0 %v7051_v12  ;;  %v7253_v12 = vld [vmem:[#allocation5 + $0x48] ss:$16 sps:$4 sm:$0xff]   ;;  %2890 = vmatprep.subr.bf16.mxu1 %v7251_v62 }
 0x722   :  { %2891 = vmatpush1.bf16.msra.mxu1 %v7253_v12 }
 0x723   :  { %2852 = vmatpush1.bf16.msra.mxu0 %v7053_v13  ;;  %v7257_v13 = vld [vmem:[#allocation5 + $0x6c] ss:$16 sps:$4 sm:$0xff]  }
 0x724   :  { %2853 = vmatprep.subr.bf16.mxu0 %v7057_v6  ;;  %v7259_v6 = vld [vmem:[#allocation5 + $0x68] ss:$16 sps:$4 sm:$0xff]   ;;  %2892 = vmatprep.subr.bf16.mxu1 %v7257_v13 }
 0x726   :  { %2893 = vmatpush1.bf16.msra.mxu1 %v7259_v6 }
 0x727   :  { %2854 = vmatpush1.bf16.msra.mxu0 %v7061_v45  ;;  %2894 = vmatprep.subr.bf16.mxu1 %v7059_v23  ;;  %v7903_v45 = vld [vmem:[#allocation42_spill] sm:$0xff] }
 0x728   :  { %2855 = vmatprep.subr.bf16.mxu0 %v7069_v42  ;;  %v356_v42 = vadd.f32 %v7903_v45, %v6761_v28  ;;  %v7904_v23 = vld [vmem:[#allocation46_spill] sm:$0xff]  ;;  %v7315_v45 = vld [vmem:[#allocation5 + $0x64] ss:$16 sps:$4 sm:$0xff]  }
 0x72a   :  { %2895 = vmatpush1.bf16.msra.mxu1 %v7063_v47  ;;  %v243_v47 = vadd.f32 %v7904_v23, %v6739_v11  ;;  %v7321_v23 = vld [vmem:[#allocation5 + $0x84] ss:$16 sps:$4 sm:$0xff]  }
 0x72b   :  { %2856 = vmatpush1.bf16.msra.mxu0 %v7073_v46  ;;  %2896 = vmatprep.subr.bf16.mxu1 %v7071_v44  ;;  %v7905_v44 = vld [vmem:[#allocation44_spill] sm:$0xff] }
 0x72c   :  { %2857 = vmatprep.subr.bf16.mxu0 %v7081_v48  ;;  %v358_v46 = vadd.f32 %v7905_v44, %v6764_v31  ;;  %v7325_v44 = vld [vmem:[#allocation5 + $0x80] ss:$16 sps:$4 sm:$0xff]  }
 0x72e   :  { %2897 = vmatpush1.bf16.msra.mxu1 %v7075_v49  ;;  %v7906_v49 = vld [vmem:[#allocation47_spill] sm:$0xff] }
 0x72f   :  { %2858 = vmatpush1.bf16.msra.mxu0 %v7085_v51  ;;  %2898 = vmatprep.subr.bf16.mxu1 %v7083_v50  ;;  %v245_v48 = vadd.f32 %v7906_v49, %v6557_v10  ;;  %v7333_v49 = vld [vmem:[#allocation5 + $0xa4] ss:$16 sps:$4 sm:$0xff]  }
 0x730   :  { %2859 = vmatprep.subr.bf16.mxu0 %v7093_v53 }
 0x732   :  { %2899 = vmatpush1.bf16.msra.mxu1 %v7087_v52 }
 0x733   :  { %2860 = vmatpush1.bf16.msra.mxu0 %v7097_v55  ;;  %2900 = vmatprep.subr.bf16.mxu1 %v7095_v54 }
 0x736   :  { %2901 = vmatpush1.bf16.msra.mxu1 %v7099_v56 }
 0x737   :  { %3195 = vmatprep.subr.bf16.mxu1 %v7239_v0 }
 0x7e9   :  { %v2570_v50 = vpop.f32.mrb[40].mxu0  ;;  %v2611_v51 = vpop.f32.mrb[72].mxu1 }
 0x7ea   :  { %v2618_v52 = vadd.f32 %v2570_v50, %v243_v47  ;;  %v2620_v53 = vadd.f32 %v2611_v51, %v356_v42  ;;  %v2572_v54 = vpop.f32.mrb[41].mxu0  ;;  %v2613_v55 = vpop.f32.mrb[73].mxu1  ;;  %v7317_v42 = vld [vmem:[#allocation5 + $0x60] ss:$16 sps:$4 sm:$0xff]   ;;  %v7323_v47 = vld [vmem:[#allocation5 + $0x8c] ss:$16 sps:$4 sm:$0xff]  }
 0x7eb   :  { %v2619_v56 = vadd.f32 %v2572_v54, %v245_v48  ;;  %v2621_v26 = vadd.f32 %v2613_v55, %v358_v46  ;;  %v2574_v30 = vpop.f32.mrb[42].mxu0  ;;  %v2615_v14 = vpop.f32.mrb[74].mxu1  ;;  %v7327_v46 = vld [vmem:[#allocation5 + $0x88] ss:$16 sps:$4 sm:$0xff]   ;;  %v7335_v48 = vld [vmem:[#allocation5 + $0xac] ss:$16 sps:$4 sm:$0xff]  }
 0x7ec   :  { %v2622_v35 = vmul.f32 0.5, %v2618_v52  ;;  %v2575_v21 = vpop.f32.mrb[43].mxu0  ;;  %v2616_v9 = vpop.f32.mrb[75].mxu1  ;;  %v7337_v50 = vld [vmem:[#allocation5 + $0xa0] ss:$16 sps:$4 sm:$0xff]  }
 0x7ed   :  { %v2626_v16 = vmul.f32 0.5, %v2619_v56  ;;  %v2631_v60 = vmul.f32 0.5, %v2621_v26  ;;  %v7339_v51 = vld [vmem:[#allocation5 + $0xa8] ss:$16 sps:$4 sm:$0xff]   ;;  %v7345_v52 = vld [vmem:[#allocation5 + $0xc4] ss:$16 sps:$4 sm:$0xff]  }
 0x7ee   :  { %6349 = vtanh.f32 %v2622_v35  ;;  %v7349_v54 = vld [vmem:[#allocation5 + $0xc0] ss:$16 sps:$4 sm:$0xff]   ;;  %v7351_v55 = vld [vmem:[#allocation5 + $0xc8] ss:$16 sps:$4 sm:$0xff]   ;;  %v7357_v56 = vld [vmem:[#allocation5 + $0xe4] ss:$16 sps:$4 sm:$0xff]  }
 0x7ef   :  { %6351 = vtanh.f32 %v2626_v16  ;;  %v7359_v26 = vld [vmem:[#allocation5 + $0xec] ss:$16 sps:$4 sm:$0xff]   ;;  %v7361_v30 = vld [vmem:[#allocation5 + $0xe0] ss:$16 sps:$4 sm:$0xff]   ;;  %v7363_v14 = vld [vmem:[#allocation5 + $0xe8] ss:$16 sps:$4 sm:$0xff]  }
 0x7f0   :  { %6353 = vtanh.f32 %v2620_v53  ;;  %v7347_v53 = vld [vmem:[#allocation5 + $0xcc] ss:$16 sps:$4 sm:$0xff]   ;;  %v7908_v35 = vld [vmem:[#allocation11_spill] sm:$0xff] }
 0x7f1   :  { %6355 = vtanh.f32 %v2631_v60  ;;  %v249_v21 = vadd.f32 %v7908_v35, %v6739_v11  ;;  %v7909_v9 = vld [vmem:[#allocation48_spill] sm:$0xff] }
 0x7f2   :  { %v362_v16 = vadd.f32 %v7909_v9, %v6761_v28  ;;  %v7910_v60 = vld [vmem:[#allocation12_spill] sm:$0xff] }
 0x7f8   :  { %v6350_v25 = vpop.eup %6349 }
 0x7f9   :  { %v6352_v24 = vpop.eup %6351  ;;  %v2624_v63 = vmul.f32 0.5, %v6350_v25  ;;  %v251_v25 = vadd.f32 %v7910_v60, %v6557_v10 }
 0x7fa   :  { %v2628_v17 = vmul.f32 0.5, %v6352_v24  ;;  %v6354_v20 = vpop.eup %6353  ;;  %v7911_v24 = vld [vmem:[#allocation49_spill] sm:$0xff] }
 0x7fb   :  { %v2625_v61 = vadd.f32 0.5, %v2624_v63  ;;  %v6356_v5 = vpop.eup %6355  ;;  %v364_v63 = vadd.f32 %v7911_v24, %v6764_v31 }
 0x7fc   :  { %v2629_v57 = vadd.f32 0.5, %v2628_v17  ;;  %v2633_v27 = vmul.f32 0.5, %v6356_v5 }
 0x7fd   :  { %v2637_v4 = vmul.f32 %v6354_v20, %v2625_v61 }
 0x7fe   :  { %v2636_v19 = vmul.f32 %v2629_v57, %v7215_v38  ;;  %v2634_v32 = vadd.f32 0.5, %v2633_v27  ;;  %v7297_v38 = vld [vmem:[#allocation5 + $0x4] ss:$16 sps:$4 sm:$0xff]  }
 0x7ff   :  { %3154 = vmatprep.subr.bf16.mxu0 %v7297_v38 }
 0x800   :  { %v7281_v29 = vadd.f32 %v2637_v4, %v2636_v19 }
 0x802   :  { %6357 = vtanh.f32 %v7281_v29 }
 0x80c   :  { %v6358_v34 = vpop.eup %6357 }
 0x80d   :  { %v7284_v36 = vmul.f32 %v6358_v34, %v2634_v32 }
 0x80f   :  { %7907 = vst [vmem:[#allocation31_spill] sm:$0xff] %v7284_v36  ;;  %v2652_v37 = vpack.c.bf16 %v7284_v36, %v7284_v36 }
 0x811   :  { %2878 = vmatmul.mubr.bf16.vlgmr.msra.gmra.mrb[44].mxu0 %v2652_v37  ;;  %2919 = vmatmul.mubr.bf16.vlgmr.msra.gmra.mrb[76].mxu1 %v2652_v37 }
 0x812   :  { %3196 = vmatpush1.bf16.msra.mxu1 %v7241_v8  ;;  %3186 = vmatprep.mubr.bf16.mxu0 %v7847_v3 }
 0x813   :  { %3197 = vmatprep.subr.bf16.mxu1 %v7245_v58  ;;  %3227 = vmatprep.mubr.bf16.mxu1 %v7847_v3 }
 0x814   :  { %3155 = vmatpush1.bf16.msra.mxu0 %v7299_v39 }
 0x815   :  { %3156 = vmatprep.subr.bf16.mxu0 %v7303_v40 }
 0x816   :  { %3198 = vmatpush1.bf16.msra.mxu1 %v7247_v2 }
 0x817   :  { %3199 = vmatprep.subr.bf16.mxu1 %v7251_v62 }
 0x818   :  { %3157 = vmatpush1.bf16.msra.mxu0 %v7305_v41 }
 0x819   :  { %3158 = vmatprep.subr.bf16.mxu0 %v7309_v43 }
 0x81a   :  { %3200 = vmatpush1.bf16.msra.mxu1 %v7253_v12 }
 0x81b   :  { %3201 = vmatprep.subr.bf16.mxu1 %v7257_v13 }
 0x81c   :  { %3159 = vmatpush1.bf16.msra.mxu0 %v7311_v33 }
 0x81d   :  { %3160 = vmatprep.subr.bf16.mxu0 %v7315_v45 }
 0x81e   :  { %3202 = vmatpush1.bf16.msra.mxu1 %v7259_v6 }
 0x81f   :  { %3203 = vmatprep.subr.bf16.mxu1 %v7323_v47 }
 0x820   :  { %3161 = vmatpush1.bf16.msra.mxu0 %v7317_v42 }
 0x821   :  { %3162 = vmatprep.subr.bf16.mxu0 %v7321_v23 }
 0x822   :  { %3204 = vmatpush1.bf16.msra.mxu1 %v7327_v46 }
 0x823   :  { %3205 = vmatprep.subr.bf16.mxu1 %v7335_v48 }
 0x824   :  { %3163 = vmatpush1.bf16.msra.mxu0 %v7325_v44 }
 0x825   :  { %3164 = vmatprep.subr.bf16.mxu0 %v7333_v49 }
 0x826   :  { %3206 = vmatpush1.bf16.msra.mxu1 %v7339_v51 }
 0x827   :  { %3207 = vmatprep.subr.bf16.mxu1 %v7347_v53 }
 0x828   :  { %3165 = vmatpush1.bf16.msra.mxu0 %v7337_v50 }
 0x829   :  { %3166 = vmatprep.subr.bf16.mxu0 %v7345_v52 }
 0x82a   :  { %3208 = vmatpush1.bf16.msra.mxu1 %v7351_v55 }
 0x82b   :  { %3209 = vmatprep.subr.bf16.mxu1 %v7359_v26 }
 0x82c   :  { %3167 = vmatpush1.bf16.msra.mxu0 %v7349_v54 }
 0x82d   :  { %3168 = vmatprep.subr.bf16.mxu0 %v7357_v56 }
 0x82e   :  { %3210 = vmatpush1.bf16.msra.mxu1 %v7363_v14 }
 0x82f   :  { %3504 = vmatprep.subr.bf16.mxu1 %v7239_v0 }
 0x830   :  { %3169 = vmatpush1.bf16.msra.mxu0 %v7361_v30 }
 0x831   :  { %3463 = vmatprep.subr.bf16.mxu0 %v7297_v38 }
 0x8e4   :  { %v2879_v17 = vpop.f32.mrb[44].mxu0  ;;  %v2920_v61 = vpop.f32.mrb[76].mxu1 }
 0x8e5   :  { %v2927_v20 = vadd.f32 %v2879_v17, %v249_v21  ;;  %v2929_v57 = vadd.f32 %v2920_v61, %v362_v16  ;;  %v2881_v4 = vpop.f32.mrb[45].mxu0  ;;  %v2922_v19 = vpop.f32.mrb[77].mxu1 }
 0x8e6   :  { %v2928_v5 = vadd.f32 %v2881_v4, %v251_v25  ;;  %v2930_v27 = vadd.f32 %v2922_v19, %v364_v63  ;;  %v2883_v32 = vpop.f32.mrb[46].mxu0  ;;  %v2924_v34 = vpop.f32.mrb[78].mxu1 }
 0x8e7   :  { %v2931_v37 = vmul.f32 0.5, %v2927_v20  ;;  %v2884_v35 = vpop.f32.mrb[47].mxu0  ;;  %v2925_v36 = vpop.f32.mrb[79].mxu1  ;;  %v7916_v34 = vld [vmem:[#allocation51_spill] sm:$0xff] }
 0x8e8   :  { %v2935_v9 = vmul.f32 0.5, %v2928_v5  ;;  %v2940_v60 = vmul.f32 0.5, %v2930_v27  ;;  %v7915_v27 = vld [vmem:[#allocation14_spill] sm:$0xff] }
 0x8e9   :  { %6359 = vtanh.f32 %v2931_v37  ;;  %v255_v32 = vadd.f32 %v7915_v27, %v6557_v10  ;;  %v368_v37 = vadd.f32 %v7916_v34, %v6764_v31 }
 0x8ea   :  { %6361 = vtanh.f32 %v2935_v9 }
 0x8eb   :  { %6363 = vtanh.f32 %v2929_v57 }
 0x8ec   :  { %6365 = vtanh.f32 %v2940_v60 }
 0x8f3   :  { %v6360_v22 = vpop.eup %6359 }
 0x8f4   :  { %v6362_v24 = vpop.eup %6361  ;;  %v2933_v18 = vmul.f32 0.5, %v6360_v22 }
 0x8f5   :  { %v2937_v59 = vmul.f32 0.5, %v6362_v24  ;;  %v6364_v16 = vpop.eup %6363 }
 0x8f6   :  { %v2934_v21 = vadd.f32 0.5, %v2933_v18  ;;  %v6366_v36 = vpop.eup %6365 }
 0x8f7   :  { %v2938_v17 = vadd.f32 0.5, %v2937_v59  ;;  %v2942_v20 = vmul.f32 0.5, %v6366_v36  ;;  %v7913_v59 = vld [vmem:[#allocation13_spill] sm:$0xff] }
 0x8f8   :  { %v2946_v25 = vmul.f32 %v6364_v16, %v2934_v21  ;;  %v253_v18 = vadd.f32 %v7913_v59, %v6739_v11 }
 0x8f9   :  { %v2945_v63 = vmul.f32 %v2938_v17, %v7281_v29  ;;  %v2943_v4 = vadd.f32 0.5, %v2942_v20  ;;  %v7914_v29 = vld [vmem:[#allocation50_spill] sm:$0xff] }
 0x8fa   :  { %v366_v5 = vadd.f32 %v7914_v29, %v6761_v28 }
 0x8fb   :  { %v7380_v61 = vadd.f32 %v2946_v25, %v2945_v63 }
 0x8fd   :  { %6367 = vtanh.f32 %v7380_v61 }
 0x907   :  { %v6368_v57 = vpop.eup %6367 }
 0x908   :  { %v7383_v19 = vmul.f32 %v6368_v57, %v2943_v4 }
 0x90a   :  { %7912 = vst [vmem:[#allocation32_spill] sm:$0xff] %v7383_v19  ;;  %v2961_v22 = vpack.c.bf16 %v7383_v19, %v7383_v19 }
 0x90c   :  { %3187 = vmatmul.mubr.bf16.vlgmr.msra.gmra.mrb[48].mxu0 %v2961_v22  ;;  %3228 = vmatmul.mubr.bf16.vlgmr.msra.gmra.mrb[80].mxu1 %v2961_v22 }
 0x90d   :  { %3464 = vmatpush1.bf16.msra.mxu0 %v7299_v39  ;;  %3505 = vmatpush1.bf16.msra.mxu1 %v7241_v8 }
 0x90e   :  { %3465 = vmatprep.subr.bf16.mxu0 %v7303_v40  ;;  %3506 = vmatprep.subr.bf16.mxu1 %v7245_v58 }
 0x90f   :  { %3495 = vmatprep.mubr.bf16.mxu0 %v7847_v3  ;;  %3536 = vmatprep.mubr.bf16.mxu1 %v7847_v3 }
 0x911   :  { %3466 = vmatpush1.bf16.msra.mxu0 %v7305_v41  ;;  %3507 = vmatpush1.bf16.msra.mxu1 %v7247_v2 }
 0x912   :  { %3467 = vmatprep.subr.bf16.mxu0 %v7309_v43  ;;  %3508 = vmatprep.subr.bf16.mxu1 %v7251_v62 }
 0x915   :  { %3468 = vmatpush1.bf16.msra.mxu0 %v7311_v33  ;;  %3509 = vmatpush1.bf16.msra.mxu1 %v7253_v12 }
 0x916   :  { %3469 = vmatprep.subr.bf16.mxu0 %v7315_v45  ;;  %3510 = vmatprep.subr.bf16.mxu1 %v7257_v13 }
 0x919   :  { %3470 = vmatpush1.bf16.msra.mxu0 %v7317_v42  ;;  %3511 = vmatpush1.bf16.msra.mxu1 %v7259_v6 }
 0x91a   :  { %3471 = vmatprep.subr.bf16.mxu0 %v7321_v23  ;;  %3512 = vmatprep.subr.bf16.mxu1 %v7323_v47 }
 0x91d   :  { %3472 = vmatpush1.bf16.msra.mxu0 %v7325_v44  ;;  %3513 = vmatpush1.bf16.msra.mxu1 %v7327_v46 }
 0x91e   :  { %3473 = vmatprep.subr.bf16.mxu0 %v7333_v49  ;;  %3514 = vmatprep.subr.bf16.mxu1 %v7335_v48 }
 0x921   :  { %3474 = vmatpush1.bf16.msra.mxu0 %v7337_v50  ;;  %3515 = vmatpush1.bf16.msra.mxu1 %v7339_v51 }
 0x922   :  { %3475 = vmatprep.subr.bf16.mxu0 %v7345_v52  ;;  %3516 = vmatprep.subr.bf16.mxu1 %v7347_v53 }
 0x925   :  { %3476 = vmatpush1.bf16.msra.mxu0 %v7349_v54  ;;  %3517 = vmatpush1.bf16.msra.mxu1 %v7351_v55 }
 0x926   :  { %3477 = vmatprep.subr.bf16.mxu0 %v7357_v56  ;;  %3518 = vmatprep.subr.bf16.mxu1 %v7359_v26 }
 0x929   :  { %3478 = vmatpush1.bf16.msra.mxu0 %v7361_v30  ;;  %3519 = vmatpush1.bf16.msra.mxu1 %v7363_v14 }
 0x92a   :  { %3772 = vmatprep.subr.bf16.mxu0 %v7297_v38  ;;  %3813 = vmatprep.subr.bf16.mxu1 %v7239_v0 }
 0x9df   :  { %v3188_v35 = vpop.f32.mrb[48].mxu0  ;;  %v3229_v9 = vpop.f32.mrb[80].mxu1 }
 0x9e0   :  { %v3236_v60 = vadd.f32 %v3188_v35, %v253_v18  ;;  %v3238_v24 = vadd.f32 %v3229_v9, %v366_v5  ;;  %v3190_v21 = vpop.f32.mrb[49].mxu0  ;;  %v3231_v16 = vpop.f32.mrb[81].mxu1 }
 0x9e1   :  { %v3237_v17 = vadd.f32 %v3190_v21, %v255_v32  ;;  %v3239_v0 = vadd.f32 %v3231_v16, %v368_v37  ;;  %v3192_v25 = vpop.f32.mrb[50].mxu0  ;;  %v3233_v63 = vpop.f32.mrb[82].mxu1 }
 0x9e2   :  { %v3240_v36 = vmul.f32 0.5, %v3236_v60  ;;  %v3193_v20 = vpop.f32.mrb[51].mxu0  ;;  %v3234_v4 = vpop.f32.mrb[83].mxu1 }
 0x9e3   :  { %v3244_v57 = vmul.f32 0.5, %v3237_v17  ;;  %v3249_v22 = vmul.f32 0.5, %v3239_v0 }
 0x9e4   :  { %6369 = vtanh.f32 %v3240_v36 }
 0x9e5   :  { %6371 = vtanh.f32 %v3244_v57 }
 0x9e6   :  { %6373 = vtanh.f32 %v3238_v24 }
 0x9e7   :  { %6375 = vtanh.f32 %v3249_v22 }
 0x9ee   :  { %v6370_v59 = vpop.eup %6369 }
 0x9ef   :  { %v6372_v29 = vpop.eup %6371  ;;  %v3242_v27 = vmul.f32 0.5, %v6370_v59 }
 0x9f0   :  { %v3246_v34 = vmul.f32 0.5, %v6372_v29  ;;  %v6374_v5 = vpop.eup %6373 }
 0x9f1   :  { %v3243_v18 = vadd.f32 0.5, %v3242_v27  ;;  %v6376_v60 = vpop.eup %6375 }
 0x9f2   :  { %v3247_v35 = vadd.f32 0.5, %v3246_v34  ;;  %v3251_v21 = vmul.f32 0.5, %v6376_v60 }
 0x9f3   :  { %v3255_v32 = vmul.f32 %v6374_v5, %v3243_v18 }
 0x9f4   :  { %v3254_v37 = vmul.f32 %v3247_v35, %v7380_v61  ;;  %v3252_v16 = vadd.f32 0.5, %v3251_v21 }
 0x9f6   :  { %v7430_v9 = vadd.f32 %v3255_v32, %v3254_v37 }
 0x9f8   :  { %6377 = vtanh.f32 %v7430_v9 }
 0xa02   :  { %v6378_v24 = vpop.eup %6377 }
 0xa03   :  { %v7433_v17 = vmul.f32 %v6378_v24, %v3252_v16 }
 0xa05   :  { %7917 = vst [vmem:[#allocation35_spill] sm:$0xff] %v7433_v17  ;;  %v3270_v0 = vpack.c.bf16 %v7433_v17, %v7433_v17 }
 0xa07   :  { %3496 = vmatmul.mubr.bf16.vlgmr.msra.gmra.mrb[52].mxu0 %v3270_v0  ;;  %3537 = vmatmul.mubr.bf16.vlgmr.msra.gmra.mrb[84].mxu1 %v3270_v0 }
 0xa08   :  { %3773 = vmatpush1.bf16.msra.mxu0 %v7299_v39  ;;  %3814 = vmatpush1.bf16.msra.mxu1 %v7241_v8  ;;  %v7918_v8 = vld [vmem:[#allocation15_spill] sm:$0xff] }
 0xa09   :  { %3774 = vmatprep.subr.bf16.mxu0 %v7303_v40  ;;  %3815 = vmatprep.subr.bf16.mxu1 %v7245_v58  ;;  %v259_v58 = vadd.f32 %v7918_v8, %v6739_v11 }
 0xa0a   :  { %3804 = vmatprep.mubr.bf16.mxu0 %v7847_v3  ;;  %3845 = vmatprep.mubr.bf16.mxu1 %v7847_v3 }
 0xa0c   :  { %3775 = vmatpush1.bf16.msra.mxu0 %v7305_v41  ;;  %3816 = vmatpush1.bf16.msra.mxu1 %v7247_v2  ;;  %v7919_v2 = vld [vmem:[#allocation52_spill] sm:$0xff] }
 0xa0d   :  { %3776 = vmatprep.subr.bf16.mxu0 %v7309_v43  ;;  %3817 = vmatprep.subr.bf16.mxu1 %v7251_v62  ;;  %v372_v62 = vadd.f32 %v7919_v2, %v6761_v28 }
 0xa10   :  { %3777 = vmatpush1.bf16.msra.mxu0 %v7311_v33  ;;  %3818 = vmatpush1.bf16.msra.mxu1 %v7253_v12  ;;  %v7920_v12 = vld [vmem:[#allocation16_spill] sm:$0xff] }
 0xa11   :  { %3778 = vmatprep.subr.bf16.mxu0 %v7315_v45  ;;  %3819 = vmatprep.subr.bf16.mxu1 %v7257_v13  ;;  %v261_v13 = vadd.f32 %v7920_v12, %v6557_v10 }
 0xa14   :  { %3779 = vmatpush1.bf16.msra.mxu0 %v7317_v42  ;;  %3820 = vmatpush1.bf16.msra.mxu1 %v7259_v6  ;;  %v7921_v6 = vld [vmem:[#allocation53_spill] sm:$0xff] }
 0xa15   :  { %3780 = vmatprep.subr.bf16.mxu0 %v7321_v23  ;;  %3821 = vmatprep.subr.bf16.mxu1 %v7323_v47  ;;  %v374_v61 = vadd.f32 %v7921_v6, %v6764_v31 }
 0xa18   :  { %3781 = vmatpush1.bf16.msra.mxu0 %v7325_v44  ;;  %3822 = vmatpush1.bf16.msra.mxu1 %v7327_v46 }
 0xa19   :  { %3782 = vmatprep.subr.bf16.mxu0 %v7333_v49  ;;  %3823 = vmatprep.subr.bf16.mxu1 %v7335_v48 }
 0xa1c   :  { %3783 = vmatpush1.bf16.msra.mxu0 %v7337_v50  ;;  %3824 = vmatpush1.bf16.msra.mxu1 %v7339_v51 }
 0xa1d   :  { %3784 = vmatprep.subr.bf16.mxu0 %v7345_v52  ;;  %3825 = vmatprep.subr.bf16.mxu1 %v7347_v53 }
 0xa20   :  { %3785 = vmatpush1.bf16.msra.mxu0 %v7349_v54  ;;  %3826 = vmatpush1.bf16.msra.mxu1 %v7351_v55 }
 0xa21   :  { %3786 = vmatprep.subr.bf16.mxu0 %v7357_v56  ;;  %3827 = vmatprep.subr.bf16.mxu1 %v7359_v26 }
 0xa24   :  { %3787 = vmatpush1.bf16.msra.mxu0 %v7361_v30  ;;  %3828 = vmatpush1.bf16.msra.mxu1 %v7363_v14 }
 0xa25   :  { %4081 = vmatprep.subr.bf16.mxu0 %v7297_v38 }
 0xada   :  { %v3497_v25 = vpop.f32.mrb[52].mxu0  ;;  %v3538_v63 = vpop.f32.mrb[84].mxu1 }
 0xadb   :  { %v3545_v36 = vadd.f32 %v3497_v25, %v259_v58  ;;  %v3547_v20 = vadd.f32 %v3538_v63, %v372_v62  ;;  %v3499_v4 = vpop.f32.mrb[53].mxu0  ;;  %v3540_v57 = vpop.f32.mrb[85].mxu1 }
 0xadc   :  { %v3546_v22 = vadd.f32 %v3499_v4, %v261_v13  ;;  %v3548_v38 = vadd.f32 %v3540_v57, %v374_v61  ;;  %v3501_v59 = vpop.f32.mrb[54].mxu0  ;;  %v3542_v29 = vpop.f32.mrb[86].mxu1 }
 0xadd   :  { %v3549_v27 = vmul.f32 0.5, %v3545_v36  ;;  %v3502_v34 = vpop.f32.mrb[55].mxu0  ;;  %v3543_v18 = vpop.f32.mrb[87].mxu1 }
 0xade   :  { %v3553_v5 = vmul.f32 0.5, %v3546_v22  ;;  %v3558_v35 = vmul.f32 0.5, %v3548_v38 }
 0xadf   :  { %6379 = vtanh.f32 %v3549_v27 }
 0xae0   :  { %6381 = vtanh.f32 %v3553_v5 }
 0xae1   :  { %6383 = vtanh.f32 %v3547_v20 }
 0xae2   :  { %6385 = vtanh.f32 %v3558_v35 }
 0xae9   :  { %v6380_v32 = vpop.eup %6379 }
 0xaea   :  { %v6382_v37 = vpop.eup %6381  ;;  %v3551_v60 = vmul.f32 0.5, %v6380_v32 }
 0xaeb   :  { %v3555_v21 = vmul.f32 0.5, %v6382_v37  ;;  %v6384_v24 = vpop.eup %6383 }
 0xaec   :  { %v3552_v16 = vadd.f32 0.5, %v3551_v60  ;;  %v6386_v62 = vpop.eup %6385 }
 0xaed   :  { %v3556_v0 = vadd.f32 0.5, %v3555_v21  ;;  %v3560_v12 = vmul.f32 0.5, %v6386_v62  ;;  %v7563_v62 = vld [vmem:[#allocation5] ss:$16 sps:$4 sm:$0xff]  }
 0xaee   :  { %v3564_v8 = vmul.f32 %v6384_v24, %v3552_v16 }
 0xaef   :  { %v3563_v58 = vmul.f32 %v3556_v0, %v7430_v9  ;;  %v3561_v13 = vadd.f32 0.5, %v3560_v12  ;;  %v7567_v12 = vld [vmem:[#allocation5 + $0x24] ss:$16 sps:$4 sm:$0xff]  }
 0xaf1   :  { %v7479_v2 = vadd.f32 %v3564_v8, %v3563_v58 }
 0xaf3   :  { %6387 = vtanh.f32 %v7479_v2 }
 0xafd   :  { %v6388_v6 = vpop.eup %6387 }
 0xafe   :  { %v7482_v61 = vmul.f32 %v6388_v6, %v3561_v13  ;;  %v7569_v13 = vld [vmem:[#allocation5 + $0x20] ss:$16 sps:$4 sm:$0xff]   ;;  %v7573_v6 = vld [vmem:[#allocation5 + $0x44] ss:$16 sps:$4 sm:$0xff]  }
 0xb00   :  { %7922 = vst [vmem:[#allocation33_spill] sm:$0xff] %v7482_v61  ;;  %v3579_v25 = vpack.c.bf16 %v7482_v61, %v7482_v61 }
 0xb02   :  { %3805 = vmatmul.mubr.bf16.vlgmr.msra.gmra.mrb[56].mxu0 %v3579_v25  ;;  %3846 = vmatmul.mubr.bf16.vlgmr.msra.gmra.mrb[88].mxu1 %v3579_v25  ;;  %v7575_v25 = vld [vmem:[#allocation5 + $0x40] ss:$16 sps:$4 sm:$0xff]  }
 0xb03   :  { %4082 = vmatpush1.bf16.msra.mxu0 %v7299_v39  ;;  %4113 = vmatprep.mubr.bf16.mxu0 %v7847_v3  ;;  %v7503_v39 = vld [vmem:[#allocation5 + $0xc] ss:$16 sps:$4 sm:$0xff]  }
 0xb04   :  { %4083 = vmatprep.subr.bf16.mxu0 %v7303_v40  ;;  %4154 = vmatprep.mubr.bf16.mxu1 %v7847_v3  ;;  %v7505_v40 = vld [vmem:[#allocation5 + $0x8] ss:$16 sps:$4 sm:$0xff]  }
 0xb05   :  { %4122 = vmatprep.subr.bf16.mxu1 %v7503_v39 }
 0xb06   :  { %4123 = vmatpush1.bf16.msra.mxu1 %v7505_v40 }
 0xb07   :  { %4084 = vmatpush1.bf16.msra.mxu0 %v7305_v41  ;;  %v7509_v41 = vld [vmem:[#allocation5 + $0x2c] ss:$16 sps:$4 sm:$0xff]  }
 0xb08   :  { %4085 = vmatprep.subr.bf16.mxu0 %v7309_v43  ;;  %v7511_v43 = vld [vmem:[#allocation5 + $0x28] ss:$16 sps:$4 sm:$0xff]   ;;  %4124 = vmatprep.subr.bf16.mxu1 %v7509_v41 }
 0xb0a   :  { %4125 = vmatpush1.bf16.msra.mxu1 %v7511_v43 }
 0xb0b   :  { %4086 = vmatpush1.bf16.msra.mxu0 %v7311_v33  ;;  %v7515_v33 = vld [vmem:[#allocation5 + $0x4c] ss:$16 sps:$4 sm:$0xff]  }
 0xb0c   :  { %4087 = vmatprep.subr.bf16.mxu0 %v7315_v45  ;;  %v7517_v45 = vld [vmem:[#allocation5 + $0x48] ss:$16 sps:$4 sm:$0xff]   ;;  %4126 = vmatprep.subr.bf16.mxu1 %v7515_v33 }
 0xb0e   :  { %4127 = vmatpush1.bf16.msra.mxu1 %v7517_v45 }
 0xb0f   :  { %4088 = vmatpush1.bf16.msra.mxu0 %v7317_v42  ;;  %v7521_v42 = vld [vmem:[#allocation5 + $0x6c] ss:$16 sps:$4 sm:$0xff]  }
 0xb10   :  { %4089 = vmatprep.subr.bf16.mxu0 %v7321_v23  ;;  %v7523_v23 = vld [vmem:[#allocation5 + $0x68] ss:$16 sps:$4 sm:$0xff]   ;;  %4128 = vmatprep.subr.bf16.mxu1 %v7521_v42 }
 0xb12   :  { %4129 = vmatpush1.bf16.msra.mxu1 %v7523_v23 }
 0xb13   :  { %4090 = vmatpush1.bf16.msra.mxu0 %v7325_v44  ;;  %4130 = vmatprep.subr.bf16.mxu1 %v7323_v47  ;;  %v7923_v44 = vld [vmem:[#allocation17_spill] sm:$0xff]  ;;  %v7924_v47 = vld [vmem:[#allocation54_spill] sm:$0xff] }
 0xb14   :  { %4091 = vmatprep.subr.bf16.mxu0 %v7333_v49  ;;  %v263_v49 = vadd.f32 %v7923_v44, %v6739_v11  ;;  %v7579_v44 = vld [vmem:[#allocation5 + $0x64] ss:$16 sps:$4 sm:$0xff]  }
 0xb16   :  { %4131 = vmatpush1.bf16.msra.mxu1 %v7327_v46  ;;  %v376_v46 = vadd.f32 %v7924_v47, %v6761_v28  ;;  %v7585_v47 = vld [vmem:[#allocation5 + $0x84] ss:$16 sps:$4 sm:$0xff]  }
 0xb17   :  { %4092 = vmatpush1.bf16.msra.mxu0 %v7337_v50  ;;  %4132 = vmatprep.subr.bf16.mxu1 %v7335_v48  ;;  %v7925_v48 = vld [vmem:[#allocation18_spill] sm:$0xff] }
 0xb18   :  { %4093 = vmatprep.subr.bf16.mxu0 %v7345_v52  ;;  %v265_v50 = vadd.f32 %v7925_v48, %v6557_v10  ;;  %v7589_v48 = vld [vmem:[#allocation5 + $0x80] ss:$16 sps:$4 sm:$0xff]  }
 0xb1a   :  { %4133 = vmatpush1.bf16.msra.mxu1 %v7339_v51  ;;  %v7926_v51 = vld [vmem:[#allocation55_spill] sm:$0xff] }
 0xb1b   :  { %4094 = vmatpush1.bf16.msra.mxu0 %v7349_v54  ;;  %4134 = vmatprep.subr.bf16.mxu1 %v7347_v53  ;;  %v378_v52 = vadd.f32 %v7926_v51, %v6764_v31  ;;  %v7597_v51 = vld [vmem:[#allocation5 + $0xa4] ss:$16 sps:$4 sm:$0xff]  }
 0xb1c   :  { %4095 = vmatprep.subr.bf16.mxu0 %v7357_v56 }
 0xb1e   :  { %4135 = vmatpush1.bf16.msra.mxu1 %v7351_v55 }
 0xb1f   :  { %4096 = vmatpush1.bf16.msra.mxu0 %v7361_v30  ;;  %4136 = vmatprep.subr.bf16.mxu1 %v7359_v26 }
 0xb22   :  { %4137 = vmatpush1.bf16.msra.mxu1 %v7363_v14 }
 0xb23   :  { %4431 = vmatprep.subr.bf16.mxu1 %v7503_v39 }
 0xbd5   :  { %v3806_v53 = vpop.f32.mrb[56].mxu0  ;;  %v3847_v54 = vpop.f32.mrb[88].mxu1 }
 0xbd6   :  { %v3854_v55 = vadd.f32 %v3806_v53, %v263_v49  ;;  %v3856_v56 = vadd.f32 %v3847_v54, %v376_v46  ;;  %v3808_v26 = vpop.f32.mrb[57].mxu0  ;;  %v3849_v30 = vpop.f32.mrb[89].mxu1  ;;  %v7581_v49 = vld [vmem:[#allocation5 + $0x60] ss:$16 sps:$4 sm:$0xff]   ;;  %v7587_v46 = vld [vmem:[#allocation5 + $0x8c] ss:$16 sps:$4 sm:$0xff]  }
 0xbd7   :  { %v3855_v14 = vadd.f32 %v3808_v26, %v265_v50  ;;  %v3857_v9 = vadd.f32 %v3849_v30, %v378_v52  ;;  %v3810_v63 = vpop.f32.mrb[58].mxu0  ;;  %v3851_v36 = vpop.f32.mrb[90].mxu1  ;;  %v7591_v50 = vld [vmem:[#allocation5 + $0x88] ss:$16 sps:$4 sm:$0xff]   ;;  %v7599_v52 = vld [vmem:[#allocation5 + $0xac] ss:$16 sps:$4 sm:$0xff]  }
 0xbd8   :  { %v3858_v20 = vmul.f32 0.5, %v3854_v55  ;;  %v3811_v4 = vpop.f32.mrb[59].mxu0  ;;  %v3852_v57 = vpop.f32.mrb[91].mxu1  ;;  %v7601_v53 = vld [vmem:[#allocation5 + $0xa0] ss:$16 sps:$4 sm:$0xff]  }
 0xbd9   :  { %v3862_v22 = vmul.f32 0.5, %v3855_v14  ;;  %v3867_v38 = vmul.f32 0.5, %v3857_v9  ;;  %v7603_v54 = vld [vmem:[#allocation5 + $0xa8] ss:$16 sps:$4 sm:$0xff]   ;;  %v7609_v55 = vld [vmem:[#allocation5 + $0xc4] ss:$16 sps:$4 sm:$0xff]  }
 0xbda   :  { %6389 = vtanh.f32 %v3858_v20  ;;  %v7613_v26 = vld [vmem:[#allocation5 + $0xc0] ss:$16 sps:$4 sm:$0xff]   ;;  %v7615_v30 = vld [vmem:[#allocation5 + $0xc8] ss:$16 sps:$4 sm:$0xff]   ;;  %v7621_v14 = vld [vmem:[#allocation5 + $0xe4] ss:$16 sps:$4 sm:$0xff]  }
 0xbdb   :  { %6391 = vtanh.f32 %v3862_v22  ;;  %v7623_v9 = vld [vmem:[#allocation5 + $0xec] ss:$16 sps:$4 sm:$0xff]   ;;  %v7625_v63 = vld [vmem:[#allocation5 + $0xe0] ss:$16 sps:$4 sm:$0xff]   ;;  %v7627_v36 = vld [vmem:[#allocation5 + $0xe8] ss:$16 sps:$4 sm:$0xff]  }
 0xbdc   :  { %6393 = vtanh.f32 %v3856_v56  ;;  %v7611_v56 = vld [vmem:[#allocation5 + $0xcc] ss:$16 sps:$4 sm:$0xff]   ;;  %v7928_v20 = vld [vmem:[#allocation19_spill] sm:$0xff] }
 0xbdd   :  { %6395 = vtanh.f32 %v3867_v38  ;;  %v269_v4 = vadd.f32 %v7928_v20, %v6739_v11  ;;  %v7929_v57 = vld [vmem:[#allocation56_spill] sm:$0xff] }
 0xbde   :  { %v382_v22 = vadd.f32 %v7929_v57, %v6761_v28  ;;  %v7930_v38 = vld [vmem:[#allocation20_spill] sm:$0xff] }
 0xbe4   :  { %v6390_v59 = vpop.eup %6389 }
 0xbe5   :  { %v6392_v29 = vpop.eup %6391  ;;  %v3860_v27 = vmul.f32 0.5, %v6390_v59  ;;  %v271_v59 = vadd.f32 %v7930_v38, %v6557_v10 }
 0xbe6   :  { %v3864_v34 = vmul.f32 0.5, %v6392_v29  ;;  %v6394_v5 = vpop.eup %6393  ;;  %v7931_v29 = vld [vmem:[#allocation57_spill] sm:$0xff] }
 0xbe7   :  { %v3861_v18 = vadd.f32 0.5, %v3860_v27  ;;  %v6396_v21 = vpop.eup %6395  ;;  %v384_v27 = vadd.f32 %v7931_v29, %v6764_v31 }
 0xbe8   :  { %v3865_v35 = vadd.f32 0.5, %v3864_v34  ;;  %v3869_v16 = vmul.f32 0.5, %v6396_v21 }
 0xbe9   :  { %v3873_v32 = vmul.f32 %v6394_v5, %v3861_v18 }
 0xbea   :  { %v3872_v37 = vmul.f32 %v3865_v35, %v7479_v2  ;;  %v3870_v24 = vadd.f32 0.5, %v3869_v16  ;;  %v7561_v2 = vld [vmem:[#allocation5 + $0x4] ss:$16 sps:$4 sm:$0xff]  }
 0xbeb   :  { %4390 = vmatprep.subr.bf16.mxu0 %v7561_v2 }
 0xbec   :  { %v7545_v60 = vadd.f32 %v3873_v32, %v3872_v37 }
 0xbee   :  { %6397 = vtanh.f32 %v7545_v60 }
 0xbf8   :  { %v6398_v0 = vpop.eup %6397 }
 0xbf9   :  { %v7548_v8 = vmul.f32 %v6398_v0, %v3870_v24 }
 0xbfb   :  { %7927 = vst [vmem:[#allocation37_spill] sm:$0xff] %v7548_v8  ;;  %v3888_v58 = vpack.c.bf16 %v7548_v8, %v7548_v8 }
 0xbfd   :  { %4114 = vmatmul.mubr.bf16.vlgmr.msra.gmra.mrb[60].mxu0 %v3888_v58  ;;  %4155 = vmatmul.mubr.bf16.vlgmr.msra.gmra.mrb[92].mxu1 %v3888_v58 }
 0xbfe   :  { %4432 = vmatpush1.bf16.msra.mxu1 %v7505_v40  ;;  %4422 = vmatprep.mubr.bf16.mxu0 %v7847_v3 }
 0xbff   :  { %4433 = vmatprep.subr.bf16.mxu1 %v7509_v41  ;;  %4463 = vmatprep.mubr.bf16.mxu1 %v7847_v3 }
 0xc00   :  { %4391 = vmatpush1.bf16.msra.mxu0 %v7563_v62 }
 0xc01   :  { %4392 = vmatprep.subr.bf16.mxu0 %v7567_v12 }
 0xc02   :  { %4434 = vmatpush1.bf16.msra.mxu1 %v7511_v43 }
 0xc03   :  { %4435 = vmatprep.subr.bf16.mxu1 %v7515_v33 }
 0xc04   :  { %4393 = vmatpush1.bf16.msra.mxu0 %v7569_v13 }
 0xc05   :  { %4394 = vmatprep.subr.bf16.mxu0 %v7573_v6 }
 0xc06   :  { %4436 = vmatpush1.bf16.msra.mxu1 %v7517_v45 }
 0xc07   :  { %4437 = vmatprep.subr.bf16.mxu1 %v7521_v42 }
 0xc08   :  { %4395 = vmatpush1.bf16.msra.mxu0 %v7575_v25 }
 0xc09   :  { %4396 = vmatprep.subr.bf16.mxu0 %v7579_v44 }
 0xc0a   :  { %4438 = vmatpush1.bf16.msra.mxu1 %v7523_v23 }
 0xc0b   :  { %4439 = vmatprep.subr.bf16.mxu1 %v7587_v46 }
 0xc0c   :  { %4397 = vmatpush1.bf16.msra.mxu0 %v7581_v49 }
 0xc0d   :  { %4398 = vmatprep.subr.bf16.mxu0 %v7585_v47 }
 0xc0e   :  { %4440 = vmatpush1.bf16.msra.mxu1 %v7591_v50 }
 0xc0f   :  { %4441 = vmatprep.subr.bf16.mxu1 %v7599_v52 }
 0xc10   :  { %4399 = vmatpush1.bf16.msra.mxu0 %v7589_v48 }
 0xc11   :  { %4400 = vmatprep.subr.bf16.mxu0 %v7597_v51 }
 0xc12   :  { %4442 = vmatpush1.bf16.msra.mxu1 %v7603_v54 }
 0xc13   :  { %4443 = vmatprep.subr.bf16.mxu1 %v7611_v56 }
 0xc14   :  { %4401 = vmatpush1.bf16.msra.mxu0 %v7601_v53 }
 0xc15   :  { %4402 = vmatprep.subr.bf16.mxu0 %v7609_v55 }
 0xc16   :  { %4444 = vmatpush1.bf16.msra.mxu1 %v7615_v30 }
 0xc17   :  { %4445 = vmatprep.subr.bf16.mxu1 %v7623_v9 }
 0xc18   :  { %4403 = vmatpush1.bf16.msra.mxu0 %v7613_v26 }
 0xc19   :  { %4404 = vmatprep.subr.bf16.mxu0 %v7621_v14 }
 0xc1a   :  { %4446 = vmatpush1.bf16.msra.mxu1 %v7627_v36 }
 0xc1b   :  { %4740 = vmatprep.subr.bf16.mxu1 %v7503_v39 }
 0xc1c   :  { %4405 = vmatpush1.bf16.msra.mxu0 %v7625_v63 }
 0xc1d   :  { %4699 = vmatprep.subr.bf16.mxu0 %v7561_v2 }
 0xcd0   :  { %v4115_v34 = vpop.f32.mrb[60].mxu0  ;;  %v4156_v18 = vpop.f32.mrb[92].mxu1 }
 0xcd1   :  { %v4163_v5 = vadd.f32 %v4115_v34, %v269_v4  ;;  %v4165_v35 = vadd.f32 %v4156_v18, %v382_v22  ;;  %v4117_v32 = vpop.f32.mrb[61].mxu0  ;;  %v4158_v37 = vpop.f32.mrb[93].mxu1 }
 0xcd2   :  { %v4164_v21 = vadd.f32 %v4117_v32, %v271_v59  ;;  %v4166_v16 = vadd.f32 %v4158_v37, %v384_v27  ;;  %v4119_v24 = vpop.f32.mrb[62].mxu0  ;;  %v4160_v0 = vpop.f32.mrb[94].mxu1 }
 0xcd3   :  { %v4167_v58 = vmul.f32 0.5, %v4163_v5  ;;  %v4120_v20 = vpop.f32.mrb[63].mxu0  ;;  %v4161_v8 = vpop.f32.mrb[95].mxu1  ;;  %v7935_v0 = vld [vmem:[#allocation59_spill] sm:$0xff] }
 0xcd4   :  { %v4171_v57 = vmul.f32 0.5, %v4164_v21  ;;  %v4176_v38 = vmul.f32 0.5, %v4166_v16  ;;  %v7934_v16 = vld [vmem:[#allocation22_spill] sm:$0xff] }
 0xcd5   :  { %6399 = vtanh.f32 %v4167_v58  ;;  %v275_v24 = vadd.f32 %v7934_v16, %v6557_v10  ;;  %v388_v58 = vadd.f32 %v7935_v0, %v6764_v31 }
 0xcd6   :  { %6401 = vtanh.f32 %v4171_v57 }
 0xcd7   :  { %6403 = vtanh.f32 %v4165_v35 }
 0xcd8   :  { %6405 = vtanh.f32 %v4176_v38 }
 0xcdf   :  { %v6400_v61 = vpop.eup %6399 }
 0xce0   :  { %v6402_v29 = vpop.eup %6401  ;;  %v4169_v17 = vmul.f32 0.5, %v6400_v61 }
 0xce1   :  { %v4173_v19 = vmul.f32 0.5, %v6402_v29  ;;  %v6404_v22 = vpop.eup %6403 }
 0xce2   :  { %v4170_v4 = vadd.f32 0.5, %v4169_v17  ;;  %v6406_v8 = vpop.eup %6405 }
 0xce3   :  { %v4174_v34 = vadd.f32 0.5, %v4173_v19  ;;  %v4178_v5 = vmul.f32 0.5, %v6406_v8  ;;  %v7932_v19 = vld [vmem:[#allocation21_spill] sm:$0xff] }
 0xce4   :  { %v4182_v59 = vmul.f32 %v6404_v22, %v4170_v4  ;;  %v273_v17 = vadd.f32 %v7932_v19, %v6739_v11 }
 0xce5   :  { %v4181_v27 = vmul.f32 %v4174_v34, %v7545_v60  ;;  %v4179_v32 = vadd.f32 0.5, %v4178_v5  ;;  %v7933_v60 = vld [vmem:[#allocation58_spill] sm:$0xff] }
 0xce6   :  { %v386_v21 = vadd.f32 %v7933_v60, %v6761_v28 }
 0xce7   :  { %v7644_v18 = vadd.f32 %v4182_v59, %v4181_v27 }
 0xce9   :  { %6407 = vtanh.f32 %v7644_v18 }
 0xcf3   :  { %v6408_v35 = vpop.eup %6407 }
 0xcf4   :  { %v7647_v37 = vmul.f32 %v6408_v35, %v4179_v32 }
 0xcf6   :  { %v4197_v61 = vpack.c.bf16 %v7647_v37, %v7647_v37 }
 0xcf8   :  { %4423 = vmatmul.mubr.bf16.vlgmr.msra.gmra.mrb[64].mxu0 %v4197_v61  ;;  %4464 = vmatmul.mubr.bf16.vlgmr.msra.gmra.mrb[96].mxu1 %v4197_v61 }
 0xcf9   :  { %4700 = vmatpush1.bf16.msra.mxu0 %v7563_v62  ;;  %4741 = vmatpush1.bf16.msra.mxu1 %v7505_v40 }
 0xcfa   :  { %4701 = vmatprep.subr.bf16.mxu0 %v7567_v12  ;;  %4742 = vmatprep.subr.bf16.mxu1 %v7509_v41 }
 0xcfb   :  { %4731 = vmatprep.mubr.bf16.mxu0 %v7847_v3  ;;  %4772 = vmatprep.mubr.bf16.mxu1 %v7847_v3 }
 0xcfd   :  { %4702 = vmatpush1.bf16.msra.mxu0 %v7569_v13  ;;  %4743 = vmatpush1.bf16.msra.mxu1 %v7511_v43 }
 0xcfe   :  { %4703 = vmatprep.subr.bf16.mxu0 %v7573_v6  ;;  %4744 = vmatprep.subr.bf16.mxu1 %v7515_v33 }
 0xd01   :  { %4704 = vmatpush1.bf16.msra.mxu0 %v7575_v25  ;;  %4745 = vmatpush1.bf16.msra.mxu1 %v7517_v45 }
 0xd02   :  { %4705 = vmatprep.subr.bf16.mxu0 %v7579_v44  ;;  %4746 = vmatprep.subr.bf16.mxu1 %v7521_v42 }
 0xd05   :  { %4706 = vmatpush1.bf16.msra.mxu0 %v7581_v49  ;;  %4747 = vmatpush1.bf16.msra.mxu1 %v7523_v23 }
 0xd06   :  { %4707 = vmatprep.subr.bf16.mxu0 %v7585_v47  ;;  %4748 = vmatprep.subr.bf16.mxu1 %v7587_v46 }
 0xd09   :  { %4708 = vmatpush1.bf16.msra.mxu0 %v7589_v48  ;;  %4749 = vmatpush1.bf16.msra.mxu1 %v7591_v50 }
 0xd0a   :  { %4709 = vmatprep.subr.bf16.mxu0 %v7597_v51  ;;  %4750 = vmatprep.subr.bf16.mxu1 %v7599_v52 }
 0xd0d   :  { %4710 = vmatpush1.bf16.msra.mxu0 %v7601_v53  ;;  %4751 = vmatpush1.bf16.msra.mxu1 %v7603_v54 }
 0xd0e   :  { %4711 = vmatprep.subr.bf16.mxu0 %v7609_v55  ;;  %4752 = vmatprep.subr.bf16.mxu1 %v7611_v56 }
 0xd11   :  { %4712 = vmatpush1.bf16.msra.mxu0 %v7613_v26  ;;  %4753 = vmatpush1.bf16.msra.mxu1 %v7615_v30 }
 0xd12   :  { %4713 = vmatprep.subr.bf16.mxu0 %v7621_v14  ;;  %4754 = vmatprep.subr.bf16.mxu1 %v7623_v9 }
 0xd15   :  { %4714 = vmatpush1.bf16.msra.mxu0 %v7625_v63  ;;  %4755 = vmatpush1.bf16.msra.mxu1 %v7627_v36 }
 0xd16   :  { %5008 = vmatprep.subr.bf16.mxu0 %v7561_v2  ;;  %5049 = vmatprep.subr.bf16.mxu1 %v7503_v39 }
 0xdcb   :  { %v4424_v20 = vpop.f32.mrb[64].mxu0  ;;  %v4465_v57 = vpop.f32.mrb[96].mxu1 }
 0xdcc   :  { %v4472_v38 = vadd.f32 %v4424_v20, %v273_v17  ;;  %v4474_v29 = vadd.f32 %v4465_v57, %v386_v21  ;;  %v4426_v4 = vpop.f32.mrb[65].mxu0  ;;  %v4467_v2 = vpop.f32.mrb[97].mxu1 }
 0xdcd   :  { %v4473_v22 = vadd.f32 %v4426_v4, %v275_v24  ;;  %v4475_v39 = vadd.f32 %v4467_v2, %v388_v58  ;;  %v4428_v34 = vpop.f32.mrb[66].mxu0  ;;  %v4469_v59 = vpop.f32.mrb[98].mxu1 }
 0xdce   :  { %v4476_v27 = vmul.f32 0.5, %v4472_v38  ;;  %v4429_v8 = vpop.f32.mrb[67].mxu0  ;;  %v4470_v5 = vpop.f32.mrb[99].mxu1 }
 0xdcf   :  { %v4480_v32 = vmul.f32 0.5, %v4473_v22  ;;  %v4485_v35 = vmul.f32 0.5, %v4475_v39 }
 0xdd0   :  { %6409 = vtanh.f32 %v4476_v27 }
 0xdd1   :  { %6411 = vtanh.f32 %v4480_v32 }
 0xdd2   :  { %6413 = vtanh.f32 %v4474_v29 }
 0xdd3   :  { %6415 = vtanh.f32 %v4485_v35 }
 0xdda   :  { %v6410_v61 = vpop.eup %6409 }
 0xddb   :  { %v6412_v19 = vpop.eup %6411  ;;  %v4478_v60 = vmul.f32 0.5, %v6410_v61  ;;  %v6274_v61 = vld [vmem:[%s7816_s4 + $0x8] sm:$0xff]  }
 0xddc   :  { %v4482_v16 = vmul.f32 0.5, %v6412_v19  ;;  %v6414_v21 = vpop.eup %6413  ;;  %v7940_v19 = vld [vmem:[#allocation27_spill] sm:$0xff] }
 0xddd   :  { %v4479_v17 = vadd.f32 0.5, %v4478_v60  ;;  %v6416_v57 = vpop.eup %6415  ;;  %v5132_v60 = vpack.c.bf16 %v6905_v15, %v7940_v19  ;;  %v6277_v15 = vld [vmem:[%s7816_s4 + $0x20] sm:$0xff]  }
 0xdde   :  { %v4483_v0 = vadd.f32 0.5, %v4482_v16  ;;  %v4487_v38 = vmul.f32 0.5, %v6416_v57  ;;  %v6275_v16 = vld [vmem:[%s7816_s4 + $0x10] sm:$0xff]   ;;  %v7942_v57 = vld [vmem:[#allocation30_spill] sm:$0xff] }
 0xddf   :  { %v4491_v24 = vmul.f32 %v6414_v21, %v4479_v17  ;;  %v6276_v17 = vld [vmem:[%s7816_s4 + $0x18] sm:$0xff]   ;;  %v6278_v21 = vld [vmem:[%s7816_s4 + $0x28] sm:$0xff]  }
 0xde0   :  { %v4490_v58 = vmul.f32 %v4483_v0, %v7644_v18  ;;  %v4488_v4 = vadd.f32 0.5, %v4487_v38  ;;  %v6279_v0 = vld [vmem:[%s7816_s4 + $0x30] sm:$0xff]  }
 0xde2   :  { %v7694_v20 = vadd.f32 %v4491_v24, %v4490_v58  ;;  %v6280_v24 = vld [vmem:[%s7816_s4 + $0x38] sm:$0xff]   ;;  %v5133_v58 = vpack.c.bf16 %v7020_v1, %v6954_v7  ;;  %v7949_v7 = vld [vmem:[#allocation25_spill] sm:$0xff] }
 0xde3   :  { %v283_v1 = vadd.f32 %v7949_v7, %v6739_v11 }
 0xde4   :  { %6417 = vtanh.f32 %v7694_v20 }
 0xdee   :  { %v6418_v29 = vpop.eup %6417 }
 0xdef   :  { %v7697_v2 = vmul.f32 %v6418_v29, %v4488_v4  ;;  %v7943_v4 = vld [vmem:[#allocation29_spill] sm:$0xff]  ;;  %v7944_v29 = vld [vmem:[#allocation31_spill] sm:$0xff] }
 0xdf1   :  { %v4506_v22 = vpack.c.bf16 %v7697_v2, %v7697_v2 }
 0xdf3   :  { %4732 = vmatmul.mubr.bf16.vlgmr.msra.gmra.mrb[68].mxu0 %v4506_v22  ;;  %4773 = vmatmul.mubr.bf16.vlgmr.msra.gmra.mrb[100].mxu1 %v4506_v22  ;;  %v5135_v22 = vpack.c.bf16 %v7944_v29, %v7943_v4 }
 0xdf4   :  { %5009 = vmatpush1.bf16.msra.mxu0 %v7563_v62  ;;  %5050 = vmatpush1.bf16.msra.mxu1 %v7505_v40  ;;  %v7936_v40 = vld [vmem:[#allocation23_spill] sm:$0xff] }
 0xdf5   :  { %5010 = vmatprep.subr.bf16.mxu0 %v7567_v12  ;;  %5051 = vmatprep.subr.bf16.mxu1 %v7509_v41  ;;  %v279_v41 = vadd.f32 %v7936_v40, %v6739_v11  ;;  %v7946_v40 = vld [vmem:[#allocation35_spill] sm:$0xff] }
 0xdf6   :  { %5040 = vmatprep.mubr.bf16.mxu0 %v7847_v3  ;;  %5081 = vmatprep.mubr.bf16.mxu1 %v7847_v3  ;;  %v6273_v3 = vld [vmem:[%s7816_s4] sm:$0xff]  }
 0xdf8   :  { %5011 = vmatpush1.bf16.msra.mxu0 %v7569_v13  ;;  %5052 = vmatpush1.bf16.msra.mxu1 %v7511_v43  ;;  %v7937_v43 = vld [vmem:[#allocation60_spill] sm:$0xff] }
 0xdf9   :  { %5012 = vmatprep.subr.bf16.mxu0 %v7573_v6  ;;  %5053 = vmatprep.subr.bf16.mxu1 %v7515_v33  ;;  %v392_v33 = vadd.f32 %v7937_v43, %v6761_v28  ;;  %v7947_v43 = vld [vmem:[#allocation33_spill] sm:$0xff] }
 0xdfc   :  { %5013 = vmatpush1.bf16.msra.mxu0 %v7575_v25  ;;  %5054 = vmatpush1.bf16.msra.mxu1 %v7517_v45  ;;  %v7938_v45 = vld [vmem:[#allocation24_spill] sm:$0xff] }
 0xdfd   :  { %5014 = vmatprep.subr.bf16.mxu0 %v7579_v44  ;;  %5055 = vmatprep.subr.bf16.mxu1 %v7521_v42  ;;  %v281_v42 = vadd.f32 %v7938_v45, %v6557_v10 }
 0xe00   :  { %5015 = vmatpush1.bf16.msra.mxu0 %v7581_v49  ;;  %5056 = vmatpush1.bf16.msra.mxu1 %v7523_v23  ;;  %v7939_v23 = vld [vmem:[#allocation61_spill] sm:$0xff] }
 0xe01   :  { %5016 = vmatprep.subr.bf16.mxu0 %v7585_v47  ;;  %5057 = vmatprep.subr.bf16.mxu1 %v7587_v46  ;;  %v394_v62 = vadd.f32 %v7939_v23, %v6764_v31  ;;  %v7950_v23 = vld [vmem:[#allocation62_spill] sm:$0xff] }
 0xe04   :  { %5017 = vmatpush1.bf16.msra.mxu0 %v7589_v48  ;;  %5058 = vmatpush1.bf16.msra.mxu1 %v7591_v50 }
 0xe05   :  { %5018 = vmatprep.subr.bf16.mxu0 %v7597_v51  ;;  %5059 = vmatprep.subr.bf16.mxu1 %v7599_v52 }
 0xe08   :  { %5019 = vmatpush1.bf16.msra.mxu0 %v7601_v53  ;;  %5060 = vmatpush1.bf16.msra.mxu1 %v7603_v54 }
 0xe09   :  { %5020 = vmatprep.subr.bf16.mxu0 %v7609_v55  ;;  %5061 = vmatprep.subr.bf16.mxu1 %v7611_v56 }
 0xe0c   :  { %5021 = vmatpush1.bf16.msra.mxu0 %v7613_v26  ;;  %5062 = vmatpush1.bf16.msra.mxu1 %v7615_v30 }
 0xe0d   :  { %5022 = vmatprep.subr.bf16.mxu0 %v7621_v14  ;;  %5063 = vmatprep.subr.bf16.mxu1 %v7623_v9 }
 0xe10   :  { %5023 = vmatpush1.bf16.msra.mxu0 %v7625_v63  ;;  %5064 = vmatpush1.bf16.msra.mxu1 %v7627_v36 }
 0xe11   :  { %6030 = vmatprep.subr.bf16.mxu0 %v6273_v3 }
 0xec6   :  { %v4733_v12 = vpop.f32.mrb[68].mxu0  ;;  %v4774_v13 = vpop.f32.mrb[100].mxu1 }
 0xec7   :  { %v4781_v6 = vadd.f32 %v4733_v12, %v279_v41  ;;  %v4783_v25 = vadd.f32 %v4774_v13, %v392_v33  ;;  %v4735_v44 = vpop.f32.mrb[69].mxu0  ;;  %v4776_v49 = vpop.f32.mrb[101].mxu1  ;;  %v7948_v33 = vld [vmem:[#allocation37_spill] sm:$0xff]  ;;  %v7951_v12 = vld [vmem:[#allocation26_spill] sm:$0xff] }
 0xec8   :  { %v4782_v47 = vadd.f32 %v4735_v44, %v281_v42  ;;  %v4784_v46 = vadd.f32 %v4776_v49, %v394_v62  ;;  %v4737_v48 = vpop.f32.mrb[70].mxu0  ;;  %v4778_v50 = vpop.f32.mrb[102].mxu1  ;;  %v5137_v45 = vpack.c.bf16 %v7948_v33, %v7947_v43  ;;  %v5138_v42 = vpack.c.bf16 %v7697_v2, %v7647_v37 }
 0xec9   :  { %v4785_v51 = vmul.f32 0.5, %v4781_v6  ;;  %v4738_v52 = vpop.f32.mrb[71].mxu0  ;;  %v4779_v53 = vpop.f32.mrb[103].mxu1  ;;  %v396_v62 = vadd.f32 %v7950_v23, %v6761_v28  ;;  %v285_v13 = vadd.f32 %v7951_v12, %v6557_v10  ;;  %v7952_v6 = vld [vmem:[#allocation63_spill] sm:$0xff] }
 0xeca   :  { %v4789_v54 = vmul.f32 0.5, %v4782_v47  ;;  %v4794_v55 = vmul.f32 0.5, %v4784_v46 }
 0xecb   :  { %6419 = vtanh.f32 %v4785_v51 }
 0xecc   :  { %6421 = vtanh.f32 %v4789_v54 }
 0xecd   :  { %6423 = vtanh.f32 %v4783_v25  ;;  %v398_v25 = vadd.f32 %v7952_v6, %v6764_v31 }
 0xece   :  { %6425 = vtanh.f32 %v4794_v55 }
 0xed5   :  { %v6420_v56 = vpop.eup %6419 }
 0xed6   :  { %v6422_v26 = vpop.eup %6421  ;;  %v4787_v30 = vmul.f32 0.5, %v6420_v56 }
 0xed7   :  { %v4791_v14 = vmul.f32 0.5, %v6422_v26  ;;  %v6424_v63 = vpop.eup %6423 }
 0xed8   :  { %v4788_v9 = vadd.f32 0.5, %v4787_v30  ;;  %v6426_v59 = vpop.eup %6425 }
 0xed9   :  { %v4792_v36 = vadd.f32 0.5, %v4791_v14  ;;  %v4796_v27 = vmul.f32 0.5, %v6426_v59 }
 0xeda   :  { %v4800_v18 = vmul.f32 %v6424_v63, %v4788_v9 }
 0xedb   :  { %v4799_v39 = vmul.f32 %v4792_v36, %v7694_v20  ;;  %v4797_v8 = vadd.f32 0.5, %v4796_v27  ;;  %v7941_v20 = vld [vmem:[#allocation28_spill] sm:$0xff] }
 0xedc   :  { %v5134_v38 = vpack.c.bf16 %v7942_v57, %v7941_v20 }
 0xedd   :  { %v7745_v34 = vadd.f32 %v4800_v18, %v4799_v39 }
 0xedf   :  { %6427 = vtanh.f32 %v7745_v34 }
 0xee9   :  { %v6428_v5 = vpop.eup %6427 }
 0xeea   :  { %v7748_v32 = vmul.f32 %v6428_v5, %v4797_v8  ;;  %v5926_v8 = vld [vmem:[%s7817_s5] ss:$0 sm:$0xff]  ;;  %s6492_s5 = smov [#allocation8]  }
 0xeeb   :  { %s5393_s17 = sshll.u32 %s6492_s5, 4  ;;  %s5394_s17 = int_to_ptr.vmem [resolvable:$true] %s5393_s17 }
 0xeec   :  { %v4815_v35 = vpack.c.bf16 %v7748_v32, %v7748_v32  ;;  %s6461_s18 = scalar_lea.vmem %s5394_s17, 1024  ;;  %p6466_p9 = scmp.lt.s32.totalorder %s5394_s17, %s5394_s17 }
 0xeed   :  { %p6462_p8 = scmp.ne.s32.totalorder %s5394_s17, %s6461_s18  ;;  %p6467_p10 = scmp.lt.s32.totalorder %s6461_s18, %s6461_s18 }
 0xeee   :  { %5041 = vmatmul.mubr.bf16.vlgmr.msra.gmra.mrb[72].mxu0 %v4815_v35  ;;  %5082 = vmatmul.mubr.bf16.vlgmr.msra.gmra.mrb[104].mxu1 %v4815_v35 }
 0xeef   :  { %6031 = vmatpush3.bf16.msra.mxu0 %v6273_v3  ;;  %6046 = vmatprep.mubr.bf16.mxu0 %v5132_v60  ;;  %v7945_v3 = vld [vmem:[#allocation32_spill] sm:$0xff]  ;;  %p6468_p11 = por %p6467_p10, %p6466_p9 }
 0xef0   :  { %6032 = vmatprep.subr.bf16.mxu0 %v6274_v61  ;;  %v5136_v41 = vpack.c.bf16 %v7946_v40, %v7945_v3 }
 0xef1   :  { %p6469_p12 = pnand %p6468_p11, %p6462_p8 }
 0xef3   :  { %6033 = vmatpush3.bf16.msra.mxu0 %v6274_v61 }
 0xef4   :  { %6034 = vmatprep.subr.bf16.mxu0 %v6275_v16 }
 0xef7   :  { %6035 = vmatpush3.bf16.msra.mxu0 %v6275_v16 }
 0xef8   :  { %6036 = vmatprep.subr.bf16.mxu0 %v6276_v17 }
 0xefb   :  { %6037 = vmatpush3.bf16.msra.mxu0 %v6276_v17 }
 0xefc   :  { %6038 = vmatprep.subr.bf16.mxu0 %v6277_v15 }
 0xeff   :  { %6039 = vmatpush3.bf16.msra.mxu0 %v6277_v15 }
 0xf00   :  { %6040 = vmatprep.subr.bf16.mxu0 %v6278_v21 }
 0xf03   :  { %6041 = vmatpush3.bf16.msra.mxu0 %v6278_v21 }
 0xf04   :  { %6042 = vmatprep.subr.bf16.mxu0 %v6279_v0 }
 0xf07   :  { %6043 = vmatpush3.bf16.msra.mxu0 %v6279_v0 }
 0xf08   :  { %6044 = vmatprep.subr.bf16.mxu0 %v6280_v24 }
 0xf0b   :  { %6045 = vmatpush3.bf16.msra.mxu0 %v6280_v24 }
 0xf0e   :  { %6047 = vmatmul.mubr.bf16.vlgmr.msra.gmra.mrb[76].mxu0 %v5133_v58 }
 0xf0f   :  { %6050 = vmatprep.mubr.bf16.mxu0 %v5134_v38 }
 0xf16   :  { %6051 = vmatmul.mubr.bf16.gmra.mrb[80].mxu0 %v5135_v22 }
 0xf17   :  { %6054 = vmatprep.mubr.bf16.mxu0 %v5136_v41 }
 0xf1e   :  { %6055 = vmatmul.mubr.bf16.gmra.mrb[84].mxu0 %v5137_v45 }
 0xf1f   :  { %6058 = vmatprep.mubr.bf16.mxu0 %v5138_v42 }
 0xfc1   :  { %v5042_v44 = vpop.f32.mrb[72].mxu0  ;;  %v5083_v49 = vpop.f32.mrb[104].mxu1 }
 0xfc2   :  { %v5090_v47 = vadd.f32 %v5042_v44, %v283_v1  ;;  %v5092_v46 = vadd.f32 %v5083_v49, %v396_v62  ;;  %v5044_v48 = vpop.f32.mrb[73].mxu0  ;;  %v5085_v37 = vpop.f32.mrb[105].mxu1 }
 0xfc3   :  { %v5091_v2 = vadd.f32 %v5044_v48, %v285_v13  ;;  %v5093_v50 = vadd.f32 %v5085_v37, %v398_v25  ;;  %v5046_v51 = vpop.f32.mrb[74].mxu0  ;;  %v5087_v52 = vpop.f32.mrb[106].mxu1 }
 0xfc4   :  { %v5094_v11 = vmul.f32 0.5, %v5090_v47  ;;  %v5047_v53 = vpop.f32.mrb[75].mxu0  ;;  %v5088_v54 = vpop.f32.mrb[107].mxu1 }
 0xfc5   :  { %v5098_v28 = vmul.f32 0.5, %v5091_v2  ;;  %v5103_v10 = vmul.f32 0.5, %v5093_v50 }
 0xfc6   :  { %6429 = vtanh.f32 %v5094_v11 }
 0xfc7   :  { %6431 = vtanh.f32 %v5098_v28 }
 0xfc8   :  { %6433 = vtanh.f32 %v5092_v46 }
 0xfc9   :  { %6435 = vtanh.f32 %v5103_v10 }
 0xfd0   :  { %v6430_v55 = vpop.eup %6429 }
 0xfd1   :  { %v6432_v31 = vpop.eup %6431  ;;  %v5096_v56 = vmul.f32 0.5, %v6430_v55 }
 0xfd2   :  { %v5100_v26 = vmul.f32 0.5, %v6432_v31  ;;  %v6434_v14 = vpop.eup %6433 }
 0xfd3   :  { %v5097_v30 = vadd.f32 0.5, %v5096_v56  ;;  %v6436_v39 = vpop.eup %6435 }
 0xfd4   :  { %v5101_v9 = vadd.f32 0.5, %v5100_v26  ;;  %v5105_v59 = vmul.f32 0.5, %v6436_v39 }
 0xfd5   :  { %v5109_v63 = vmul.f32 %v6434_v14, %v5097_v30 }
 0xfd6   :  { %v5108_v36 = vmul.f32 %v5101_v9, %v7745_v34  ;;  %v5106_v35 = vadd.f32 0.5, %v5105_v59 }
 0xfd8   :  { %v5110_v18 = vadd.f32 %v5109_v63, %v5108_v36 }
 0xfda   :  { %6437 = vtanh.f32 %v5110_v18 }
 0xfe1   :  { %v6048_v27 = vpop.f32.mrb[76].mxu0 }
 0xfe2   :  { %v5245_v5 = vpop.f32.mrb[77].mxu0  ;;  %v5254_v60 = vadd.f32 %v6048_v27, %v5926_v8 }
 0xfe3   :  { %v6049_v61 = vpop.f32.mrb[78].mxu0  ;;  %v5246_v15 = vadd.f32 %v5926_v8, %v5245_v5 }
 0xfe4   :  { %v6438_v19 = vpop.eup %6437  ;;  %v5257_v16 = vadd.f32 %v6049_v61, %v5926_v8  ;;  %v5248_v17 = vpop.f32.mrb[79].mxu0 }
 0xfe5   :  { %v5249_v21 = vadd.f32 %v5926_v8, %v5248_v17  ;;  %v5113_v0 = vmul.f32 %v6438_v19, %v5106_v35 }
 0xfe6   :  { %v5975_v34 = vpack.c.bf16 %v5257_v16, %v5254_v60 }
 0xfe7   :  { %v5970_v24 = vpack.c.bf16 %v5249_v21, %v5246_v15  ;;  %v5139_v58 = vpack.c.bf16 %v5113_v0, %v7748_v32 }
 0xfe8   :  { %6007 = vst [vmem:[#allocation8 + $0x8] sm:$0xff] %v5975_v34  }
 0xfe9   :  { %5971 = vst [vmem:[#allocation8] sm:$0xff] %v5970_v24   ;;  %v6052_v20 = vpop.f32.mrb[80].mxu0  ;;  %6059 = vmatmul.mubr.bf16.gmra.mrb[88].mxu0 %v5139_v58 }
 0xfea   :  { %v5261_v57 = vpop.f32.mrb[81].mxu0  ;;  %v5270_v4 = vadd.f32 %v6052_v20, %v5926_v8 }
 0xfeb   :  { %v6053_v38 = vpop.f32.mrb[82].mxu0  ;;  %v5262_v3 = vadd.f32 %v5926_v8, %v5261_v57 }
 0xfec   :  { %v5273_v29 = vadd.f32 %v6053_v38, %v5926_v8  ;;  %v5264_v22 = vpop.f32.mrb[83].mxu0 }
 0xfed   :  { %v5265_v40 = vadd.f32 %v5926_v8, %v5264_v22 }
 0xfee   :  { %v5985_v41 = vpack.c.bf16 %v5273_v29, %v5270_v4 }
 0xfef   :  { %v5980_v43 = vpack.c.bf16 %v5265_v40, %v5262_v3 }
 0xff0   :  { %6009 = vst [vmem:[#allocation8 + $0x18] sm:$0xff] %v5985_v41  }
 0xff1   :  { %6008 = vst [vmem:[#allocation8 + $0x10] sm:$0xff] %v5980_v43   ;;  %v6056_v33 = vpop.f32.mrb[84].mxu0 }
 0xff2   :  { %v5277_v45 = vpop.f32.mrb[85].mxu0  ;;  %v5286_v7 = vadd.f32 %v6056_v33, %v5926_v8 }
 0xff3   :  { %v6057_v42 = vpop.f32.mrb[86].mxu0  ;;  %v5278_v23 = vadd.f32 %v5926_v8, %v5277_v45 }
 0xff4   :  { %v5289_v32 = vadd.f32 %v6057_v42, %v5926_v8  ;;  %v5280_v1 = vpop.f32.mrb[87].mxu0 }
 0xff5   :  { %v5281_v62 = vadd.f32 %v5926_v8, %v5280_v1 }
 0xff6   :  { %v5995_v12 = vpack.c.bf16 %v5289_v32, %v5286_v7 }
 0xff7   :  { %v5990_v13 = vpack.c.bf16 %v5281_v62, %v5278_v23 }
 0xff8   :  { %6011 = vst [vmem:[#allocation8 + $0x28] sm:$0xff] %v5995_v12  }
 0xff9   :  { %6010 = vst [vmem:[#allocation8 + $0x20] sm:$0xff] %v5990_v13  }
0x10bc   :  { %v6060_v6 = vpop.f32.mrb[88].mxu0 }
0x10bd   :  { %v5293_v25 = vpop.f32.mrb[89].mxu0  ;;  %v5302_v49 = vadd.f32 %v6060_v6, %v5926_v8 }
0x10be   :  { %v6061_v44 = vpop.f32.mrb[90].mxu0  ;;  %v5294_v48 = vadd.f32 %v5926_v8, %v5293_v25 }
0x10bf   :  { %v5305_v47 = vadd.f32 %v6061_v44, %v5926_v8  ;;  %v5296_v46 = vpop.f32.mrb[91].mxu0 }
0x10c0   :  { %v5297_v37 = vadd.f32 %v5926_v8, %v5296_v46 }
0x10c1   :  { %v6005_v2 = vpack.c.bf16 %v5305_v47, %v5302_v49 }
0x10c2   :  { %v6000_v50 = vpack.c.bf16 %v5297_v37, %v5294_v48 }
0x10c3   :  { %6013 = vst [vmem:[#allocation8 + $0x38] sm:$0xff] %v6005_v2  }
0x10c4   :  { %6012 = vst [vmem:[#allocation8 + $0x30] sm:$0xff] %v6000_v50  }
0x10c5   :  { %6472 = shalt.err (!%p6469_p12)
}
0x10c6   :  { %s6473_s21 = scalar_lea.hbm %s7818_s6, 1024 }
0x10c7   :  { %p6474_p13 = scmp.ne.s32.totalorder %s7818_s6, %s6473_s21  ;;  %p6477_p0 = scmp.lt.u32.totalorder %s6473_s21, %s7818_s6 }
0x10c9   :  { %p6479_p1 = pnand %p6477_p0, %p6474_p13 }
0x10cb   :  { %6482 = shalt.err (!%p6479_p1)
}
0x10cc   :  { %s6493_s26 = smov 64   ;;  %s6494_s27 = smov 4  }
0x10cd   :  { %5399 = dma.vmem_to_hbm [thread:$0]  %s5394_s17, 1024, %s7818_s6, [#allocation7], %s6493_s26, %s6493_s26, %s6494_s27  }
0x10ce   :  { %6485 = dma.done.wait [#allocation7], 1024  }
0x10cf   :  { %6486 = vsyncadd [#allocation7], 4294966272 }
0x10d0   :  { %5403 = vsyncpa [#allocation6], 1 }
0x10d1   :  { %5404 = vsyncpa [#allocation7], 1 }

</bundles_post_ra>
